<compile_context>
chip_gen: v6e
topology: v6e:2x2x1
jax: 0.10.0
libtpu: 0.0.40
codegen_flags: <defaults>
</compile_context>

<pallas_src>
import numpy as np
import jax
import jax.numpy as jnp
from jax import lax
from jax.experimental import pallas as pl
from jax.experimental.pallas import tpu as pltpu

ACT_DTYPE = jnp.bfloat16   # inter-layer activations / embedding table
W_DTYPE = jnp.bfloat16     # LSTM weights


# ---------------------------------------------------------------------------
# Pallas kernels
# ---------------------------------------------------------------------------
def gate_proj_kernel(x_ref, w_ref, b_ref, o_ref):
    """pre_gates = x @ Wih + b for one direction (grid axis 0 = direction)."""
    o_ref[...] = (jnp.dot(x_ref[...], w_ref[...],
                          preferred_element_type=jnp.float32)
                  + b_ref[...]).astype(o_ref.dtype)


def bilstm_rec_kernel(pg_ref, whh_ref, out_ref, hlast_ref, clast_ref, h_sc, c_sc):
    """Fused bidirectional LSTM recurrence.

    grid = (direction, time_block).  Direction is 'parallel' (fwd/bwd independent, may
    land on separate TensorCores on v7x); time is 'arbitrary' and carries h/c across
    grid steps in VMEM scratch.  The backward direction sees time blocks in reverse
    order via the index_maps and walks local time in reverse inside the block.
    """
    d = pl.program_id(0)
    tb = pl.program_id(1)
    n_tb = pl.num_programs(1)

    @pl.when(tb == 0)
    def _init():
        h_sc[...] = jnp.zeros_like(h_sc)
        c_sc[...] = jnp.zeros_like(c_sc)

    tc_blk = pg_ref.shape[0]          # timesteps per block
    H = h_sc.shape[-1]

    def cell_step(lt):
        # Input projection was hoisted out; only the small recurrent dot stays serial.
        gates = pg_ref[lt] + jnp.dot(h_sc[...].astype(whh_ref.dtype), whh_ref[...],
                                     preferred_element_type=jnp.float32)
        i_g = jax.nn.sigmoid(gates[:, 0 * H:1 * H])
        f_g = jax.nn.sigmoid(gates[:, 1 * H:2 * H])
        g_g = jnp.tanh(gates[:, 2 * H:3 * H])
        o_g = jax.nn.sigmoid(gates[:, 3 * H:4 * H])
        c_new = f_g * c_sc[...] + i_g * g_g
        h_new = o_g * jnp.tanh(c_new)
        c_sc[...] = c_new
        h_sc[...] = h_new
        out_ref[lt] = h_new.astype(out_ref.dtype)

    @pl.when(d == 0)                  # forward: local time 0 .. tc-1
    def _fwd():
        for lt in range(tc_blk):
            cell_step(lt)

    @pl.when(d == 1)                  # backward: local time tc-1 .. 0
    def _bwd():
        for lt in range(tc_blk - 1, -1, -1):
            cell_step(lt)

    # Final (h, c) written only once per direction (saves 2 stores per timestep).
    @pl.when(tb == n_tb - 1)
    def _final():
        hlast_ref[...] = h_sc[...].astype(hlast_ref.dtype)
        clast_ref[...] = c_sc[...].astype(clast_ref.dtype)


def dual_linear_kernel(x_ref, w_ref, b_ref, o_ref):
    """Two FC heads (fc_hidden / fc_cell) fused; grid axis 0 selects the head."""
    o_ref[...] = (jnp.dot(x_ref[...], w_ref[...],
                          preferred_element_type=jnp.float32)
                  + b_ref[...]).astype(o_ref.dtype)


# ---------------------------------------------------------------------------
# Wrappers
# ---------------------------------------------------------------------------
def gate_projection(x2d, wih, b):
    """x2d: (T*B, Din) bf16, wih: (2, Din, 4H) bf16, b: (2, 1, 4H) f32 -> (2, T*B, 4H) f32."""
    M, Din = x2d.shape
    G = wih.shape[2]
    return pl.pallas_call(
        gate_proj_kernel,
        out_shape=jax.ShapeDtypeStruct((2, M, G), jnp.float32),
        grid_spec=pltpu.PrefetchScalarGridSpec(
            num_scalar_prefetch=0,
            grid=(2,),
            in_specs=[pl.BlockSpec((M, Din), lambda d: (0, 0)),        # shared x block
                      pl.BlockSpec((None, Din, G), lambda d: (d, 0, 0)),
                      pl.BlockSpec((None, 1, G), lambda d: (d, 0, 0))],
            out_specs=pl.BlockSpec((None, M, G), lambda d: (d, 0, 0))),
        compiler_params=pltpu.CompilerParams(dimension_semantics=("parallel",)),
    )(x2d, wih, b)


def bilstm_recurrence(pre_gates, whh, time_block):
    """pre_gates: (2, T, B, 4H) f32, whh: (2, H, 4H) bf16.

    Returns out (T, B, 2H) bf16 ([:, :, :H]=fwd, [:, :, H:]=bwd),
            h_last (B, 2H) f32, c_last (B, 2H) f32 (same fwd|bwd layout).
    """
    _, T, B, G = pre_gates.shape
    H = whh.shape[1]
    assert G == 4 * H and T % time_block == 0
    tc = time_block
    n_tb = T // tc

    # Backward direction walks time blocks in reverse order (pure index arithmetic):
    #   d=0 -> t ;  d=1 -> n_tb-1-t
    def time_idx(d, t):
        return d * (n_tb - 1) + (1 - 2 * d) * t

    # Rough VMEM budget: double-buffered blocks + scratch + headroom (v7x has 64 MiB).
    block_bytes = (tc * B * G * 4                      # pre-gates block (f32)
                   + H * G * jnp.dtype(W_DTYPE).itemsize   # whh block
                   + tc * B * H * jnp.dtype(ACT_DTYPE).itemsize  # out block
                   + 2 * B * H * 4)                    # h_last / c_last blocks
    vmem_limit = int(2 * block_bytes + 2 * B * H * 4 + (8 << 20))

    out_shapes = (jax.ShapeDtypeStruct((T, B, 2 * H), ACT_DTYPE),
                  jax.ShapeDtypeStruct((B, 2 * H), jnp.float32),
                  jax.ShapeDtypeStruct((B, 2 * H), jnp.float32))
    return pl.pallas_call(
        bilstm_rec_kernel,
        out_shape=out_shapes,
        grid_spec=pltpu.PrefetchScalarGridSpec(
            num_scalar_prefetch=0,
            grid=(2, n_tb),
            in_specs=[pl.BlockSpec((None, tc, B, G), lambda d, t: (d, time_idx(d, t), 0, 0)),
                      pl.BlockSpec((None, H, G), lambda d, t: (d, 0, 0))],
            out_specs=[pl.BlockSpec((tc, B, H), lambda d, t: (time_idx(d, t), 0, d)),
                       pl.BlockSpec((B, H), lambda d, t: (0, d)),
                       pl.BlockSpec((B, H), lambda d, t: (0, d))],
            scratch_shapes=[pltpu.VMEM((B, H), jnp.float32),
                            pltpu.VMEM((B, H), jnp.float32)]),
        compiler_params=pltpu.CompilerParams(
            dimension_semantics=("parallel", "arbitrary"),   # time must stay sequential
            vmem_limit_bytes=vmem_limit),
    )(pre_gates, whh)


def fc_heads(h_cat, c_cat, fc_w, fc_b):
    """h_cat/c_cat: (B, 2H) f32; fc_w: (2, 2H, H); fc_b: (2, 1, H) -> (hidden, cell)."""
    x = jnp.stack([h_cat, c_cat])                   # (2, B, 2H)
    B, Din = h_cat.shape
    H = fc_w.shape[2]
    out = pl.pallas_call(
        dual_linear_kernel,
        out_shape=jax.ShapeDtypeStruct((2, B, H), jnp.float32),
        grid_spec=pltpu.PrefetchScalarGridSpec(
            num_scalar_prefetch=0,
            grid=(2,),
            in_specs=[pl.BlockSpec((None, B, Din), lambda i: (i, 0, 0)),
                      pl.BlockSpec((None, Din, H), lambda i: (i, 0, 0)),
                      pl.BlockSpec((None, 1, H), lambda i: (i, 0, 0))],
            out_specs=pl.BlockSpec((None, B, H), lambda i: (i, 0, 0))),
        compiler_params=pltpu.CompilerParams(dimension_semantics=("parallel",)),
    )(x, fc_w, fc_b)
    return out[0], out[1]


def bilstm_layer(x, layer_params, time_block):
    """x: (T, B, Din) bf16 -> (out (T,B,2H) bf16, h_last (B,2H) f32, c_last (B,2H) f32)."""
    T, B, Din = x.shape
    x2d = x.reshape(T * B, Din)                               # free (contiguous) reshape
    pg2d = gate_projection(x2d, layer_params['wih'], layer_params['b'])
    pre_gates = pg2d.reshape(2, T, B, pg2d.shape[-1])         # free reshape
    return bilstm_recurrence(pre_gates, layer_params['whh'], time_block)


def encoder_forward(params, tokens, time_block=4):
    """tokens: (T, B) int32.  Mirrors Encoder.forward (dropout = eval-mode identity)."""
    x = params['embedding'][tokens]                           # (T, B, E) bf16; plain-JAX gather
    # TODO(synk): nn.Dropout(p) is applied in eval mode (identity); no RNG mask kernel.
    h_last = c_last = None
    for lp in params['lstm']:
        x, h_last, c_last = bilstm_layer(x, lp, time_block)
    encoder_states = x                                        # (T, B, 2H) bf16, last layer
    # h_last/c_last are already laid out as [hidden[-2] | hidden[-1]] -> no concat needed.
    hidden, cell = fc_heads(h_last, c_last, params['fc_w'], params['fc_b'])
    return encoder_states, hidden, cell


# ---------------------------------------------------------------------------
# Pure-JAX reference with identical cast points (lax.scan) for correctness check
# ---------------------------------------------------------------------------
def _lstm_dir_ref(pg, whh):
    H = whh.shape[0]
    B = pg.shape[1]

    def step(carry, g_in):
        h, c = carry
        gates = g_in + jnp.dot(h.astype(whh.dtype), whh,
                               preferred_element_type=jnp.float32)
        i_g = jax.nn.sigmoid(gates[:, 0 * H:1 * H])
        f_g = jax.nn.sigmoid(gates[:, 1 * H:2 * H])
        g_g = jnp.tanh(gates[:, 2 * H:3 * H])
        o_g = jax.nn.sigmoid(gates[:, 3 * H:4 * H])
        c = f_g * c + i_g * g_g
        h = o_g * jnp.tanh(c)
        return (h, c), h

    init = (jnp.zeros((B, H), jnp.float32), jnp.zeros((B, H), jnp.float32))
    (h, c), out = lax.scan(step, init, pg)
    return out, h, c


def encoder_ref(params, tokens):
    x = params['embedding'][tokens]
    h_cat = c_cat = None
    for lp in params['lstm']:
        T, B, Din = x.shape
        x2d = x.reshape(T * B, Din)
        outs, hs, cs = [], [], []
        for d in range(2):
            pg = (jnp.dot(x2d, lp['wih'][d], preferred_element_type=jnp.float32)
                  .reshape(T, B, -1) + lp['b'][d])
            if d == 1:
                pg = pg[::-1]
            out, h, c = _lstm_dir_ref(pg, lp['whh'][d])
            if d == 1:
                out = out[::-1]
            outs.append(out); hs.append(h); cs.append(c)
        x = jnp.concatenate(outs, axis=-1).astype(ACT_DTYPE)
        h_cat = jnp.concatenate(hs, axis=1)
        c_cat = jnp.concatenate(cs, axis=1)
    hidden = jnp.dot(h_cat, params['fc_w'][0], preferred_element_type=jnp.float32) + params['fc_b'][0, 0]
    cell = jnp.dot(c_cat, params['fc_w'][1], preferred_element_type=jnp.float32) + params['fc_b'][1, 0]
    return x, hidden, cell


# ---------------------------------------------------------------------------
# Parameter init (deterministic, synthetic)
# ---------------------------------------------------------------------------
def init_params(key, vocab, E, H, num_layers):
    def nrm(k, shape, dtype=jnp.float32, scale=0.1):
        return (scale * jax.random.normal(k, shape, dtype=jnp.float32)).astype(dtype)

    keys = iter(jax.random.split(key, 8 + 4 * num_layers))
    params = {'embedding': nrm(next(keys), (vocab, E), ACT_DTYPE)}
    lstm = []
    for layer in range(num_layers):
        din = E if layer == 0 else 2 * H
        lstm.append({
            'wih': nrm(next(keys), (2, din, 4 * H), W_DTYPE),    # transposed weight_ih (fwd, bwd)
            'whh': nrm(next(keys), (2, H, 4 * H), W_DTYPE),      # transposed weight_hh (fwd, bwd)
            'b':   nrm(next(keys), (2, 1, 4 * H), jnp.float32),  # b_ih + b_hh combined
        })
    params['lstm'] = lstm
    params['fc_w'] = nrm(next(keys), (2, 2 * H, H), jnp.float32)   # [fc_hidden; fc_cell]
    params['fc_b'] = nrm(next(keys), (2, 1, H), jnp.float32)
    return params


# ---------------------------------------------------------------------------
if __name__ == "__main__":
    key = jax.random.PRNGKey(0)
    # Small but lane-aligned demo shapes (production: hidden_size=1024, num_layers=2).
    VOCAB, E, H, T, B, L = 50, 128, 128, 8, 2, 2
    TIME_BLOCK = 4   # timesteps processed per grid step

    k_par, k_tok = jax.random.split(key)
    params = init_params(k_par, VOCAB, E, H, L)
    tokens = jax.random.randint(k_tok, (T, B), 0, VOCAB, dtype=jnp.int32)

    fwd = jax.jit(encoder_forward, static_argnames=('time_block',))
    enc_states, hidden, cell = fwd(params, tokens, time_block=TIME_BLOCK)
    jax.block_until_ready((enc_states, hidden, cell))

    # Sanity check against the pure-JAX reference with identical cast points.
    ref_states, ref_hidden, ref_cell = encoder_ref(params, tokens)
    np.testing.assert_allclose(np.asarray(enc_states.astype(jnp.float32)),
                               np.asarray(ref_states.astype(jnp.float32)),
                               rtol=2e-2, atol=2e-2)
    np.testing.assert_allclose(np.asarray(hidden), np.asarray(ref_hidden),
                               rtol=2e-2, atol=2e-2)
    np.testing.assert_allclose(np.asarray(cell), np.asarray(ref_cell),
                               rtol=2e-2, atol=2e-2)

    assert enc_states.shape == (T, B, 2 * H)
    assert hidden.shape == (B, H)
    assert cell.shape == (B, H)
    print("KERNEL_OK")
</pallas_src>

<mosaic_0001>
module attributes {stable_mosaic.version = 11 : i64} {
  func.func @gate_proj_kernel(%arg0: i32, %arg1: memref<16x256xbf16, #tpu.memory_space<vmem>>, %arg2: memref<1x256x512xbf16, #tpu.memory_space<vmem>>, %arg3: memref<1x1x512xf32, #tpu.memory_space<vmem>>, %arg4: memref<1x16x512xf32, #tpu.memory_space<vmem>>) attributes {dimension_semantics = [#tpu.dimension_semantics<parallel>], iteration_bounds = array<i64: 2>, scalar_prefetch = 0 : i64, scratch_operands = 0 : i64, tpu.core_type = #tpu.core_type<tc>, window_params = [{pipeline_mode = #tpu.pipeline_mode<synchronous>, transform_indices = @transform_0, window_bounds = array<i64: 16, 256>}, {transform_indices = @transform_1, window_bounds = array<i64: 1, 256, 512>}, {transform_indices = @transform_2, window_bounds = array<i64: 1, 1, 512>}, {transform_indices = @transform_3, window_bounds = array<i64: 1, 16, 512>}]} {
    %c0 = arith.constant 0 : index
    %c0_0 = arith.constant 0 : index
    %0 = vector.load %arg1[%c0, %c0_0] : memref<16x256xbf16, #tpu.memory_space<vmem>>, vector<16x256xbf16>
    %c0_1 = arith.constant 0 : index
    %c0_2 = arith.constant 0 : index
    %c0_3 = arith.constant 0 : index
    %1 = vector.load %arg2[%c0_1, %c0_2, %c0_3] : memref<1x256x512xbf16, #tpu.memory_space<vmem>>, vector<1x256x512xbf16>
    %2 = vector.shape_cast %1 : vector<1x256x512xbf16> to vector<256x512xbf16>
    %cst = arith.constant dense<0.000000e+00> : vector<16x512xf32>
    %3 = tpu.matmul %0, %2, %cst {dimension_numbers = #tpu.dot_dimension_numbers<[1], [0], [0], [1], [0, 0, 1, 1], [], []>} : vector<16x256xbf16>, vector<256x512xbf16>, vector<16x512xf32> -> vector<16x512xf32>
    %c0_4 = arith.constant 0 : index
    %c0_5 = arith.constant 0 : index
    %c0_6 = arith.constant 0 : index
    %4 = vector.load %arg3[%c0_4, %c0_5, %c0_6] : memref<1x1x512xf32, #tpu.memory_space<vmem>>, vector<1x1x512xf32>
    %5 = vector.shape_cast %4 : vector<1x1x512xf32> to vector<1x512xf32>
    %6 = vector.broadcast %5 : vector<1x512xf32> to vector<16x512xf32>
    %7 = arith.addf %3, %6 : vector<16x512xf32>
    %c0_7 = arith.constant 0 : index
    %c0_8 = arith.constant 0 : index
    %c0_9 = arith.constant 0 : index
    %8 = vector.load %arg4[%c0_7, %c0_8, %c0_9] : memref<1x16x512xf32, #tpu.memory_space<vmem>>, vector<1x16x512xf32>
    %9 = vector.shape_cast %8 : vector<1x16x512xf32> to vector<16x512xf32>
    %10 = vector.shape_cast %7 : vector<16x512xf32> to vector<1x16x512xf32>
    tpu.vector_store %arg4[%c0_7, %c0_8, %c0_9], %10 {strides = array<i32>} : memref<1x16x512xf32, #tpu.memory_space<vmem>>, vector<1x16x512xf32>,
    return
  }
  func.func @transform_0(%arg0: i32) -> (i32, i32) {
    %c0_i32 = arith.constant 0 : i32
    %c0_i32_0 = arith.constant 0 : i32
    %c0_i32_1 = arith.constant 0 : i32
    return %c0_i32, %c0_i32_0 : i32, i32
  }
  func.func @transform_1(%arg0: i32) -> (i32, i32, i32) {
    %c0_i32 = arith.constant 0 : i32
    %c0_i32_0 = arith.constant 0 : i32
    %c0_i32_1 = arith.constant 0 : i32
    return %arg0, %c0_i32, %c0_i32_0 : i32, i32, i32
  }
  func.func @transform_2(%arg0: i32) -> (i32, i32, i32) {
    %c0_i32 = arith.constant 0 : i32
    %c0_i32_0 = arith.constant 0 : i32
    %c0_i32_1 = arith.constant 0 : i32
    return %arg0, %c0_i32, %c0_i32_0 : i32, i32, i32
  }
  func.func @transform_3(%arg0: i32) -> (i32, i32, i32) {
    %c0_i32 = arith.constant 0 : i32
    %c0_i32_0 = arith.constant 0 : i32
    %c0_i32_1 = arith.constant 0 : i32
    return %arg0, %c0_i32, %c0_i32_0 : i32, i32, i32
  }
}

module attributes {stable_mosaic.version = 11 : i64} {
  func.func @gate_proj_kernel(%arg0: i32, %arg1: memref<16x128xbf16, #tpu.memory_space<vmem>>, %arg2: memref<1x128x512xbf16, #tpu.memory_space<vmem>>, %arg3: memref<1x1x512xf32, #tpu.memory_space<vmem>>, %arg4: memref<1x16x512xf32, #tpu.memory_space<vmem>>) attributes {dimension_semantics = [#tpu.dimension_semantics<parallel>], iteration_bounds = array<i64: 2>, scalar_prefetch = 0 : i64, scratch_operands = 0 : i64, tpu.core_type = #tpu.core_type<tc>, window_params = [{pipeline_mode = #tpu.pipeline_mode<synchronous>, transform_indices = @transform_0, window_bounds = array<i64: 16, 128>}, {transform_indices = @transform_1, window_bounds = array<i64: 1, 128, 512>}, {transform_indices = @transform_2, window_bounds = array<i64: 1, 1, 512>}, {transform_indices = @transform_3, window_bounds = array<i64: 1, 16, 512>}]} {
    %c0 = arith.constant 0 : index
    %c0_0 = arith.constant 0 : index
    %0 = vector.load %arg1[%c0, %c0_0] : memref<16x128xbf16, #tpu.memory_space<vmem>>, vector<16x128xbf16>
    %c0_1 = arith.constant 0 : index
    %c0_2 = arith.constant 0 : index
    %c0_3 = arith.constant 0 : index
    %1 = vector.load %arg2[%c0_1, %c0_2, %c0_3] : memref<1x128x512xbf16, #tpu.memory_space<vmem>>, vector<1x128x512xbf16>
    %2 = vector.shape_cast %1 : vector<1x128x512xbf16> to vector<128x512xbf16>
    %cst = arith.constant dense<0.000000e+00> : vector<16x512xf32>
    %3 = tpu.matmul %0, %2, %cst {dimension_numbers = #tpu.dot_dimension_numbers<[1], [0], [0], [1], [0, 0, 1, 1], [], []>} : vector<16x128xbf16>, vector<128x512xbf16>, vector<16x512xf32> -> vector<16x512xf32>
    %c0_4 = arith.constant 0 : index
    %c0_5 = arith.constant 0 : index
    %c0_6 = arith.constant 0 : index
    %4 = vector.load %arg3[%c0_4, %c0_5, %c0_6] : memref<1x1x512xf32, #tpu.memory_space<vmem>>, vector<1x1x512xf32>
    %5 = vector.shape_cast %4 : vector<1x1x512xf32> to vector<1x512xf32>
    %6 = vector.broadcast %5 : vector<1x512xf32> to vector<16x512xf32>
    %7 = arith.addf %3, %6 : vector<16x512xf32>
    %c0_7 = arith.constant 0 : index
    %c0_8 = arith.constant 0 : index
    %c0_9 = arith.constant 0 : index
    %8 = vector.load %arg4[%c0_7, %c0_8, %c0_9] : memref<1x16x512xf32, #tpu.memory_space<vmem>>, vector<1x16x512xf32>
    %9 = vector.shape_cast %8 : vector<1x16x512xf32> to vector<16x512xf32>
    %10 = vector.shape_cast %7 : vector<16x512xf32> to vector<1x16x512xf32>
    tpu.vector_store %arg4[%c0_7, %c0_8, %c0_9], %10 {strides = array<i32>} : memref<1x16x512xf32, #tpu.memory_space<vmem>>, vector<1x16x512xf32>,
    return
  }
  func.func @transform_0(%arg0: i32) -> (i32, i32) {
    %c0_i32 = arith.constant 0 : i32
    %c0_i32_0 = arith.constant 0 : i32
    %c0_i32_1 = arith.constant 0 : i32
    return %c0_i32, %c0_i32_0 : i32, i32
  }
  func.func @transform_1(%arg0: i32) -> (i32, i32, i32) {
    %c0_i32 = arith.constant 0 : i32
    %c0_i32_0 = arith.constant 0 : i32
    %c0_i32_1 = arith.constant 0 : i32
    return %arg0, %c0_i32, %c0_i32_0 : i32, i32, i32
  }
  func.func @transform_2(%arg0: i32) -> (i32, i32, i32) {
    %c0_i32 = arith.constant 0 : i32
    %c0_i32_0 = arith.constant 0 : i32
    %c0_i32_1 = arith.constant 0 : i32
    return %arg0, %c0_i32, %c0_i32_0 : i32, i32, i32
  }
  func.func @transform_3(%arg0: i32) -> (i32, i32, i32) {
    %c0_i32 = arith.constant 0 : i32
    %c0_i32_0 = arith.constant 0 : i32
    %c0_i32_1 = arith.constant 0 : i32
    return %arg0, %c0_i32, %c0_i32_0 : i32, i32, i32
  }
}

module attributes {stable_mosaic.version = 11 : i64} {
  func.func @bilstm_rec_kernel(%arg0: i32, %arg1: i32, %arg2: memref<1x4x2x512xf32, #tpu.memory_space<vmem>>, %arg3: memref<1x128x512xbf16, #tpu.memory_space<vmem>>, %arg4: memref<4x2x128xbf16, #tpu.memory_space<vmem>>, %arg5: memref<2x128xf32, #tpu.memory_space<vmem>>, %arg6: memref<2x128xf32, #tpu.memory_space<vmem>>, %arg7: memref<2x128xf32, #tpu.memory_space<vmem>>, %arg8: memref<2x128xf32, #tpu.memory_space<vmem>>) attributes {dimension_semantics = [#tpu.dimension_semantics<parallel>, #tpu.dimension_semantics<arbitrary>], iteration_bounds = array<i64: 2, 2>, scalar_prefetch = 0 : i64, scratch_operands = 2 : i64, tpu.core_type = #tpu.core_type<tc>, window_params = [{transform_indices = @transform_0, window_bounds = array<i64: 1, 4, 2, 512>}, {transform_indices = @transform_1, window_bounds = array<i64: 1, 128, 512>}, {transform_indices = @transform_2, window_bounds = array<i64: 4, 2, 128>}, {transform_indices = @transform_3, window_bounds = array<i64: 2, 128>}, {transform_indices = @transform_4, window_bounds = array<i64: 2, 128>}]} {
    %c0_i32 = arith.constant 0 : i32
    %0 = arith.cmpi eq, %arg1, %c0_i32 : i32
    %1 = arith.extui %0 : i1 to i32
    %c0_i32_0 = arith.constant 0 : i32
    %2 = arith.cmpi ne, %1, %c0_i32_0 : i32
    scf.if %2 {
      %cst = arith.constant 0.000000e+00 : f32
      %12 = vector.broadcast %cst : f32 to vector<2x128xf32>
      %c0 = arith.constant 0 : index
      %c0_6 = arith.constant 0 : index
      %13 = vector.load %arg7[%c0, %c0_6] : memref<2x128xf32, #tpu.memory_space<vmem>>, vector<2x128xf32>
      tpu.vector_store %arg7[%c0, %c0_6], %12 {strides = array<i32>} : memref<2x128xf32, #tpu.memory_space<vmem>>, vector<2x128xf32>,
      %cst_7 = arith.constant 0.000000e+00 : f32
      %14 = vector.broadcast %cst_7 : f32 to vector<2x128xf32>
      %c0_8 = arith.constant 0 : index
      %c0_9 = arith.constant 0 : index
      %15 = vector.load %arg8[%c0_8, %c0_9] : memref<2x128xf32, #tpu.memory_space<vmem>>, vector<2x128xf32>
      tpu.vector_store %arg8[%c0_8, %c0_9], %14 {strides = array<i32>} : memref<2x128xf32, #tpu.memory_space<vmem>>, vector<2x128xf32>,
    } else {
    }
    %c0_i32_1 = arith.constant 0 : i32
    %3 = arith.cmpi eq, %arg0, %c0_i32_1 : i32
    %4 = arith.extui %3 : i1 to i32
    %c0_i32_2 = arith.constant 0 : i32
    %5 = arith.cmpi ne, %4, %c0_i32_2 : i32
    scf.if %5 {
      %c0 = arith.constant 0 : index
      %c0_6 = arith.constant 0 : index
      %c0_7 = arith.constant 0 : index
      %c0_8 = arith.constant 0 : index
      %12 = vector.load %arg2[%c0, %c0_6, %c0_7, %c0_8] : memref<1x4x2x512xf32, #tpu.memory_space<vmem>>, vector<1x1x2x512xf32>
      %13 = vector.shape_cast %12 : vector<1x1x2x512xf32> to vector<2x512xf32>
      %c0_9 = arith.constant 0 : index
      %c0_10 = arith.constant 0 : index
      %14 = vector.load %arg7[%c0_9, %c0_10] : memref<2x128xf32, #tpu.memory_space<vmem>>, vector<2x128xf32>
      %15 = arith.truncf %14 : vector<2x128xf32> to vector<2x128xbf16>
      %c0_11 = arith.constant 0 : index
      %c0_12 = arith.constant 0 : index
      %c0_13 = arith.constant 0 : index
      %16 = vector.load %arg3[%c0_11, %c0_12, %c0_13] : memref<1x128x512xbf16, #tpu.memory_space<vmem>>, vector<1x128x512xbf16>
      %17 = vector.shape_cast %16 : vector<1x128x512xbf16> to vector<128x512xbf16>
      %cst = arith.constant dense<0.000000e+00> : vector<2x512xf32>
      %18 = tpu.matmul %15, %17, %cst {dimension_numbers = #tpu.dot_dimension_numbers<[1], [0], [0], [1], [0, 0, 1, 1], [], []>} : vector<2x128xbf16>, vector<128x512xbf16>, vector<2x512xf32> -> vector<2x512xf32>
      %19 = arith.addf %13, %18 : vector<2x512xf32>
      %20 = vector.extract_strided_slice %19 {offsets = [0, 0], sizes = [2, 128], strides = [1, 1]} : vector<2x512xf32> to vector<2x128xf32>
      %21 = arith.negf %20 : vector<2x128xf32>
      %22 = math.exp %21 : vector<2x128xf32>
      %cst_14 = arith.constant 1.000000e+00 : f32
      %23 = vector.broadcast %cst_14 : f32 to vector<2x128xf32>
      %24 = arith.addf %23, %22 : vector<2x128xf32>
      %25 = arith.divf %23, %24 : vector<2x128xf32>
      %26 = vector.extract_strided_slice %19 {offsets = [0, 128], sizes = [2, 128], strides = [1, 1]} : vector<2x512xf32> to vector<2x128xf32>
      %27 = arith.negf %26 : vector<2x128xf32>
      %28 = math.exp %27 : vector<2x128xf32>
      %cst_15 = arith.constant 1.000000e+00 : f32
      %29 = vector.broadcast %cst_15 : f32 to vector<2x128xf32>
      %30 = arith.addf %29, %28 : vector<2x128xf32>
      %31 = arith.divf %29, %30 : vector<2x128xf32>
      %32 = vector.extract_strided_slice %19 {offsets = [0, 256], sizes = [2, 128], strides = [1, 1]} : vector<2x512xf32> to vector<2x128xf32>
      %33 = math.tanh %32 : vector<2x128xf32>
      %34 = vector.extract_strided_slice %19 {offsets = [0, 384], sizes = [2, 128], strides = [1, 1]} : vector<2x512xf32> to vector<2x128xf32>
      %35 = arith.negf %34 : vector<2x128xf32>
      %36 = math.exp %35 : vector<2x128xf32>
      %cst_16 = arith.constant 1.000000e+00 : f32
      %37 = vector.broadcast %cst_16 : f32 to vector<2x128xf32>
      %38 = arith.addf %37, %36 : vector<2x128xf32>
      %39 = arith.divf %37, %38 : vector<2x128xf32>
      %c0_17 = arith.constant 0 : index
      %c0_18 = arith.constant 0 : index
      %40 = vector.load %arg8[%c0_17, %c0_18] : memref<2x128xf32, #tpu.memory_space<vmem>>, vector<2x128xf32>
      %41 = arith.mulf %31, %40 : vector<2x128xf32>
      %42 = arith.mulf %25, %33 : vector<2x128xf32>
      %43 = arith.addf %41, %42 : vector<2x128xf32>
      %44 = math.tanh %43 : vector<2x128xf32>
      %45 = arith.mulf %39, %44 : vector<2x128xf32>
      %c0_19 = arith.constant 0 : index
      %c0_20 = arith.constant 0 : index
      %46 = vector.load %arg8[%c0_19, %c0_20] : memref<2x128xf32, #tpu.memory_space<vmem>>, vector<2x128xf32>
      tpu.vector_store %arg8[%c0_19, %c0_20], %43 {strides = array<i32>} : memref<2x128xf32, #tpu.memory_space<vmem>>, vector<2x128xf32>,
      %c0_21 = arith.constant 0 : index
      %c0_22 = arith.constant 0 : index
      %47 = vector.load %arg7[%c0_21, %c0_22] : memref<2x128xf32, #tpu.memory_space<vmem>>, vector<2x128xf32>
      tpu.vector_store %arg7[%c0_21, %c0_22], %45 {strides = array<i32>} : memref<2x128xf32, #tpu.memory_space<vmem>>, vector<2x128xf32>,
      %48 = arith.truncf %45 : vector<2x128xf32> to vector<2x128xbf16>
      %c0_23 = arith.constant 0 : index
      %c0_24 = arith.constant 0 : index
      %c0_25 = arith.constant 0 : index
      %49 = vector.load %arg4[%c0_23, %c0_24, %c0_25] : memref<4x2x128xbf16, #tpu.memory_space<vmem>>, vector<1x2x128xbf16>
      %50 = vector.shape_cast %49 : vector<1x2x128xbf16> to vector<2x128xbf16>
      %51 = vector.shape_cast %48 : vector<2x128xbf16> to vector<1x2x128xbf16>
      tpu.vector_store %arg4[%c0_23, %c0_24, %c0_25], %51 {strides = array<i32>} : memref<4x2x128xbf16, #tpu.memory_space<vmem>>, vector<1x2x128xbf16>,
      %c0_26 = arith.constant 0 : index
      %c1 = arith.constant 1 : index
      %c0_27 = arith.constant 0 : index
      %c0_28 = arith.constant 0 : index
      %52 = vector.load %arg2[%c0_26, %c1, %c0_27, %c0_28] : memref<1x4x2x512xf32, #tpu.memory_space<vmem>>, vector<1x1x2x512xf32>
      %53 = vector.shape_cast %52 : vector<1x1x2x512xf32> to vector<2x512xf32>
      %c0_29 = arith.constant 0 : index
      %c0_30 = arith.constant 0 : index
      %54 = vector.load %arg7[%c0_29, %c0_30] : memref<2x128xf32, #tpu.memory_space<vmem>>, vector<2x128xf32>
      %55 = arith.truncf %54 : vector<2x128xf32> to vector<2x128xbf16>
      %c0_31 = arith.constant 0 : index
      %c0_32 = arith.constant 0 : index
      %c0_33 = arith.constant 0 : index
      %56 = vector.load %arg3[%c0_31, %c0_32, %c0_33] : memref<1x128x512xbf16, #tpu.memory_space<vmem>>, vector<1x128x512xbf16>
      %57 = vector.shape_cast %56 : vector<1x128x512xbf16> to vector<128x512xbf16>
      %cst_34 = arith.constant dense<0.000000e+00> : vector<2x512xf32>
      %58 = tpu.matmul %55, %57, %cst_34 {dimension_numbers = #tpu.dot_dimension_numbers<[1], [0], [0], [1], [0, 0, 1, 1], [], []>} : vector<2x128xbf16>, vector<128x512xbf16>, vector<2x512xf32> -> vector<2x512xf32>
      %59 = arith.addf %53, %58 : vector<2x512xf32>
      %60 = vector.extract_strided_slice %59 {offsets = [0, 0], sizes = [2, 128], strides = [1, 1]} : vector<2x512xf32> to vector<2x128xf32>
      %61 = arith.negf %60 : vector<2x128xf32>
      %62 = math.exp %61 : vector<2x128xf32>
      %cst_35 = arith.constant 1.000000e+00 : f32
      %63 = vector.broadcast %cst_35 : f32 to vector<2x128xf32>
      %64 = arith.addf %63, %62 : vector<2x128xf32>
      %65 = arith.divf %63, %64 : vector<2x128xf32>
      %66 = vector.extract_strided_slice %59 {offsets = [0, 128], sizes = [2, 128], strides = [1, 1]} : vector<2x512xf32> to vector<2x128xf32>
      %67 = arith.negf %66 : vector<2x128xf32>
      %68 = math.exp %67 : vector<2x128xf32>
      %cst_36 = arith.constant 1.000000e+00 : f32
      %69 = vector.broadcast %cst_36 : f32 to vector<2x128xf32>
      %70 = arith.addf %69, %68 : vector<2x128xf32>
      %71 = arith.divf %69, %70 : vector<2x128xf32>
      %72 = vector.extract_strided_slice %59 {offsets = [0, 256], sizes = [2, 128], strides = [1, 1]} : vector<2x512xf32> to vector<2x128xf32>
      %73 = math.tanh %72 : vector<2x128xf32>
      %74 = vector.extract_strided_slice %59 {offsets = [0, 384], sizes = [2, 128], strides = [1, 1]} : vector<2x512xf32> to vector<2x128xf32>
      %75 = arith.negf %74 : vector<2x128xf32>
      %76 = math.exp %75 : vector<2x128xf32>
      %cst_37 = arith.constant 1.000000e+00 : f32
      %77 = vector.broadcast %cst_37 : f32 to vector<2x128xf32>
      %78 = arith.addf %77, %76 : vector<2x128xf32>
      %79 = arith.divf %77, %78 : vector<2x128xf32>
      %c0_38 = arith.constant 0 : index
      %c0_39 = arith.constant 0 : index
      %80 = vector.load %arg8[%c0_38, %c0_39] : memref<2x128xf32, #tpu.memory_space<vmem>>, vector<2x128xf32>
      %81 = arith.mulf %71, %80 : vector<2x128xf32>
      %82 = arith.mulf %65, %73 : vector<2x128xf32>
      %83 = arith.addf %81, %82 : vector<2x128xf32>
      %84 = math.tanh %83 : vector<2x128xf32>
      %85 = arith.mulf %79, %84 : vector<2x128xf32>
      %c0_40 = arith.constant 0 : index
      %c0_41 = arith.constant 0 : index
      %86 = vector.load %arg8[%c0_40, %c0_41] : memref<2x128xf32, #tpu.memory_space<vmem>>, vector<2x128xf32>
      tpu.vector_store %arg8[%c0_40, %c0_41], %83 {strides = array<i32>} : memref<2x128xf32, #tpu.memory_space<vmem>>, vector<2x128xf32>,
      %c0_42 = arith.constant 0 : index
      %c0_43 = arith.constant 0 : index
      %87 = vector.load %arg7[%c0_42, %c0_43] : memref<2x128xf32, #tpu.memory_space<vmem>>, vector<2x128xf32>
      tpu.vector_store %arg7[%c0_42, %c0_43], %85 {strides = array<i32>} : memref<2x128xf32, #tpu.memory_space<vmem>>, vector<2x128xf32>,
      %88 = arith.truncf %85 : vector<2x128xf32> to vector<2x128xbf16>
      %c1_44 = arith.constant 1 : index
      %c0_45 = arith.constant 0 : index
      %c0_46 = arith.constant 0 : index
      %89 = vector.load %arg4[%c1_44, %c0_45, %c0_46] : memref<4x2x128xbf16, #tpu.memory_space<vmem>>, vector<1x2x128xbf16>
      %90 = vector.shape_cast %89 : vector<1x2x128xbf16> to vector<2x128xbf16>
      %91 = vector.shape_cast %88 : vector<2x128xbf16> to vector<1x2x128xbf16>
      tpu.vector_store %arg4[%c1_44, %c0_45, %c0_46], %91 {strides = array<i32>} : memref<4x2x128xbf16, #tpu.memory_space<vmem>>, vector<1x2x128xbf16>,
      %c0_47 = arith.constant 0 : index
      %c2 = arith.constant 2 : index
      %c0_48 = arith.constant 0 : index
      %c0_49 = arith.constant 0 : index
      %92 = vector.load %arg2[%c0_47, %c2, %c0_48, %c0_49] : memref<1x4x2x512xf32, #tpu.memory_space<vmem>>, vector<1x1x2x512xf32>
      %93 = vector.shape_cast %92 : vector<1x1x2x512xf32> to vector<2x512xf32>
      %c0_50 = arith.constant 0 : index
      %c0_51 = arith.constant 0 : index
      %94 = vector.load %arg7[%c0_50, %c0_51] : memref<2x128xf32, #tpu.memory_space<vmem>>, vector<2x128xf32>
      %95 = arith.truncf %94 : vector<2x128xf32> to vector<2x128xbf16>
      %c0_52 = arith.constant 0 : index
      %c0_53 = arith.constant 0 : index
      %c0_54 = arith.constant 0 : index
      %96 = vector.load %arg3[%c0_52, %c0_53, %c0_54] : memref<1x128x512xbf16, #tpu.memory_space<vmem>>, vector<1x128x512xbf16>
      %97 = vector.shape_cast %96 : vector<1x128x512xbf16> to vector<128x512xbf16>
      %cst_55 = arith.constant dense<0.000000e+00> : vector<2x512xf32>
      %98 = tpu.matmul %95, %97, %cst_55 {dimension_numbers = #tpu.dot_dimension_numbers<[1], [0], [0], [1], [0, 0, 1, 1], [], []>} : vector<2x128xbf16>, vector<128x512xbf16>, vector<2x512xf32> -> vector<2x512xf32>
      %99 = arith.addf %93, %98 : vector<2x512xf32>
      %100 = vector.extract_strided_slice %99 {offsets = [0, 0], sizes = [2, 128], strides = [1, 1]} : vector<2x512xf32> to vector<2x128xf32>
      %101 = arith.negf %100 : vector<2x128xf32>
      %102 = math.exp %101 : vector<2x128xf32>
      %cst_56 = arith.constant 1.000000e+00 : f32
      %103 = vector.broadcast %cst_56 : f32 to vector<2x128xf32>
      %104 = arith.addf %103, %102 : vector<2x128xf32>
      %105 = arith.divf %103, %104 : vector<2x128xf32>
      %106 = vector.extract_strided_slice %99 {offsets = [0, 128], sizes = [2, 128], strides = [1, 1]} : vector<2x512xf32> to vector<2x128xf32>
      %107 = arith.negf %106 : vector<2x128xf32>
      %108 = math.exp %107 : vector<2x128xf32>
      %cst_57 = arith.constant 1.000000e+00 : f32
      %109 = vector.broadcast %cst_57 : f32 to vector<2x128xf32>
      %110 = arith.addf %109, %108 : vector<2x128xf32>
      %111 = arith.divf %109, %110 : vector<2x128xf32>
      %112 = vector.extract_strided_slice %99 {offsets = [0, 256], sizes = [2, 128], strides = [1, 1]} : vector<2x512xf32> to vector<2x128xf32>
      %113 = math.tanh %112 : vector<2x128xf32>
      %114 = vector.extract_strided_slice %99 {offsets = [0, 384], sizes = [2, 128], strides = [1, 1]} : vector<2x512xf32> to vector<2x128xf32>
      %115 = arith.negf %114 : vector<2x128xf32>
      %116 = math.exp %115 : vector<2x128xf32>
      %cst_58 = arith.constant 1.000000e+00 : f32
      %117 = vector.broadcast %cst_58 : f32 to vector<2x128xf32>
      %118 = arith.addf %117, %116 : vector<2x128xf32>
      %119 = arith.divf %117, %118 : vector<2x128xf32>
      %c0_59 = arith.constant 0 : index
      %c0_60 = arith.constant 0 : index
      %120 = vector.load %arg8[%c0_59, %c0_60] : memref<2x128xf32, #tpu.memory_space<vmem>>, vector<2x128xf32>
      %121 = arith.mulf %111, %120 : vector<2x128xf32>
      %122 = arith.mulf %105, %113 : vector<2x128xf32>
      %123 = arith.addf %121, %122 : vector<2x128xf32>
      %124 = math.tanh %123 : vector<2x128xf32>
      %125 = arith.mulf %119, %124 : vector<2x128xf32>
      %c0_61 = arith.constant 0 : index
      %c0_62 = arith.constant 0 : index
      %126 = vector.load %arg8[%c0_61, %c0_62] : memref<2x128xf32, #tpu.memory_space<vmem>>, vector<2x128xf32>
      tpu.vector_store %arg8[%c0_61, %c0_62], %123 {strides = array<i32>} : memref<2x128xf32, #tpu.memory_space<vmem>>, vector<2x128xf32>,
      %c0_63 = arith.constant 0 : index
      %c0_64 = arith.constant 0 : index
      %127 = vector.load %arg7[%c0_63, %c0_64] : memref<2x128xf32, #tpu.memory_space<vmem>>, vector<2x128xf32>
      tpu.vector_store %arg7[%c0_63, %c0_64], %125 {strides = array<i32>} : memref<2x128xf32, #tpu.memory_space<vmem>>, vector<2x128xf32>,
      %128 = arith.truncf %125 : vector<2x128xf32> to vector<2x128xbf16>
      %c2_65 = arith.constant 2 : index
      %c0_66 = arith.constant 0 : index
      %c0_67 = arith.constant 0 : index
      %129 = vector.load %arg4[%c2_65, %c0_66, %c0_67] : memref<4x2x128xbf16, #tpu.memory_space<vmem>>, vector<1x2x128xbf16>
      %130 = vector.shape_cast %129 : vector<1x2x128xbf16> to vector<2x128xbf16>
      %131 = vector.shape_cast %128 : vector<2x128xbf16> to vector<1x2x128xbf16>
      tpu.vector_store %arg4[%c2_65, %c0_66, %c0_67], %131 {strides = array<i32>} : memref<4x2x128xbf16, #tpu.memory_space<vmem>>, vector<1x2x128xbf16>,
      %c0_68 = arith.constant 0 : index
      %c3 = arith.constant 3 : index
      %c0_69 = arith.constant 0 : index
      %c0_70 = arith.constant 0 : index
      %132 = vector.load %arg2[%c0_68, %c3, %c0_69, %c0_70] : memref<1x4x2x512xf32, #tpu.memory_space<vmem>>, vector<1x1x2x512xf32>
      %133 = vector.shape_cast %132 : vector<1x1x2x512xf32> to vector<2x512xf32>
      %c0_71 = arith.constant 0 : index
      %c0_72 = arith.constant 0 : index
      %134 = vector.load %arg7[%c0_71, %c0_72] : memref<2x128xf32, #tpu.memory_space<vmem>>, vector<2x128xf32>
      %135 = arith.truncf %134 : vector<2x128xf32> to vector<2x128xbf16>
      %c0_73 = arith.constant 0 : index
      %c0_74 = arith.constant 0 : index
      %c0_75 = arith.constant 0 : index
      %136 = vector.load %arg3[%c0_73, %c0_74, %c0_75] : memref<1x128x512xbf16, #tpu.memory_space<vmem>>, vector<1x128x512xbf16>
      %137 = vector.shape_cast %136 : vector<1x128x512xbf16> to vector<128x512xbf16>
      %cst_76 = arith.constant dense<0.000000e+00> : vector<2x512xf32>
      %138 = tpu.matmul %135, %137, %cst_76 {dimension_numbers = #tpu.dot_dimension_numbers<[1], [0], [0], [1], [0, 0, 1, 1], [], []>} : vector<2x128xbf16>, vector<128x512xbf16>, vector<2x512xf32> -> vector<2x512xf32>
      %139 = arith.addf %133, %138 : vector<2x512xf32>
      %140 = vector.extract_strided_slice %139 {offsets = [0, 0], sizes = [2, 128], strides = [1, 1]} : vector<2x512xf32> to vector<2x128xf32>
      %141 = arith.negf %140 : vector<2x128xf32>
      %142 = math.exp %141 : vector<2x128xf32>
      %cst_77 = arith.constant 1.000000e+00 : f32
      %143 = vector.broadcast %cst_77 : f32 to vector<2x128xf32>
      %144 = arith.addf %143, %142 : vector<2x128xf32>
      %145 = arith.divf %143, %144 : vector<2x128xf32>
      %146 = vector.extract_strided_slice %139 {offsets = [0, 128], sizes = [2, 128], strides = [1, 1]} : vector<2x512xf32> to vector<2x128xf32>
      %147 = arith.negf %146 : vector<2x128xf32>
      %148 = math.exp %147 : vector<2x128xf32>
      %cst_78 = arith.constant 1.000000e+00 : f32
      %149 = vector.broadcast %cst_78 : f32 to vector<2x128xf32>
      %150 = arith.addf %149, %148 : vector<2x128xf32>
      %151 = arith.divf %149, %150 : vector<2x128xf32>
      %152 = vector.extract_strided_slice %139 {offsets = [0, 256], sizes = [2, 128], strides = [1, 1]} : vector<2x512xf32> to vector<2x128xf32>
      %153 = math.tanh %152 : vector<2x128xf32>
      %154 = vector.extract_strided_slice %139 {offsets = [0, 384], sizes = [2, 128], strides = [1, 1]} : vector<2x512xf32> to vector<2x128xf32>
      %155 = arith.negf %154 : vector<2x128xf32>
      %156 = math.exp %155 : vector<2x128xf32>
      %cst_79 = arith.constant 1.000000e+00 : f32
      %157 = vector.broadcast %cst_79 : f32 to vector<2x128xf32>
      %158 = arith.addf %157, %156 : vector<2x128xf32>
      %159 = arith.divf %157, %158 : vector<2x128xf32>
      %c0_80 = arith.constant 0 : index
      %c0_81 = arith.constant 0 : index
      %160 = vector.load %arg8[%c0_80, %c0_81] : memref<2x128xf32, #tpu.memory_space<vmem>>, vector<2x128xf32>
      %161 = arith.mulf %151, %160 : vector<2x128xf32>
      %162 = arith.mulf %145, %153 : vector<2x128xf32>
      %163 = arith.addf %161, %162 : vector<2x128xf32>
      %164 = math.tanh %163 : vector<2x128xf32>
      %165 = arith.mulf %159, %164 : vector<2x128xf32>
      %c0_82 = arith.constant 0 : index
      %c0_83 = arith.constant 0 : index
      %166 = vector.load %arg8[%c0_82, %c0_83] : memref<2x128xf32, #tpu.memory_space<vmem>>, vector<2x128xf32>
      tpu.vector_store %arg8[%c0_82, %c0_83], %163 {strides = array<i32>} : memref<2x128xf32, #tpu.memory_space<vmem>>, vector<2x128xf32>,
      %c0_84 = arith.constant 0 : index
      %c0_85 = arith.constant 0 : index
      %167 = vector.load %arg7[%c0_84, %c0_85] : memref<2x128xf32, #tpu.memory_space<vmem>>, vector<2x128xf32>
      tpu.vector_store %arg7[%c0_84, %c0_85], %165 {strides = array<i32>} : memref<2x128xf32, #tpu.memory_space<vmem>>, vector<2x128xf32>,
      %168 = arith.truncf %165 : vector<2x128xf32> to vector<2x128xbf16>
      %c3_86 = arith.constant 3 : index
      %c0_87 = arith.constant 0 : index
      %c0_88 = arith.constant 0 : index
      %169 = vector.load %arg4[%c3_86, %c0_87, %c0_88] : memref<4x2x128xbf16, #tpu.memory_space<vmem>>, vector<1x2x128xbf16>
      %170 = vector.shape_cast %169 : vector<1x2x128xbf16> to vector<2x128xbf16>
      %171 = vector.shape_cast %168 : vector<2x128xbf16> to vector<1x2x128xbf16>
      tpu.vector_store %arg4[%c3_86, %c0_87, %c0_88], %171 {strides = array<i32>} : memref<4x2x128xbf16, #tpu.memory_space<vmem>>, vector<1x2x128xbf16>,
    } else {
    }
    %c1_i32 = arith.constant 1 : i32
    %6 = arith.cmpi eq, %arg0, %c1_i32 : i32
    %7 = arith.extui %6 : i1 to i32
    %c0_i32_3 = arith.constant 0 : i32
    %8 = arith.cmpi ne, %7, %c0_i32_3 : i32
    scf.if %8 {
      %c0 = arith.constant 0 : index
      %c3 = arith.constant 3 : index
      %c0_6 = arith.constant 0 : index
      %c0_7 = arith.constant 0 : index
      %12 = vector.load %arg2[%c0, %c3, %c0_6, %c0_7] : memref<1x4x2x512xf32, #tpu.memory_space<vmem>>, vector<1x1x2x512xf32>
      %13 = vector.shape_cast %12 : vector<1x1x2x512xf32> to vector<2x512xf32>
      %c0_8 = arith.constant 0 : index
      %c0_9 = arith.constant 0 : index
      %14 = vector.load %arg7[%c0_8, %c0_9] : memref<2x128xf32, #tpu.memory_space<vmem>>, vector<2x128xf32>
      %15 = arith.truncf %14 : vector<2x128xf32> to vector<2x128xbf16>
      %c0_10 = arith.constant 0 : index
      %c0_11 = arith.constant 0 : index
      %c0_12 = arith.constant 0 : index
      %16 = vector.load %arg3[%c0_10, %c0_11, %c0_12] : memref<1x128x512xbf16, #tpu.memory_space<vmem>>, vector<1x128x512xbf16>
      %17 = vector.shape_cast %16 : vector<1x128x512xbf16> to vector<128x512xbf16>
      %cst = arith.constant dense<0.000000e+00> : vector<2x512xf32>
      %18 = tpu.matmul %15, %17, %cst {dimension_numbers = #tpu.dot_dimension_numbers<[1], [0], [0], [1], [0, 0, 1, 1], [], []>} : vector<2x128xbf16>, vector<128x512xbf16>, vector<2x512xf32> -> vector<2x512xf32>
      %19 = arith.addf %13, %18 : vector<2x512xf32>
      %20 = vector.extract_strided_slice %19 {offsets = [0, 0], sizes = [2, 128], strides = [1, 1]} : vector<2x512xf32> to vector<2x128xf32>
      %21 = arith.negf %20 : vector<2x128xf32>
      %22 = math.exp %21 : vector<2x128xf32>
      %cst_13 = arith.constant 1.000000e+00 : f32
      %23 = vector.broadcast %cst_13 : f32 to vector<2x128xf32>
      %24 = arith.addf %23, %22 : vector<2x128xf32>
      %25 = arith.divf %23, %24 : vector<2x128xf32>
      %26 = vector.extract_strided_slice %19 {offsets = [0, 128], sizes = [2, 128], strides = [1, 1]} : vector<2x512xf32> to vector<2x128xf32>
      %27 = arith.negf %26 : vector<2x128xf32>
      %28 = math.exp %27 : vector<2x128xf32>
      %cst_14 = arith.constant 1.000000e+00 : f32
      %29 = vector.broadcast %cst_14 : f32 to vector<2x128xf32>
      %30 = arith.addf %29, %28 : vector<2x128xf32>
      %31 = arith.divf %29, %30 : vector<2x128xf32>
      %32 = vector.extract_strided_slice %19 {offsets = [0, 256], sizes = [2, 128], strides = [1, 1]} : vector<2x512xf32> to vector<2x128xf32>
      %33 = math.tanh %32 : vector<2x128xf32>
      %34 = vector.extract_strided_slice %19 {offsets = [0, 384], sizes = [2, 128], strides = [1, 1]} : vector<2x512xf32> to vector<2x128xf32>
      %35 = arith.negf %34 : vector<2x128xf32>
      %36 = math.exp %35 : vector<2x128xf32>
      %cst_15 = arith.constant 1.000000e+00 : f32
      %37 = vector.broadcast %cst_15 : f32 to vector<2x128xf32>
      %38 = arith.addf %37, %36 : vector<2x128xf32>
      %39 = arith.divf %37, %38 : vector<2x128xf32>
      %c0_16 = arith.constant 0 : index
      %c0_17 = arith.constant 0 : index
      %40 = vector.load %arg8[%c0_16, %c0_17] : memref<2x128xf32, #tpu.memory_space<vmem>>, vector<2x128xf32>
      %41 = arith.mulf %31, %40 : vector<2x128xf32>
      %42 = arith.mulf %25, %33 : vector<2x128xf32>
      %43 = arith.addf %41, %42 : vector<2x128xf32>
      %44 = math.tanh %43 : vector<2x128xf32>
      %45 = arith.mulf %39, %44 : vector<2x128xf32>
      %c0_18 = arith.constant 0 : index
      %c0_19 = arith.constant 0 : index
      %46 = vector.load %arg8[%c0_18, %c0_19] : memref<2x128xf32, #tpu.memory_space<vmem>>, vector<2x128xf32>
      tpu.vector_store %arg8[%c0_18, %c0_19], %43 {strides = array<i32>} : memref<2x128xf32, #tpu.memory_space<vmem>>, vector<2x128xf32>,
      %c0_20 = arith.constant 0 : index
      %c0_21 = arith.constant 0 : index
      %47 = vector.load %arg7[%c0_20, %c0_21] : memref<2x128xf32, #tpu.memory_space<vmem>>, vector<2x128xf32>
      tpu.vector_store %arg7[%c0_20, %c0_21], %45 {strides = array<i32>} : memref<2x128xf32, #tpu.memory_space<vmem>>, vector<2x128xf32>,
      %48 = arith.truncf %45 : vector<2x128xf32> to vector<2x128xbf16>
      %c3_22 = arith.constant 3 : index
      %c0_23 = arith.constant 0 : index
      %c0_24 = arith.constant 0 : index
      %49 = vector.load %arg4[%c3_22, %c0_23, %c0_24] : memref<4x2x128xbf16, #tpu.memory_space<vmem>>, vector<1x2x128xbf16>
      %50 = vector.shape_cast %49 : vector<1x2x128xbf16> to vector<2x128xbf16>
      %51 = vector.shape_cast %48 : vector<2x128xbf16> to vector<1x2x128xbf16>
      tpu.vector_store %arg4[%c3_22, %c0_23, %c0_24], %51 {strides = array<i32>} : memref<4x2x128xbf16, #tpu.memory_space<vmem>>, vector<1x2x128xbf16>,
      %c0_25 = arith.constant 0 : index
      %c2 = arith.constant 2 : index
      %c0_26 = arith.constant 0 : index
      %c0_27 = arith.constant 0 : index
      %52 = vector.load %arg2[%c0_25, %c2, %c0_26, %c0_27] : memref<1x4x2x512xf32, #tpu.memory_space<vmem>>, vector<1x1x2x512xf32>
      %53 = vector.shape_cast %52 : vector<1x1x2x512xf32> to vector<2x512xf32>
      %c0_28 = arith.constant 0 : index
      %c0_29 = arith.constant 0 : index
      %54 = vector.load %arg7[%c0_28, %c0_29] : memref<2x128xf32, #tpu.memory_space<vmem>>, vector<2x128xf32>
      %55 = arith.truncf %54 : vector<2x128xf32> to vector<2x128xbf16>
      %c0_30 = arith.constant 0 : index
      %c0_31 = arith.constant 0 : index
      %c0_32 = arith.constant 0 : index
      %56 = vector.load %arg3[%c0_30, %c0_31, %c0_32] : memref<1x128x512xbf16, #tpu.memory_space<vmem>>, vector<1x128x512xbf16>
      %57 = vector.shape_cast %56 : vector<1x128x512xbf16> to vector<128x512xbf16>
      %cst_33 = arith.constant dense<0.000000e+00> : vector<2x512xf32>
      %58 = tpu.matmul %55, %57, %cst_33 {dimension_numbers = #tpu.dot_dimension_numbers<[1], [0], [0], [1], [0, 0, 1, 1], [], []>} : vector<2x128xbf16>, vector<128x512xbf16>, vector<2x512xf32> -> vector<2x512xf32>
      %59 = arith.addf %53, %58 : vector<2x512xf32>
      %60 = vector.extract_strided_slice %59 {offsets = [0, 0], sizes = [2, 128], strides = [1, 1]} : vector<2x512xf32> to vector<2x128xf32>
      %61 = arith.negf %60 : vector<2x128xf32>
      %62 = math.exp %61 : vector<2x128xf32>
      %cst_34 = arith.constant 1.000000e+00 : f32
      %63 = vector.broadcast %cst_34 : f32 to vector<2x128xf32>
      %64 = arith.addf %63, %62 : vector<2x128xf32>
      %65 = arith.divf %63, %64 : vector<2x128xf32>
      %66 = vector.extract_strided_slice %59 {offsets = [0, 128], sizes = [2, 128], strides = [1, 1]} : vector<2x512xf32> to vector<2x128xf32>
      %67 = arith.negf %66 : vector<2x128xf32>
      %68 = math.exp %67 : vector<2x128xf32>
      %cst_35 = arith.constant 1.000000e+00 : f32
      %69 = vector.broadcast %cst_35 : f32 to vector<2x128xf32>
      %70 = arith.addf %69, %68 : vector<2x128xf32>
      %71 = arith.divf %69, %70 : vector<2x128xf32>
      %72 = vector.extract_strided_slice %59 {offsets = [0, 256], sizes = [2, 128], strides = [1, 1]} : vector<2x512xf32> to vector<2x128xf32>
      %73 = math.tanh %72 : vector<2x128xf32>
      %74 = vector.extract_strided_slice %59 {offsets = [0, 384], sizes = [2, 128], strides = [1, 1]} : vector<2x512xf32> to vector<2x128xf32>
      %75 = arith.negf %74 : vector<2x128xf32>
      %76 = math.exp %75 : vector<2x128xf32>
      %cst_36 = arith.constant 1.000000e+00 : f32
      %77 = vector.broadcast %cst_36 : f32 to vector<2x128xf32>
      %78 = arith.addf %77, %76 : vector<2x128xf32>
      %79 = arith.divf %77, %78 : vector<2x128xf32>
      %c0_37 = arith.constant 0 : index
      %c0_38 = arith.constant 0 : index
      %80 = vector.load %arg8[%c0_37, %c0_38] : memref<2x128xf32, #tpu.memory_space<vmem>>, vector<2x128xf32>
      %81 = arith.mulf %71, %80 : vector<2x128xf32>
      %82 = arith.mulf %65, %73 : vector<2x128xf32>
      %83 = arith.addf %81, %82 : vector<2x128xf32>
      %84 = math.tanh %83 : vector<2x128xf32>
      %85 = arith.mulf %79, %84 : vector<2x128xf32>
      %c0_39 = arith.constant 0 : index
      %c0_40 = arith.constant 0 : index
      %86 = vector.load %arg8[%c0_39, %c0_40] : memref<2x128xf32, #tpu.memory_space<vmem>>, vector<2x128xf32>
      tpu.vector_store %arg8[%c0_39, %c0_40], %83 {strides = array<i32>} : memref<2x128xf32, #tpu.memory_space<vmem>>, vector<2x128xf32>,
      %c0_41 = arith.constant 0 : index
      %c0_42 = arith.constant 0 : index
      %87 = vector.load %arg7[%c0_41, %c0_42] : memref<2x128xf32, #tpu.memory_space<vmem>>, vector<2x128xf32>
      tpu.vector_store %arg7[%c0_41, %c0_42], %85 {strides = array<i32>} : memref<2x128xf32, #tpu.memory_space<vmem>>, vector<2x128xf32>,
      %88 = arith.truncf %85 : vector<2x128xf32> to vector<2x128xbf16>
      %c2_43 = arith.constant 2 : index
      %c0_44 = arith.constant 0 : index
      %c0_45 = arith.constant 0 : index
      %89 = vector.load %arg4[%c2_43, %c0_44, %c0_45] : memref<4x2x128xbf16, #tpu.memory_space<vmem>>, vector<1x2x128xbf16>
      %90 = vector.shape_cast %89 : vector<1x2x128xbf16> to vector<2x128xbf16>
      %91 = vector.shape_cast %88 : vector<2x128xbf16> to vector<1x2x128xbf16>
      tpu.vector_store %arg4[%c2_43, %c0_44, %c0_45], %91 {strides = array<i32>} : memref<4x2x128xbf16, #tpu.memory_space<vmem>>, vector<1x2x128xbf16>,
      %c0_46 = arith.constant 0 : index
      %c1 = arith.constant 1 : index
      %c0_47 = arith.constant 0 : index
      %c0_48 = arith.constant 0 : index
      %92 = vector.load %arg2[%c0_46, %c1, %c0_47, %c0_48] : memref<1x4x2x512xf32, #tpu.memory_space<vmem>>, vector<1x1x2x512xf32>
      %93 = vector.shape_cast %92 : vector<1x1x2x512xf32> to vector<2x512xf32>
      %c0_49 = arith.constant 0 : index
      %c0_50 = arith.constant 0 : index
      %94 = vector.load %arg7[%c0_49, %c0_50] : memref<2x128xf32, #tpu.memory_space<vmem>>, vector<2x128xf32>
      %95 = arith.truncf %94 : vector<2x128xf32> to vector<2x128xbf16>
      %c0_51 = arith.constant 0 : index
      %c0_52 = arith.constant 0 : index
      %c0_53 = arith.constant 0 : index
      %96 = vector.load %arg3[%c0_51, %c0_52, %c0_53] : memref<1x128x512xbf16, #tpu.memory_space<vmem>>, vector<1x128x512xbf16>
      %97 = vector.shape_cast %96 : vector<1x128x512xbf16> to vector<128x512xbf16>
      %cst_54 = arith.constant dense<0.000000e+00> : vector<2x512xf32>
      %98 = tpu.matmul %95, %97, %cst_54 {dimension_numbers = #tpu.dot_dimension_numbers<[1], [0], [0], [1], [0, 0, 1, 1], [], []>} : vector<2x128xbf16>, vector<128x512xbf16>, vector<2x512xf32> -> vector<2x512xf32>
      %99 = arith.addf %93, %98 : vector<2x512xf32>
      %100 = vector.extract_strided_slice %99 {offsets = [0, 0], sizes = [2, 128], strides = [1, 1]} : vector<2x512xf32> to vector<2x128xf32>
      %101 = arith.negf %100 : vector<2x128xf32>
      %102 = math.exp %101 : vector<2x128xf32>
      %cst_55 = arith.constant 1.000000e+00 : f32
      %103 = vector.broadcast %cst_55 : f32 to vector<2x128xf32>
      %104 = arith.addf %103, %102 : vector<2x128xf32>
      %105 = arith.divf %103, %104 : vector<2x128xf32>
      %106 = vector.extract_strided_slice %99 {offsets = [0, 128], sizes = [2, 128], strides = [1, 1]} : vector<2x512xf32> to vector<2x128xf32>
      %107 = arith.negf %106 : vector<2x128xf32>
      %108 = math.exp %107 : vector<2x128xf32>
      %cst_56 = arith.constant 1.000000e+00 : f32
      %109 = vector.broadcast %cst_56 : f32 to vector<2x128xf32>
      %110 = arith.addf %109, %108 : vector<2x128xf32>
      %111 = arith.divf %109, %110 : vector<2x128xf32>
      %112 = vector.extract_strided_slice %99 {offsets = [0, 256], sizes = [2, 128], strides = [1, 1]} : vector<2x512xf32> to vector<2x128xf32>
      %113 = math.tanh %112 : vector<2x128xf32>
      %114 = vector.extract_strided_slice %99 {offsets = [0, 384], sizes = [2, 128], strides = [1, 1]} : vector<2x512xf32> to vector<2x128xf32>
      %115 = arith.negf %114 : vector<2x128xf32>
      %116 = math.exp %115 : vector<2x128xf32>
      %cst_57 = arith.constant 1.000000e+00 : f32
      %117 = vector.broadcast %cst_57 : f32 to vector<2x128xf32>
      %118 = arith.addf %117, %116 : vector<2x128xf32>
      %119 = arith.divf %117, %118 : vector<2x128xf32>
      %c0_58 = arith.constant 0 : index
      %c0_59 = arith.constant 0 : index
      %120 = vector.load %arg8[%c0_58, %c0_59] : memref<2x128xf32, #tpu.memory_space<vmem>>, vector<2x128xf32>
      %121 = arith.mulf %111, %120 : vector<2x128xf32>
      %122 = arith.mulf %105, %113 : vector<2x128xf32>
      %123 = arith.addf %121, %122 : vector<2x128xf32>
      %124 = math.tanh %123 : vector<2x128xf32>
      %125 = arith.mulf %119, %124 : vector<2x128xf32>
      %c0_60 = arith.constant 0 : index
      %c0_61 = arith.constant 0 : index
      %126 = vector.load %arg8[%c0_60, %c0_61] : memref<2x128xf32, #tpu.memory_space<vmem>>, vector<2x128xf32>
      tpu.vector_store %arg8[%c0_60, %c0_61], %123 {strides = array<i32>} : memref<2x128xf32, #tpu.memory_space<vmem>>, vector<2x128xf32>,
      %c0_62 = arith.constant 0 : index
      %c0_63 = arith.constant 0 : index
      %127 = vector.load %arg7[%c0_62, %c0_63] : memref<2x128xf32, #tpu.memory_space<vmem>>, vector<2x128xf32>
      tpu.vector_store %arg7[%c0_62, %c0_63], %125 {strides = array<i32>} : memref<2x128xf32, #tpu.memory_space<vmem>>, vector<2x128xf32>,
      %128 = arith.truncf %125 : vector<2x128xf32> to vector<2x128xbf16>
      %c1_64 = arith.constant 1 : index
      %c0_65 = arith.constant 0 : index
      %c0_66 = arith.constant 0 : index
      %129 = vector.load %arg4[%c1_64, %c0_65, %c0_66] : memref<4x2x128xbf16, #tpu.memory_space<vmem>>, vector<1x2x128xbf16>
      %130 = vector.shape_cast %129 : vector<1x2x128xbf16> to vector<2x128xbf16>
      %131 = vector.shape_cast %128 : vector<2x128xbf16> to vector<1x2x128xbf16>
      tpu.vector_store %arg4[%c1_64, %c0_65, %c0_66], %131 {strides = array<i32>} : memref<4x2x128xbf16, #tpu.memory_space<vmem>>, vector<1x2x128xbf16>,
      %c0_67 = arith.constant 0 : index
      %c0_68 = arith.constant 0 : index
      %c0_69 = arith.constant 0 : index
      %c0_70 = arith.constant 0 : index
      %132 = vector.load %arg2[%c0_67, %c0_68, %c0_69, %c0_70] : memref<1x4x2x512xf32, #tpu.memory_space<vmem>>, vector<1x1x2x512xf32>
      %133 = vector.shape_cast %132 : vector<1x1x2x512xf32> to vector<2x512xf32>
      %c0_71 = arith.constant 0 : index
      %c0_72 = arith.constant 0 : index
      %134 = vector.load %arg7[%c0_71, %c0_72] : memref<2x128xf32, #tpu.memory_space<vmem>>, vector<2x128xf32>
      %135 = arith.truncf %134 : vector<2x128xf32> to vector<2x128xbf16>
      %c0_73 = arith.constant 0 : index
      %c0_74 = arith.constant 0 : index
      %c0_75 = arith.constant 0 : index
      %136 = vector.load %arg3[%c0_73, %c0_74, %c0_75] : memref<1x128x512xbf16, #tpu.memory_space<vmem>>, vector<1x128x512xbf16>
      %137 = vector.shape_cast %136 : vector<1x128x512xbf16> to vector<128x512xbf16>
      %cst_76 = arith.constant dense<0.000000e+00> : vector<2x512xf32>
      %138 = tpu.matmul %135, %137, %cst_76 {dimension_numbers = #tpu.dot_dimension_numbers<[1], [0], [0], [1], [0, 0, 1, 1], [], []>} : vector<2x128xbf16>, vector<128x512xbf16>, vector<2x512xf32> -> vector<2x512xf32>
      %139 = arith.addf %133, %138 : vector<2x512xf32>
      %140 = vector.extract_strided_slice %139 {offsets = [0, 0], sizes = [2, 128], strides = [1, 1]} : vector<2x512xf32> to vector<2x128xf32>
      %141 = arith.negf %140 : vector<2x128xf32>
      %142 = math.exp %141 : vector<2x128xf32>
      %cst_77 = arith.constant 1.000000e+00 : f32
      %143 = vector.broadcast %cst_77 : f32 to vector<2x128xf32>
      %144 = arith.addf %143, %142 : vector<2x128xf32>
      %145 = arith.divf %143, %144 : vector<2x128xf32>
      %146 = vector.extract_strided_slice %139 {offsets = [0, 128], sizes = [2, 128], strides = [1, 1]} : vector<2x512xf32> to vector<2x128xf32>
      %147 = arith.negf %146 : vector<2x128xf32>
      %148 = math.exp %147 : vector<2x128xf32>
      %cst_78 = arith.constant 1.000000e+00 : f32
      %149 = vector.broadcast %cst_78 : f32 to vector<2x128xf32>
      %150 = arith.addf %149, %148 : vector<2x128xf32>
      %151 = arith.divf %149, %150 : vector<2x128xf32>
      %152 = vector.extract_strided_slice %139 {offsets = [0, 256], sizes = [2, 128], strides = [1, 1]} : vector<2x512xf32> to vector<2x128xf32>
      %153 = math.tanh %152 : vector<2x128xf32>
      %154 = vector.extract_strided_slice %139 {offsets = [0, 384], sizes = [2, 128], strides = [1, 1]} : vector<2x512xf32> to vector<2x128xf32>
      %155 = arith.negf %154 : vector<2x128xf32>
      %156 = math.exp %155 : vector<2x128xf32>
      %cst_79 = arith.constant 1.000000e+00 : f32
      %157 = vector.broadcast %cst_79 : f32 to vector<2x128xf32>
      %158 = arith.addf %157, %156 : vector<2x128xf32>
      %159 = arith.divf %157, %158 : vector<2x128xf32>
      %c0_80 = arith.constant 0 : index
      %c0_81 = arith.constant 0 : index
      %160 = vector.load %arg8[%c0_80, %c0_81] : memref<2x128xf32, #tpu.memory_space<vmem>>, vector<2x128xf32>
      %161 = arith.mulf %151, %160 : vector<2x128xf32>
      %162 = arith.mulf %145, %153 : vector<2x128xf32>
      %163 = arith.addf %161, %162 : vector<2x128xf32>
      %164 = math.tanh %163 : vector<2x128xf32>
      %165 = arith.mulf %159, %164 : vector<2x128xf32>
      %c0_82 = arith.constant 0 : index
      %c0_83 = arith.constant 0 : index
      %166 = vector.load %arg8[%c0_82, %c0_83] : memref<2x128xf32, #tpu.memory_space<vmem>>, vector<2x128xf32>
      tpu.vector_store %arg8[%c0_82, %c0_83], %163 {strides = array<i32>} : memref<2x128xf32, #tpu.memory_space<vmem>>, vector<2x128xf32>,
      %c0_84 = arith.constant 0 : index
      %c0_85 = arith.constant 0 : index
      %167 = vector.load %arg7[%c0_84, %c0_85] : memref<2x128xf32, #tpu.memory_space<vmem>>, vector<2x128xf32>
      tpu.vector_store %arg7[%c0_84, %c0_85], %165 {strides = array<i32>} : memref<2x128xf32, #tpu.memory_space<vmem>>, vector<2x128xf32>,
      %168 = arith.truncf %165 : vector<2x128xf32> to vector<2x128xbf16>
      %c0_86 = arith.constant 0 : index
      %c0_87 = arith.constant 0 : index
      %c0_88 = arith.constant 0 : index
      %169 = vector.load %arg4[%c0_86, %c0_87, %c0_88] : memref<4x2x128xbf16, #tpu.memory_space<vmem>>, vector<1x2x128xbf16>
      %170 = vector.shape_cast %169 : vector<1x2x128xbf16> to vector<2x128xbf16>
      %171 = vector.shape_cast %168 : vector<2x128xbf16> to vector<1x2x128xbf16>
      tpu.vector_store %arg4[%c0_86, %c0_87, %c0_88], %171 {strides = array<i32>} : memref<4x2x128xbf16, #tpu.memory_space<vmem>>, vector<1x2x128xbf16>,
    } else {
    }
    %c1_i32_4 = arith.constant 1 : i32
    %9 = arith.cmpi eq, %arg1, %c1_i32_4 : i32
    %10 = arith.extui %9 : i1 to i32
    %c0_i32_5 = arith.constant 0 : i32
    %11 = arith.cmpi ne, %10, %c0_i32_5 : i32
    scf.if %11 {
      %c0 = arith.constant 0 : index
      %c0_6 = arith.constant 0 : index
      %12 = vector.load %arg7[%c0, %c0_6] : memref<2x128xf32, #tpu.memory_space<vmem>>, vector<2x128xf32>
      %c0_7 = arith.constant 0 : index
      %c0_8 = arith.constant 0 : index
      %13 = vector.load %arg5[%c0_7, %c0_8] : memref<2x128xf32, #tpu.memory_space<vmem>>, vector<2x128xf32>
      tpu.vector_store %arg5[%c0_7, %c0_8], %12 {strides = array<i32>} : memref<2x128xf32, #tpu.memory_space<vmem>>, vector<2x128xf32>,
      %c0_9 = arith.constant 0 : index
      %c0_10 = arith.constant 0 : index
      %14 = vector.load %arg8[%c0_9, %c0_10] : memref<2x128xf32, #tpu.memory_space<vmem>>, vector<2x128xf32>
      %c0_11 = arith.constant 0 : index
      %c0_12 = arith.constant 0 : index
      %15 = vector.load %arg6[%c0_11, %c0_12] : memref<2x128xf32, #tpu.memory_space<vmem>>, vector<2x128xf32>
      tpu.vector_store %arg6[%c0_11, %c0_12], %14 {strides = array<i32>} : memref<2x128xf32, #tpu.memory_space<vmem>>, vector<2x128xf32>,
    } else {
    }
    return
  }
  func.func @transform_0(%arg0: i32, %arg1: i32) -> (i32, i32, i32, i32) {
    %c1_i32 = arith.constant 1 : i32
    %0 = arith.muli %arg0, %c1_i32 : i32
    %c2_i32 = arith.constant 2 : i32
    %1 = arith.muli %c2_i32, %arg0 : i32
    %c1_i32_0 = arith.constant 1 : i32
    %2 = arith.subi %c1_i32_0, %1 : i32
    %3 = arith.muli %2, %arg1 : i32
    %4 = arith.addi %0, %3 : i32
    %c0_i32 = arith.constant 0 : i32
    %c0_i32_1 = arith.constant 0 : i32
    %c0_i32_2 = arith.constant 0 : i32
    return %arg0, %4, %c0_i32, %c0_i32_1 : i32, i32, i32, i32
  }
  func.func @transform_1(%arg0: i32, %arg1: i32) -> (i32, i32, i32) {
    %c0_i32 = arith.constant 0 : i32
    %c0_i32_0 = arith.constant 0 : i32
    %c0_i32_1 = arith.constant 0 : i32
    return %arg0, %c0_i32, %c0_i32_0 : i32, i32, i32
  }
  func.func @transform_2(%arg0: i32, %arg1: i32) -> (i32, i32, i32) {
    %c1_i32 = arith.constant 1 : i32
    %0 = arith.muli %arg0, %c1_i32 : i32
    %c2_i32 = arith.constant 2 : i32
    %1 = arith.muli %c2_i32, %arg0 : i32
    %c1_i32_0 = arith.constant 1 : i32
    %2 = arith.subi %c1_i32_0, %1 : i32
    %3 = arith.muli %2, %arg1 : i32
    %4 = arith.addi %0, %3 : i32
    %c0_i32 = arith.constant 0 : i32
    %c0_i32_1 = arith.constant 0 : i32
    return %4, %c0_i32, %arg0 : i32, i32, i32
  }
  func.func @transform_3(%arg0: i32, %arg1: i32) -> (i32, i32) {
    %c0_i32 = arith.constant 0 : i32
    %c0_i32_0 = arith.constant 0 : i32
    return %c0_i32, %arg0 : i32, i32
  }
  func.func @transform_4(%arg0: i32, %arg1: i32) -> (i32, i32) {
    %c0_i32 = arith.constant 0 : i32
    %c0_i32_0 = arith.constant 0 : i32
    return %c0_i32, %arg0 : i32, i32
  }
}

module attributes {stable_mosaic.version = 11 : i64} {
  func.func @bilstm_rec_kernel(%arg0: i32, %arg1: i32, %arg2: memref<1x4x2x512xf32, #tpu.memory_space<vmem>>, %arg3: memref<1x128x512xbf16, #tpu.memory_space<vmem>>, %arg4: memref<4x2x128xbf16, #tpu.memory_space<vmem>>, %arg5: memref<2x128xf32, #tpu.memory_space<vmem>>, %arg6: memref<2x128xf32, #tpu.memory_space<vmem>>, %arg7: memref<2x128xf32, #tpu.memory_space<vmem>>, %arg8: memref<2x128xf32, #tpu.memory_space<vmem>>) attributes {dimension_semantics = [#tpu.dimension_semantics<parallel>, #tpu.dimension_semantics<arbitrary>], iteration_bounds = array<i64: 2, 2>, scalar_prefetch = 0 : i64, scratch_operands = 2 : i64, tpu.core_type = #tpu.core_type<tc>, window_params = [{transform_indices = @transform_0, window_bounds = array<i64: 1, 4, 2, 512>}, {transform_indices = @transform_1, window_bounds = array<i64: 1, 128, 512>}, {transform_indices = @transform_2, window_bounds = array<i64: 4, 2, 128>}, {transform_indices = @transform_3, window_bounds = array<i64: 2, 128>}, {transform_indices = @transform_4, window_bounds = array<i64: 2, 128>}]} {
    %c0_i32 = arith.constant 0 : i32
    %0 = arith.cmpi eq, %arg1, %c0_i32 : i32
    %1 = arith.extui %0 : i1 to i32
    %c0_i32_0 = arith.constant 0 : i32
    %2 = arith.cmpi ne, %1, %c0_i32_0 : i32
    scf.if %2 {
      %cst = arith.constant 0.000000e+00 : f32
      %12 = vector.broadcast %cst : f32 to vector<2x128xf32>
      %c0 = arith.constant 0 : index
      %c0_6 = arith.constant 0 : index
      %13 = vector.load %arg7[%c0, %c0_6] : memref<2x128xf32, #tpu.memory_space<vmem>>, vector<2x128xf32>
      tpu.vector_store %arg7[%c0, %c0_6], %12 {strides = array<i32>} : memref<2x128xf32, #tpu.memory_space<vmem>>, vector<2x128xf32>,
      %cst_7 = arith.constant 0.000000e+00 : f32
      %14 = vector.broadcast %cst_7 : f32 to vector<2x128xf32>
      %c0_8 = arith.constant 0 : index
      %c0_9 = arith.constant 0 : index
      %15 = vector.load %arg8[%c0_8, %c0_9] : memref<2x128xf32, #tpu.memory_space<vmem>>, vector<2x128xf32>
      tpu.vector_store %arg8[%c0_8, %c0_9], %14 {strides = array<i32>} : memref<2x128xf32, #tpu.memory_space<vmem>>, vector<2x128xf32>,
    } else {
    }
    %c0_i32_1 = arith.constant 0 : i32
    %3 = arith.cmpi eq, %arg0, %c0_i32_1 : i32
    %4 = arith.extui %3 : i1 to i32
    %c0_i32_2 = arith.constant 0 : i32
    %5 = arith.cmpi ne, %4, %c0_i32_2 : i32
    scf.if %5 {
      %c0 = arith.constant 0 : index
      %c0_6 = arith.constant 0 : index
      %c0_7 = arith.constant 0 : index
      %c0_8 = arith.constant 0 : index
      %12 = vector.load %arg2[%c0, %c0_6, %c0_7, %c0_8] : memref<1x4x2x512xf32, #tpu.memory_space<vmem>>, vector<1x1x2x512xf32>
      %13 = vector.shape_cast %12 : vector<1x1x2x512xf32> to vector<2x512xf32>
      %c0_9 = arith.constant 0 : index
      %c0_10 = arith.constant 0 : index
      %14 = vector.load %arg7[%c0_9, %c0_10] : memref<2x128xf32, #tpu.memory_space<vmem>>, vector<2x128xf32>
      %15 = arith.truncf %14 : vector<2x128xf32> to vector<2x128xbf16>
      %c0_11 = arith.constant 0 : index
      %c0_12 = arith.constant 0 : index
      %c0_13 = arith.constant 0 : index
      %16 = vector.load %arg3[%c0_11, %c0_12, %c0_13] : memref<1x128x512xbf16, #tpu.memory_space<vmem>>, vector<1x128x512xbf16>
      %17 = vector.shape_cast %16 : vector<1x128x512xbf16> to vector<128x512xbf16>
      %cst = arith.constant dense<0.000000e+00> : vector<2x512xf32>
      %18 = tpu.matmul %15, %17, %cst {dimension_numbers = #tpu.dot_dimension_numbers<[1], [0], [0], [1], [0, 0, 1, 1], [], []>} : vector<2x128xbf16>, vector<128x512xbf16>, vector<2x512xf32> -> vector<2x512xf32>
      %19 = arith.addf %13, %18 : vector<2x512xf32>
      %20 = vector.extract_strided_slice %19 {offsets = [0, 0], sizes = [2, 128], strides = [1, 1]} : vector<2x512xf32> to vector<2x128xf32>
      %21 = arith.negf %20 : vector<2x128xf32>
      %22 = math.exp %21 : vector<2x128xf32>
      %cst_14 = arith.constant 1.000000e+00 : f32
      %23 = vector.broadcast %cst_14 : f32 to vector<2x128xf32>
      %24 = arith.addf %23, %22 : vector<2x128xf32>
      %25 = arith.divf %23, %24 : vector<2x128xf32>
      %26 = vector.extract_strided_slice %19 {offsets = [0, 128], sizes = [2, 128], strides = [1, 1]} : vector<2x512xf32> to vector<2x128xf32>
      %27 = arith.negf %26 : vector<2x128xf32>
      %28 = math.exp %27 : vector<2x128xf32>
      %cst_15 = arith.constant 1.000000e+00 : f32
      %29 = vector.broadcast %cst_15 : f32 to vector<2x128xf32>
      %30 = arith.addf %29, %28 : vector<2x128xf32>
      %31 = arith.divf %29, %30 : vector<2x128xf32>
      %32 = vector.extract_strided_slice %19 {offsets = [0, 256], sizes = [2, 128], strides = [1, 1]} : vector<2x512xf32> to vector<2x128xf32>
      %33 = math.tanh %32 : vector<2x128xf32>
      %34 = vector.extract_strided_slice %19 {offsets = [0, 384], sizes = [2, 128], strides = [1, 1]} : vector<2x512xf32> to vector<2x128xf32>
      %35 = arith.negf %34 : vector<2x128xf32>
      %36 = math.exp %35 : vector<2x128xf32>
      %cst_16 = arith.constant 1.000000e+00 : f32
      %37 = vector.broadcast %cst_16 : f32 to vector<2x128xf32>
      %38 = arith.addf %37, %36 : vector<2x128xf32>
      %39 = arith.divf %37, %38 : vector<2x128xf32>
      %c0_17 = arith.constant 0 : index
      %c0_18 = arith.constant 0 : index
      %40 = vector.load %arg8[%c0_17, %c0_18] : memref<2x128xf32, #tpu.memory_space<vmem>>, vector<2x128xf32>
      %41 = arith.mulf %31, %40 : vector<2x128xf32>
      %42 = arith.mulf %25, %33 : vector<2x128xf32>
      %43 = arith.addf %41, %42 : vector<2x128xf32>
      %44 = math.tanh %43 : vector<2x128xf32>
      %45 = arith.mulf %39, %44 : vector<2x128xf32>
      %c0_19 = arith.constant 0 : index
      %c0_20 = arith.constant 0 : index
      %46 = vector.load %arg8[%c0_19, %c0_20] : memref<2x128xf32, #tpu.memory_space<vmem>>, vector<2x128xf32>
      tpu.vector_store %arg8[%c0_19, %c0_20], %43 {strides = array<i32>} : memref<2x128xf32, #tpu.memory_space<vmem>>, vector<2x128xf32>,
      %c0_21 = arith.constant 0 : index
      %c0_22 = arith.constant 0 : index
      %47 = vector.load %arg7[%c0_21, %c0_22] : memref<2x128xf32, #tpu.memory_space<vmem>>, vector<2x128xf32>
      tpu.vector_store %arg7[%c0_21, %c0_22], %45 {strides = array<i32>} : memref<2x128xf32, #tpu.memory_space<vmem>>, vector<2x128xf32>,
      %48 = arith.truncf %45 : vector<2x128xf32> to vector<2x128xbf16>
      %c0_23 = arith.constant 0 : index
      %c0_24 = arith.constant 0 : index
      %c0_25 = arith.constant 0 : index
      %49 = vector.load %arg4[%c0_23, %c0_24, %c0_25] : memref<4x2x128xbf16, #tpu.memory_space<vmem>>, vector<1x2x128xbf16>
      %50 = vector.shape_cast %49 : vector<1x2x128xbf16> to vector<2x128xbf16>
      %51 = vector.shape_cast %48 : vector<2x128xbf16> to vector<1x2x128xbf16>
      tpu.vector_store %arg4[%c0_23, %c0_24, %c0_25], %51 {strides = array<i32>} : memref<4x2x128xbf16, #tpu.memory_space<vmem>>, vector<1x2x128xbf16>,
      %c0_26 = arith.constant 0 : index
      %c1 = arith.constant 1 : index
      %c0_27 = arith.constant 0 : index
      %c0_28 = arith.constant 0 : index
      %52 = vector.load %arg2[%c0_26, %c1, %c0_27, %c0_28] : memref<1x4x2x512xf32, #tpu.memory_space<vmem>>, vector<1x1x2x512xf32>
      %53 = vector.shape_cast %52 : vector<1x1x2x512xf32> to vector<2x512xf32>
      %c0_29 = arith.constant 0 : index
      %c0_30 = arith.constant 0 : index
      %54 = vector.load %arg7[%c0_29, %c0_30] : memref<2x128xf32, #tpu.memory_space<vmem>>, vector<2x128xf32>
      %55 = arith.truncf %54 : vector<2x128xf32> to vector<2x128xbf16>
      %c0_31 = arith.constant 0 : index
      %c0_32 = arith.constant 0 : index
      %c0_33 = arith.constant 0 : index
      %56 = vector.load %arg3[%c0_31, %c0_32, %c0_33] : memref<1x128x512xbf16, #tpu.memory_space<vmem>>, vector<1x128x512xbf16>
      %57 = vector.shape_cast %56 : vector<1x128x512xbf16> to vector<128x512xbf16>
      %cst_34 = arith.constant dense<0.000000e+00> : vector<2x512xf32>
      %58 = tpu.matmul %55, %57, %cst_34 {dimension_numbers = #tpu.dot_dimension_numbers<[1], [0], [0], [1], [0, 0, 1, 1], [], []>} : vector<2x128xbf16>, vector<128x512xbf16>, vector<2x512xf32> -> vector<2x512xf32>
      %59 = arith.addf %53, %58 : vector<2x512xf32>
      %60 = vector.extract_strided_slice %59 {offsets = [0, 0], sizes = [2, 128], strides = [1, 1]} : vector<2x512xf32> to vector<2x128xf32>
      %61 = arith.negf %60 : vector<2x128xf32>
      %62 = math.exp %61 : vector<2x128xf32>
      %cst_35 = arith.constant 1.000000e+00 : f32
      %63 = vector.broadcast %cst_35 : f32 to vector<2x128xf32>
      %64 = arith.addf %63, %62 : vector<2x128xf32>
      %65 = arith.divf %63, %64 : vector<2x128xf32>
      %66 = vector.extract_strided_slice %59 {offsets = [0, 128], sizes = [2, 128], strides = [1, 1]} : vector<2x512xf32> to vector<2x128xf32>
      %67 = arith.negf %66 : vector<2x128xf32>
      %68 = math.exp %67 : vector<2x128xf32>
      %cst_36 = arith.constant 1.000000e+00 : f32
      %69 = vector.broadcast %cst_36 : f32 to vector<2x128xf32>
      %70 = arith.addf %69, %68 : vector<2x128xf32>
      %71 = arith.divf %69, %70 : vector<2x128xf32>
      %72 = vector.extract_strided_slice %59 {offsets = [0, 256], sizes = [2, 128], strides = [1, 1]} : vector<2x512xf32> to vector<2x128xf32>
      %73 = math.tanh %72 : vector<2x128xf32>
      %74 = vector.extract_strided_slice %59 {offsets = [0, 384], sizes = [2, 128], strides = [1, 1]} : vector<2x512xf32> to vector<2x128xf32>
      %75 = arith.negf %74 : vector<2x128xf32>
      %76 = math.exp %75 : vector<2x128xf32>
      %cst_37 = arith.constant 1.000000e+00 : f32
      %77 = vector.broadcast %cst_37 : f32 to vector<2x128xf32>
      %78 = arith.addf %77, %76 : vector<2x128xf32>
      %79 = arith.divf %77, %78 : vector<2x128xf32>
      %c0_38 = arith.constant 0 : index
      %c0_39 = arith.constant 0 : index
      %80 = vector.load %arg8[%c0_38, %c0_39] : memref<2x128xf32, #tpu.memory_space<vmem>>, vector<2x128xf32>
      %81 = arith.mulf %71, %80 : vector<2x128xf32>
      %82 = arith.mulf %65, %73 : vector<2x128xf32>
      %83 = arith.addf %81, %82 : vector<2x128xf32>
      %84 = math.tanh %83 : vector<2x128xf32>
      %85 = arith.mulf %79, %84 : vector<2x128xf32>
      %c0_40 = arith.constant 0 : index
      %c0_41 = arith.constant 0 : index
      %86 = vector.load %arg8[%c0_40, %c0_41] : memref<2x128xf32, #tpu.memory_space<vmem>>, vector<2x128xf32>
      tpu.vector_store %arg8[%c0_40, %c0_41], %83 {strides = array<i32>} : memref<2x128xf32, #tpu.memory_space<vmem>>, vector<2x128xf32>,
      %c0_42 = arith.constant 0 : index
      %c0_43 = arith.constant 0 : index
      %87 = vector.load %arg7[%c0_42, %c0_43] : memref<2x128xf32, #tpu.memory_space<vmem>>, vector<2x128xf32>
      tpu.vector_store %arg7[%c0_42, %c0_43], %85 {strides = array<i32>} : memref<2x128xf32, #tpu.memory_space<vmem>>, vector<2x128xf32>,
      %88 = arith.truncf %85 : vector<2x128xf32> to vector<2x128xbf16>
      %c1_44 = arith.constant 1 : index
      %c0_45 = arith.constant 0 : index
      %c0_46 = arith.constant 0 : index
      %89 = vector.load %arg4[%c1_44, %c0_45, %c0_46] : memref<4x2x128xbf16, #tpu.memory_space<vmem>>, vector<1x2x128xbf16>
      %90 = vector.shape_cast %89 : vector<1x2x128xbf16> to vector<2x128xbf16>
      %91 = vector.shape_cast %88 : vector<2x128xbf16> to vector<1x2x128xbf16>
      tpu.vector_store %arg4[%c1_44, %c0_45, %c0_46], %91 {strides = array<i32>} : memref<4x2x128xbf16, #tpu.memory_space<vmem>>, vector<1x2x128xbf16>,
      %c0_47 = arith.constant 0 : index
      %c2 = arith.constant 2 : index
      %c0_48 = arith.constant 0 : index
      %c0_49 = arith.constant 0 : index
      %92 = vector.load %arg2[%c0_47, %c2, %c0_48, %c0_49] : memref<1x4x2x512xf32, #tpu.memory_space<vmem>>, vector<1x1x2x512xf32>
      %93 = vector.shape_cast %92 : vector<1x1x2x512xf32> to vector<2x512xf32>
      %c0_50 = arith.constant 0 : index
      %c0_51 = arith.constant 0 : index
      %94 = vector.load %arg7[%c0_50, %c0_51] : memref<2x128xf32, #tpu.memory_space<vmem>>, vector<2x128xf32>
      %95 = arith.truncf %94 : vector<2x128xf32> to vector<2x128xbf16>
      %c0_52 = arith.constant 0 : index
      %c0_53 = arith.constant 0 : index
      %c0_54 = arith.constant 0 : index
      %96 = vector.load %arg3[%c0_52, %c0_53, %c0_54] : memref<1x128x512xbf16, #tpu.memory_space<vmem>>, vector<1x128x512xbf16>
      %97 = vector.shape_cast %96 : vector<1x128x512xbf16> to vector<128x512xbf16>
      %cst_55 = arith.constant dense<0.000000e+00> : vector<2x512xf32>
      %98 = tpu.matmul %95, %97, %cst_55 {dimension_numbers = #tpu.dot_dimension_numbers<[1], [0], [0], [1], [0, 0, 1, 1], [], []>} : vector<2x128xbf16>, vector<128x512xbf16>, vector<2x512xf32> -> vector<2x512xf32>
      %99 = arith.addf %93, %98 : vector<2x512xf32>
      %100 = vector.extract_strided_slice %99 {offsets = [0, 0], sizes = [2, 128], strides = [1, 1]} : vector<2x512xf32> to vector<2x128xf32>
      %101 = arith.negf %100 : vector<2x128xf32>
      %102 = math.exp %101 : vector<2x128xf32>
      %cst_56 = arith.constant 1.000000e+00 : f32
      %103 = vector.broadcast %cst_56 : f32 to vector<2x128xf32>
      %104 = arith.addf %103, %102 : vector<2x128xf32>
      %105 = arith.divf %103, %104 : vector<2x128xf32>
      %106 = vector.extract_strided_slice %99 {offsets = [0, 128], sizes = [2, 128], strides = [1, 1]} : vector<2x512xf32> to vector<2x128xf32>
      %107 = arith.negf %106 : vector<2x128xf32>
      %108 = math.exp %107 : vector<2x128xf32>
      %cst_57 = arith.constant 1.000000e+00 : f32
      %109 = vector.broadcast %cst_57 : f32 to vector<2x128xf32>
      %110 = arith.addf %109, %108 : vector<2x128xf32>
      %111 = arith.divf %109, %110 : vector<2x128xf32>
      %112 = vector.extract_strided_slice %99 {offsets = [0, 256], sizes = [2, 128], strides = [1, 1]} : vector<2x512xf32> to vector<2x128xf32>
      %113 = math.tanh %112 : vector<2x128xf32>
      %114 = vector.extract_strided_slice %99 {offsets = [0, 384], sizes = [2, 128], strides = [1, 1]} : vector<2x512xf32> to vector<2x128xf32>
      %115 = arith.negf %114 : vector<2x128xf32>
      %116 = math.exp %115 : vector<2x128xf32>
      %cst_58 = arith.constant 1.000000e+00 : f32
      %117 = vector.broadcast %cst_58 : f32 to vector<2x128xf32>
      %118 = arith.addf %117, %116 : vector<2x128xf32>
      %119 = arith.divf %117, %118 : vector<2x128xf32>
      %c0_59 = arith.constant 0 : index
      %c0_60 = arith.constant 0 : index
      %120 = vector.load %arg8[%c0_59, %c0_60] : memref<2x128xf32, #tpu.memory_space<vmem>>, vector<2x128xf32>
      %121 = arith.mulf %111, %120 : vector<2x128xf32>
      %122 = arith.mulf %105, %113 : vector<2x128xf32>
      %123 = arith.addf %121, %122 : vector<2x128xf32>
      %124 = math.tanh %123 : vector<2x128xf32>
      %125 = arith.mulf %119, %124 : vector<2x128xf32>
      %c0_61 = arith.constant 0 : index
      %c0_62 = arith.constant 0 : index
      %126 = vector.load %arg8[%c0_61, %c0_62] : memref<2x128xf32, #tpu.memory_space<vmem>>, vector<2x128xf32>
      tpu.vector_store %arg8[%c0_61, %c0_62], %123 {strides = array<i32>} : memref<2x128xf32, #tpu.memory_space<vmem>>, vector<2x128xf32>,
      %c0_63 = arith.constant 0 : index
      %c0_64 = arith.constant 0 : index
      %127 = vector.load %arg7[%c0_63, %c0_64] : memref<2x128xf32, #tpu.memory_space<vmem>>, vector<2x128xf32>
      tpu.vector_store %arg7[%c0_63, %c0_64], %125 {strides = array<i32>} : memref<2x128xf32, #tpu.memory_space<vmem>>, vector<2x128xf32>,
      %128 = arith.truncf %125 : vector<2x128xf32> to vector<2x128xbf16>
      %c2_65 = arith.constant 2 : index
      %c0_66 = arith.constant 0 : index
      %c0_67 = arith.constant 0 : index
      %129 = vector.load %arg4[%c2_65, %c0_66, %c0_67] : memref<4x2x128xbf16, #tpu.memory_space<vmem>>, vector<1x2x128xbf16>
      %130 = vector.shape_cast %129 : vector<1x2x128xbf16> to vector<2x128xbf16>
      %131 = vector.shape_cast %128 : vector<2x128xbf16> to vector<1x2x128xbf16>
      tpu.vector_store %arg4[%c2_65, %c0_66, %c0_67], %131 {strides = array<i32>} : memref<4x2x128xbf16, #tpu.memory_space<vmem>>, vector<1x2x128xbf16>,
      %c0_68 = arith.constant 0 : index
      %c3 = arith.constant 3 : index
      %c0_69 = arith.constant 0 : index
      %c0_70 = arith.constant 0 : index
      %132 = vector.load %arg2[%c0_68, %c3, %c0_69, %c0_70] : memref<1x4x2x512xf32, #tpu.memory_space<vmem>>, vector<1x1x2x512xf32>
      %133 = vector.shape_cast %132 : vector<1x1x2x512xf32> to vector<2x512xf32>
      %c0_71 = arith.constant 0 : index
      %c0_72 = arith.constant 0 : index
      %134 = vector.load %arg7[%c0_71, %c0_72] : memref<2x128xf32, #tpu.memory_space<vmem>>, vector<2x128xf32>
      %135 = arith.truncf %134 : vector<2x128xf32> to vector<2x128xbf16>
      %c0_73 = arith.constant 0 : index
      %c0_74 = arith.constant 0 : index
      %c0_75 = arith.constant 0 : index
      %136 = vector.load %arg3[%c0_73, %c0_74, %c0_75] : memref<1x128x512xbf16, #tpu.memory_space<vmem>>, vector<1x128x512xbf16>
      %137 = vector.shape_cast %136 : vector<1x128x512xbf16> to vector<128x512xbf16>
      %cst_76 = arith.constant dense<0.000000e+00> : vector<2x512xf32>
      %138 = tpu.matmul %135, %137, %cst_76 {dimension_numbers = #tpu.dot_dimension_numbers<[1], [0], [0], [1], [0, 0, 1, 1], [], []>} : vector<2x128xbf16>, vector<128x512xbf16>, vector<2x512xf32> -> vector<2x512xf32>
      %139 = arith.addf %133, %138 : vector<2x512xf32>
      %140 = vector.extract_strided_slice %139 {offsets = [0, 0], sizes = [2, 128], strides = [1, 1]} : vector<2x512xf32> to vector<2x128xf32>
      %141 = arith.negf %140 : vector<2x128xf32>
      %142 = math.exp %141 : vector<2x128xf32>
      %cst_77 = arith.constant 1.000000e+00 : f32
      %143 = vector.broadcast %cst_77 : f32 to vector<2x128xf32>
      %144 = arith.addf %143, %142 : vector<2x128xf32>
      %145 = arith.divf %143, %144 : vector<2x128xf32>
      %146 = vector.extract_strided_slice %139 {offsets = [0, 128], sizes = [2, 128], strides = [1, 1]} : vector<2x512xf32> to vector<2x128xf32>
      %147 = arith.negf %146 : vector<2x128xf32>
      %148 = math.exp %147 : vector<2x128xf32>
      %cst_78 = arith.constant 1.000000e+00 : f32
      %149 = vector.broadcast %cst_78 : f32 to vector<2x128xf32>
      %150 = arith.addf %149, %148 : vector<2x128xf32>
      %151 = arith.divf %149, %150 : vector<2x128xf32>
      %152 = vector.extract_strided_slice %139 {offsets = [0, 256], sizes = [2, 128], strides = [1, 1]} : vector<2x512xf32> to vector<2x128xf32>
      %153 = math.tanh %152 : vector<2x128xf32>
      %154 = vector.extract_strided_slice %139 {offsets = [0, 384], sizes = [2, 128], strides = [1, 1]} : vector<2x512xf32> to vector<2x128xf32>
      %155 = arith.negf %154 : vector<2x128xf32>
      %156 = math.exp %155 : vector<2x128xf32>
      %cst_79 = arith.constant 1.000000e+00 : f32
      %157 = vector.broadcast %cst_79 : f32 to vector<2x128xf32>
      %158 = arith.addf %157, %156 : vector<2x128xf32>
      %159 = arith.divf %157, %158 : vector<2x128xf32>
      %c0_80 = arith.constant 0 : index
      %c0_81 = arith.constant 0 : index
      %160 = vector.load %arg8[%c0_80, %c0_81] : memref<2x128xf32, #tpu.memory_space<vmem>>, vector<2x128xf32>
      %161 = arith.mulf %151, %160 : vector<2x128xf32>
      %162 = arith.mulf %145, %153 : vector<2x128xf32>
      %163 = arith.addf %161, %162 : vector<2x128xf32>
      %164 = math.tanh %163 : vector<2x128xf32>
      %165 = arith.mulf %159, %164 : vector<2x128xf32>
      %c0_82 = arith.constant 0 : index
      %c0_83 = arith.constant 0 : index
      %166 = vector.load %arg8[%c0_82, %c0_83] : memref<2x128xf32, #tpu.memory_space<vmem>>, vector<2x128xf32>
      tpu.vector_store %arg8[%c0_82, %c0_83], %163 {strides = array<i32>} : memref<2x128xf32, #tpu.memory_space<vmem>>, vector<2x128xf32>,
      %c0_84 = arith.constant 0 : index
      %c0_85 = arith.constant 0 : index
      %167 = vector.load %arg7[%c0_84, %c0_85] : memref<2x128xf32, #tpu.memory_space<vmem>>, vector<2x128xf32>
      tpu.vector_store %arg7[%c0_84, %c0_85], %165 {strides = array<i32>} : memref<2x128xf32, #tpu.memory_space<vmem>>, vector<2x128xf32>,
      %168 = arith.truncf %165 : vector<2x128xf32> to vector<2x128xbf16>
      %c3_86 = arith.constant 3 : index
      %c0_87 = arith.constant 0 : index
      %c0_88 = arith.constant 0 : index
      %169 = vector.load %arg4[%c3_86, %c0_87, %c0_88] : memref<4x2x128xbf16, #tpu.memory_space<vmem>>, vector<1x2x128xbf16>
      %170 = vector.shape_cast %169 : vector<1x2x128xbf16> to vector<2x128xbf16>
      %171 = vector.shape_cast %168 : vector<2x128xbf16> to vector<1x2x128xbf16>
      tpu.vector_store %arg4[%c3_86, %c0_87, %c0_88], %171 {strides = array<i32>} : memref<4x2x128xbf16, #tpu.memory_space<vmem>>, vector<1x2x128xbf16>,
    } else {
    }
    %c1_i32 = arith.constant 1 : i32
    %6 = arith.cmpi eq, %arg0, %c1_i32 : i32
    %7 = arith.extui %6 : i1 to i32
    %c0_i32_3 = arith.constant 0 : i32
    %8 = arith.cmpi ne, %7, %c0_i32_3 : i32
    scf.if %8 {
      %c0 = arith.constant 0 : index
      %c3 = arith.constant 3 : index
      %c0_6 = arith.constant 0 : index
      %c0_7 = arith.constant 0 : index
      %12 = vector.load %arg2[%c0, %c3, %c0_6, %c0_7] : memref<1x4x2x512xf32, #tpu.memory_space<vmem>>, vector<1x1x2x512xf32>
      %13 = vector.shape_cast %12 : vector<1x1x2x512xf32> to vector<2x512xf32>
      %c0_8 = arith.constant 0 : index
      %c0_9 = arith.constant 0 : index
      %14 = vector.load %arg7[%c0_8, %c0_9] : memref<2x128xf32, #tpu.memory_space<vmem>>, vector<2x128xf32>
      %15 = arith.truncf %14 : vector<2x128xf32> to vector<2x128xbf16>
      %c0_10 = arith.constant 0 : index
      %c0_11 = arith.constant 0 : index
      %c0_12 = arith.constant 0 : index
      %16 = vector.load %arg3[%c0_10, %c0_11, %c0_12] : memref<1x128x512xbf16, #tpu.memory_space<vmem>>, vector<1x128x512xbf16>
      %17 = vector.shape_cast %16 : vector<1x128x512xbf16> to vector<128x512xbf16>
      %cst = arith.constant dense<0.000000e+00> : vector<2x512xf32>
      %18 = tpu.matmul %15, %17, %cst {dimension_numbers = #tpu.dot_dimension_numbers<[1], [0], [0], [1], [0, 0, 1, 1], [], []>} : vector<2x128xbf16>, vector<128x512xbf16>, vector<2x512xf32> -> vector<2x512xf32>
      %19 = arith.addf %13, %18 : vector<2x512xf32>
      %20 = vector.extract_strided_slice %19 {offsets = [0, 0], sizes = [2, 128], strides = [1, 1]} : vector<2x512xf32> to vector<2x128xf32>
      %21 = arith.negf %20 : vector<2x128xf32>
      %22 = math.exp %21 : vector<2x128xf32>
      %cst_13 = arith.constant 1.000000e+00 : f32
      %23 = vector.broadcast %cst_13 : f32 to vector<2x128xf32>
      %24 = arith.addf %23, %22 : vector<2x128xf32>
      %25 = arith.divf %23, %24 : vector<2x128xf32>
      %26 = vector.extract_strided_slice %19 {offsets = [0, 128], sizes = [2, 128], strides = [1, 1]} : vector<2x512xf32> to vector<2x128xf32>
      %27 = arith.negf %26 : vector<2x128xf32>
      %28 = math.exp %27 : vector<2x128xf32>
      %cst_14 = arith.constant 1.000000e+00 : f32
      %29 = vector.broadcast %cst_14 : f32 to vector<2x128xf32>
      %30 = arith.addf %29, %28 : vector<2x128xf32>
      %31 = arith.divf %29, %30 : vector<2x128xf32>
      %32 = vector.extract_strided_slice %19 {offsets = [0, 256], sizes = [2, 128], strides = [1, 1]} : vector<2x512xf32> to vector<2x128xf32>
      %33 = math.tanh %32 : vector<2x128xf32>
      %34 = vector.extract_strided_slice %19 {offsets = [0, 384], sizes = [2, 128], strides = [1, 1]} : vector<2x512xf32> to vector<2x128xf32>
      %35 = arith.negf %34 : vector<2x128xf32>
      %36 = math.exp %35 : vector<2x128xf32>
      %cst_15 = arith.constant 1.000000e+00 : f32
      %37 = vector.broadcast %cst_15 : f32 to vector<2x128xf32>
      %38 = arith.addf %37, %36 : vector<2x128xf32>
      %39 = arith.divf %37, %38 : vector<2x128xf32>
      %c0_16 = arith.constant 0 : index
      %c0_17 = arith.constant 0 : index
      %40 = vector.load %arg8[%c0_16, %c0_17] : memref<2x128xf32, #tpu.memory_space<vmem>>, vector<2x128xf32>
      %41 = arith.mulf %31, %40 : vector<2x128xf32>
      %42 = arith.mulf %25, %33 : vector<2x128xf32>
      %43 = arith.addf %41, %42 : vector<2x128xf32>
      %44 = math.tanh %43 : vector<2x128xf32>
      %45 = arith.mulf %39, %44 : vector<2x128xf32>
      %c0_18 = arith.constant 0 : index
      %c0_19 = arith.constant 0 : index
      %46 = vector.load %arg8[%c0_18, %c0_19] : memref<2x128xf32, #tpu.memory_space<vmem>>, vector<2x128xf32>
      tpu.vector_store %arg8[%c0_18, %c0_19], %43 {strides = array<i32>} : memref<2x128xf32, #tpu.memory_space<vmem>>, vector<2x128xf32>,
      %c0_20 = arith.constant 0 : index
      %c0_21 = arith.constant 0 : index
      %47 = vector.load %arg7[%c0_20, %c0_21] : memref<2x128xf32, #tpu.memory_space<vmem>>, vector<2x128xf32>
      tpu.vector_store %arg7[%c0_20, %c0_21], %45 {strides = array<i32>} : memref<2x128xf32, #tpu.memory_space<vmem>>, vector<2x128xf32>,
      %48 = arith.truncf %45 : vector<2x128xf32> to vector<2x128xbf16>
      %c3_22 = arith.constant 3 : index
      %c0_23 = arith.constant 0 : index
      %c0_24 = arith.constant 0 : index
      %49 = vector.load %arg4[%c3_22, %c0_23, %c0_24] : memref<4x2x128xbf16, #tpu.memory_space<vmem>>, vector<1x2x128xbf16>
      %50 = vector.shape_cast %49 : vector<1x2x128xbf16> to vector<2x128xbf16>
      %51 = vector.shape_cast %48 : vector<2x128xbf16> to vector<1x2x128xbf16>
      tpu.vector_store %arg4[%c3_22, %c0_23, %c0_24], %51 {strides = array<i32>} : memref<4x2x128xbf16, #tpu.memory_space<vmem>>, vector<1x2x128xbf16>,
      %c0_25 = arith.constant 0 : index
      %c2 = arith.constant 2 : index
      %c0_26 = arith.constant 0 : index
      %c0_27 = arith.constant 0 : index
      %52 = vector.load %arg2[%c0_25, %c2, %c0_26, %c0_27] : memref<1x4x2x512xf32, #tpu.memory_space<vmem>>, vector<1x1x2x512xf32>
      %53 = vector.shape_cast %52 : vector<1x1x2x512xf32> to vector<2x512xf32>
      %c0_28 = arith.constant 0 : index
      %c0_29 = arith.constant 0 : index
      %54 = vector.load %arg7[%c0_28, %c0_29] : memref<2x128xf32, #tpu.memory_space<vmem>>, vector<2x128xf32>
      %55 = arith.truncf %54 : vector<2x128xf32> to vector<2x128xbf16>
      %c0_30 = arith.constant 0 : index
      %c0_31 = arith.constant 0 : index
      %c0_32 = arith.constant 0 : index
      %56 = vector.load %arg3[%c0_30, %c0_31, %c0_32] : memref<1x128x512xbf16, #tpu.memory_space<vmem>>, vector<1x128x512xbf16>
      %57 = vector.shape_cast %56 : vector<1x128x512xbf16> to vector<128x512xbf16>
      %cst_33 = arith.constant dense<0.000000e+00> : vector<2x512xf32>
      %58 = tpu.matmul %55, %57, %cst_33 {dimension_numbers = #tpu.dot_dimension_numbers<[1], [0], [0], [1], [0, 0, 1, 1], [], []>} : vector<2x128xbf16>, vector<128x512xbf16>, vector<2x512xf32> -> vector<2x512xf32>
      %59 = arith.addf %53, %58 : vector<2x512xf32>
      %60 = vector.extract_strided_slice %59 {offsets = [0, 0], sizes = [2, 128], strides = [1, 1]} : vector<2x512xf32> to vector<2x128xf32>
      %61 = arith.negf %60 : vector<2x128xf32>
      %62 = math.exp %61 : vector<2x128xf32>
      %cst_34 = arith.constant 1.000000e+00 : f32
      %63 = vector.broadcast %cst_34 : f32 to vector<2x128xf32>
      %64 = arith.addf %63, %62 : vector<2x128xf32>
      %65 = arith.divf %63, %64 : vector<2x128xf32>
      %66 = vector.extract_strided_slice %59 {offsets = [0, 128], sizes = [2, 128], strides = [1, 1]} : vector<2x512xf32> to vector<2x128xf32>
      %67 = arith.negf %66 : vector<2x128xf32>
      %68 = math.exp %67 : vector<2x128xf32>
      %cst_35 = arith.constant 1.000000e+00 : f32
      %69 = vector.broadcast %cst_35 : f32 to vector<2x128xf32>
      %70 = arith.addf %69, %68 : vector<2x128xf32>
      %71 = arith.divf %69, %70 : vector<2x128xf32>
      %72 = vector.extract_strided_slice %59 {offsets = [0, 256], sizes = [2, 128], strides = [1, 1]} : vector<2x512xf32> to vector<2x128xf32>
      %73 = math.tanh %72 : vector<2x128xf32>
      %74 = vector.extract_strided_slice %59 {offsets = [0, 384], sizes = [2, 128], strides = [1, 1]} : vector<2x512xf32> to vector<2x128xf32>
      %75 = arith.negf %74 : vector<2x128xf32>
      %76 = math.exp %75 : vector<2x128xf32>
      %cst_36 = arith.constant 1.000000e+00 : f32
      %77 = vector.broadcast %cst_36 : f32 to vector<2x128xf32>
      %78 = arith.addf %77, %76 : vector<2x128xf32>
      %79 = arith.divf %77, %78 : vector<2x128xf32>
      %c0_37 = arith.constant 0 : index
      %c0_38 = arith.constant 0 : index
      %80 = vector.load %arg8[%c0_37, %c0_38] : memref<2x128xf32, #tpu.memory_space<vmem>>, vector<2x128xf32>
      %81 = arith.mulf %71, %80 : vector<2x128xf32>
      %82 = arith.mulf %65, %73 : vector<2x128xf32>
      %83 = arith.addf %81, %82 : vector<2x128xf32>
      %84 = math.tanh %83 : vector<2x128xf32>
      %85 = arith.mulf %79, %84 : vector<2x128xf32>
      %c0_39 = arith.constant 0 : index
      %c0_40 = arith.constant 0 : index
      %86 = vector.load %arg8[%c0_39, %c0_40] : memref<2x128xf32, #tpu.memory_space<vmem>>, vector<2x128xf32>
      tpu.vector_store %arg8[%c0_39, %c0_40], %83 {strides = array<i32>} : memref<2x128xf32, #tpu.memory_space<vmem>>, vector<2x128xf32>,
      %c0_41 = arith.constant 0 : index
      %c0_42 = arith.constant 0 : index
      %87 = vector.load %arg7[%c0_41, %c0_42] : memref<2x128xf32, #tpu.memory_space<vmem>>, vector<2x128xf32>
      tpu.vector_store %arg7[%c0_41, %c0_42], %85 {strides = array<i32>} : memref<2x128xf32, #tpu.memory_space<vmem>>, vector<2x128xf32>,
      %88 = arith.truncf %85 : vector<2x128xf32> to vector<2x128xbf16>
      %c2_43 = arith.constant 2 : index
      %c0_44 = arith.constant 0 : index
      %c0_45 = arith.constant 0 : index
      %89 = vector.load %arg4[%c2_43, %c0_44, %c0_45] : memref<4x2x128xbf16, #tpu.memory_space<vmem>>, vector<1x2x128xbf16>
      %90 = vector.shape_cast %89 : vector<1x2x128xbf16> to vector<2x128xbf16>
      %91 = vector.shape_cast %88 : vector<2x128xbf16> to vector<1x2x128xbf16>
      tpu.vector_store %arg4[%c2_43, %c0_44, %c0_45], %91 {strides = array<i32>} : memref<4x2x128xbf16, #tpu.memory_space<vmem>>, vector<1x2x128xbf16>,
      %c0_46 = arith.constant 0 : index
      %c1 = arith.constant 1 : index
      %c0_47 = arith.constant 0 : index
      %c0_48 = arith.constant 0 : index
      %92 = vector.load %arg2[%c0_46, %c1, %c0_47, %c0_48] : memref<1x4x2x512xf32, #tpu.memory_space<vmem>>, vector<1x1x2x512xf32>
      %93 = vector.shape_cast %92 : vector<1x1x2x512xf32> to vector<2x512xf32>
      %c0_49 = arith.constant 0 : index
      %c0_50 = arith.constant 0 : index
      %94 = vector.load %arg7[%c0_49, %c0_50] : memref<2x128xf32, #tpu.memory_space<vmem>>, vector<2x128xf32>
      %95 = arith.truncf %94 : vector<2x128xf32> to vector<2x128xbf16>
      %c0_51 = arith.constant 0 : index
      %c0_52 = arith.constant 0 : index
      %c0_53 = arith.constant 0 : index
      %96 = vector.load %arg3[%c0_51, %c0_52, %c0_53] : memref<1x128x512xbf16, #tpu.memory_space<vmem>>, vector<1x128x512xbf16>
      %97 = vector.shape_cast %96 : vector<1x128x512xbf16> to vector<128x512xbf16>
      %cst_54 = arith.constant dense<0.000000e+00> : vector<2x512xf32>
      %98 = tpu.matmul %95, %97, %cst_54 {dimension_numbers = #tpu.dot_dimension_numbers<[1], [0], [0], [1], [0, 0, 1, 1], [], []>} : vector<2x128xbf16>, vector<128x512xbf16>, vector<2x512xf32> -> vector<2x512xf32>
      %99 = arith.addf %93, %98 : vector<2x512xf32>
      %100 = vector.extract_strided_slice %99 {offsets = [0, 0], sizes = [2, 128], strides = [1, 1]} : vector<2x512xf32> to vector<2x128xf32>
      %101 = arith.negf %100 : vector<2x128xf32>
      %102 = math.exp %101 : vector<2x128xf32>
      %cst_55 = arith.constant 1.000000e+00 : f32
      %103 = vector.broadcast %cst_55 : f32 to vector<2x128xf32>
      %104 = arith.addf %103, %102 : vector<2x128xf32>
      %105 = arith.divf %103, %104 : vector<2x128xf32>
      %106 = vector.extract_strided_slice %99 {offsets = [0, 128], sizes = [2, 128], strides = [1, 1]} : vector<2x512xf32> to vector<2x128xf32>
      %107 = arith.negf %106 : vector<2x128xf32>
      %108 = math.exp %107 : vector<2x128xf32>
      %cst_56 = arith.constant 1.000000e+00 : f32
      %109 = vector.broadcast %cst_56 : f32 to vector<2x128xf32>
      %110 = arith.addf %109, %108 : vector<2x128xf32>
      %111 = arith.divf %109, %110 : vector<2x128xf32>
      %112 = vector.extract_strided_slice %99 {offsets = [0, 256], sizes = [2, 128], strides = [1, 1]} : vector<2x512xf32> to vector<2x128xf32>
      %113 = math.tanh %112 : vector<2x128xf32>
      %114 = vector.extract_strided_slice %99 {offsets = [0, 384], sizes = [2, 128], strides = [1, 1]} : vector<2x512xf32> to vector<2x128xf32>
      %115 = arith.negf %114 : vector<2x128xf32>
      %116 = math.exp %115 : vector<2x128xf32>
      %cst_57 = arith.constant 1.000000e+00 : f32
      %117 = vector.broadcast %cst_57 : f32 to vector<2x128xf32>
      %118 = arith.addf %117, %116 : vector<2x128xf32>
      %119 = arith.divf %117, %118 : vector<2x128xf32>
      %c0_58 = arith.constant 0 : index
      %c0_59 = arith.constant 0 : index
      %120 = vector.load %arg8[%c0_58, %c0_59] : memref<2x128xf32, #tpu.memory_space<vmem>>, vector<2x128xf32>
      %121 = arith.mulf %111, %120 : vector<2x128xf32>
      %122 = arith.mulf %105, %113 : vector<2x128xf32>
      %123 = arith.addf %121, %122 : vector<2x128xf32>
      %124 = math.tanh %123 : vector<2x128xf32>
      %125 = arith.mulf %119, %124 : vector<2x128xf32>
      %c0_60 = arith.constant 0 : index
      %c0_61 = arith.constant 0 : index
      %126 = vector.load %arg8[%c0_60, %c0_61] : memref<2x128xf32, #tpu.memory_space<vmem>>, vector<2x128xf32>
      tpu.vector_store %arg8[%c0_60, %c0_61], %123 {strides = array<i32>} : memref<2x128xf32, #tpu.memory_space<vmem>>, vector<2x128xf32>,
      %c0_62 = arith.constant 0 : index
      %c0_63 = arith.constant 0 : index
      %127 = vector.load %arg7[%c0_62, %c0_63] : memref<2x128xf32, #tpu.memory_space<vmem>>, vector<2x128xf32>
      tpu.vector_store %arg7[%c0_62, %c0_63], %125 {strides = array<i32>} : memref<2x128xf32, #tpu.memory_space<vmem>>, vector<2x128xf32>,
      %128 = arith.truncf %125 : vector<2x128xf32> to vector<2x128xbf16>
      %c1_64 = arith.constant 1 : index
      %c0_65 = arith.constant 0 : index
      %c0_66 = arith.constant 0 : index
      %129 = vector.load %arg4[%c1_64, %c0_65, %c0_66] : memref<4x2x128xbf16, #tpu.memory_space<vmem>>, vector<1x2x128xbf16>
      %130 = vector.shape_cast %129 : vector<1x2x128xbf16> to vector<2x128xbf16>
      %131 = vector.shape_cast %128 : vector<2x128xbf16> to vector<1x2x128xbf16>
      tpu.vector_store %arg4[%c1_64, %c0_65, %c0_66], %131 {strides = array<i32>} : memref<4x2x128xbf16, #tpu.memory_space<vmem>>, vector<1x2x128xbf16>,
      %c0_67 = arith.constant 0 : index
      %c0_68 = arith.constant 0 : index
      %c0_69 = arith.constant 0 : index
      %c0_70 = arith.constant 0 : index
      %132 = vector.load %arg2[%c0_67, %c0_68, %c0_69, %c0_70] : memref<1x4x2x512xf32, #tpu.memory_space<vmem>>, vector<1x1x2x512xf32>
      %133 = vector.shape_cast %132 : vector<1x1x2x512xf32> to vector<2x512xf32>
      %c0_71 = arith.constant 0 : index
      %c0_72 = arith.constant 0 : index
      %134 = vector.load %arg7[%c0_71, %c0_72] : memref<2x128xf32, #tpu.memory_space<vmem>>, vector<2x128xf32>
      %135 = arith.truncf %134 : vector<2x128xf32> to vector<2x128xbf16>
      %c0_73 = arith.constant 0 : index
      %c0_74 = arith.constant 0 : index
      %c0_75 = arith.constant 0 : index
      %136 = vector.load %arg3[%c0_73, %c0_74, %c0_75] : memref<1x128x512xbf16, #tpu.memory_space<vmem>>, vector<1x128x512xbf16>
      %137 = vector.shape_cast %136 : vector<1x128x512xbf16> to vector<128x512xbf16>
      %cst_76 = arith.constant dense<0.000000e+00> : vector<2x512xf32>
      %138 = tpu.matmul %135, %137, %cst_76 {dimension_numbers = #tpu.dot_dimension_numbers<[1], [0], [0], [1], [0, 0, 1, 1], [], []>} : vector<2x128xbf16>, vector<128x512xbf16>, vector<2x512xf32> -> vector<2x512xf32>
      %139 = arith.addf %133, %138 : vector<2x512xf32>
      %140 = vector.extract_strided_slice %139 {offsets = [0, 0], sizes = [2, 128], strides = [1, 1]} : vector<2x512xf32> to vector<2x128xf32>
      %141 = arith.negf %140 : vector<2x128xf32>
      %142 = math.exp %141 : vector<2x128xf32>
      %cst_77 = arith.constant 1.000000e+00 : f32
      %143 = vector.broadcast %cst_77 : f32 to vector<2x128xf32>
      %144 = arith.addf %143, %142 : vector<2x128xf32>
      %145 = arith.divf %143, %144 : vector<2x128xf32>
      %146 = vector.extract_strided_slice %139 {offsets = [0, 128], sizes = [2, 128], strides = [1, 1]} : vector<2x512xf32> to vector<2x128xf32>
      %147 = arith.negf %146 : vector<2x128xf32>
      %148 = math.exp %147 : vector<2x128xf32>
      %cst_78 = arith.constant 1.000000e+00 : f32
      %149 = vector.broadcast %cst_78 : f32 to vector<2x128xf32>
      %150 = arith.addf %149, %148 : vector<2x128xf32>
      %151 = arith.divf %149, %150 : vector<2x128xf32>
      %152 = vector.extract_strided_slice %139 {offsets = [0, 256], sizes = [2, 128], strides = [1, 1]} : vector<2x512xf32> to vector<2x128xf32>
      %153 = math.tanh %152 : vector<2x128xf32>
      %154 = vector.extract_strided_slice %139 {offsets = [0, 384], sizes = [2, 128], strides = [1, 1]} : vector<2x512xf32> to vector<2x128xf32>
      %155 = arith.negf %154 : vector<2x128xf32>
      %156 = math.exp %155 : vector<2x128xf32>
      %cst_79 = arith.constant 1.000000e+00 : f32
      %157 = vector.broadcast %cst_79 : f32 to vector<2x128xf32>
      %158 = arith.addf %157, %156 : vector<2x128xf32>
      %159 = arith.divf %157, %158 : vector<2x128xf32>
      %c0_80 = arith.constant 0 : index
      %c0_81 = arith.constant 0 : index
      %160 = vector.load %arg8[%c0_80, %c0_81] : memref<2x128xf32, #tpu.memory_space<vmem>>, vector<2x128xf32>
      %161 = arith.mulf %151, %160 : vector<2x128xf32>
      %162 = arith.mulf %145, %153 : vector<2x128xf32>
      %163 = arith.addf %161, %162 : vector<2x128xf32>
      %164 = math.tanh %163 : vector<2x128xf32>
      %165 = arith.mulf %159, %164 : vector<2x128xf32>
      %c0_82 = arith.constant 0 : index
      %c0_83 = arith.constant 0 : index
      %166 = vector.load %arg8[%c0_82, %c0_83] : memref<2x128xf32, #tpu.memory_space<vmem>>, vector<2x128xf32>
      tpu.vector_store %arg8[%c0_82, %c0_83], %163 {strides = array<i32>} : memref<2x128xf32, #tpu.memory_space<vmem>>, vector<2x128xf32>,
      %c0_84 = arith.constant 0 : index
      %c0_85 = arith.constant 0 : index
      %167 = vector.load %arg7[%c0_84, %c0_85] : memref<2x128xf32, #tpu.memory_space<vmem>>, vector<2x128xf32>
      tpu.vector_store %arg7[%c0_84, %c0_85], %165 {strides = array<i32>} : memref<2x128xf32, #tpu.memory_space<vmem>>, vector<2x128xf32>,
      %168 = arith.truncf %165 : vector<2x128xf32> to vector<2x128xbf16>
      %c0_86 = arith.constant 0 : index
      %c0_87 = arith.constant 0 : index
      %c0_88 = arith.constant 0 : index
      %169 = vector.load %arg4[%c0_86, %c0_87, %c0_88] : memref<4x2x128xbf16, #tpu.memory_space<vmem>>, vector<1x2x128xbf16>
      %170 = vector.shape_cast %169 : vector<1x2x128xbf16> to vector<2x128xbf16>
      %171 = vector.shape_cast %168 : vector<2x128xbf16> to vector<1x2x128xbf16>
      tpu.vector_store %arg4[%c0_86, %c0_87, %c0_88], %171 {strides = array<i32>} : memref<4x2x128xbf16, #tpu.memory_space<vmem>>, vector<1x2x128xbf16>,
    } else {
    }
    %c1_i32_4 = arith.constant 1 : i32
    %9 = arith.cmpi eq, %arg1, %c1_i32_4 : i32
    %10 = arith.extui %9 : i1 to i32
    %c0_i32_5 = arith.constant 0 : i32
    %11 = arith.cmpi ne, %10, %c0_i32_5 : i32
    scf.if %11 {
      %c0 = arith.constant 0 : index
      %c0_6 = arith.constant 0 : index
      %12 = vector.load %arg7[%c0, %c0_6] : memref<2x128xf32, #tpu.memory_space<vmem>>, vector<2x128xf32>
      %c0_7 = arith.constant 0 : index
      %c0_8 = arith.constant 0 : index
      %13 = vector.load %arg5[%c0_7, %c0_8] : memref<2x128xf32, #tpu.memory_space<vmem>>, vector<2x128xf32>
      tpu.vector_store %arg5[%c0_7, %c0_8], %12 {strides = array<i32>} : memref<2x128xf32, #tpu.memory_space<vmem>>, vector<2x128xf32>,
      %c0_9 = arith.constant 0 : index
      %c0_10 = arith.constant 0 : index
      %14 = vector.load %arg8[%c0_9, %c0_10] : memref<2x128xf32, #tpu.memory_space<vmem>>, vector<2x128xf32>
      %c0_11 = arith.constant 0 : index
      %c0_12 = arith.constant 0 : index
      %15 = vector.load %arg6[%c0_11, %c0_12] : memref<2x128xf32, #tpu.memory_space<vmem>>, vector<2x128xf32>
      tpu.vector_store %arg6[%c0_11, %c0_12], %14 {strides = array<i32>} : memref<2x128xf32, #tpu.memory_space<vmem>>, vector<2x128xf32>,
    } else {
    }
    return
  }
  func.func @transform_0(%arg0: i32, %arg1: i32) -> (i32, i32, i32, i32) {
    %c1_i32 = arith.constant 1 : i32
    %0 = arith.muli %arg0, %c1_i32 : i32
    %c2_i32 = arith.constant 2 : i32
    %1 = arith.muli %c2_i32, %arg0 : i32
    %c1_i32_0 = arith.constant 1 : i32
    %2 = arith.subi %c1_i32_0, %1 : i32
    %3 = arith.muli %2, %arg1 : i32
    %4 = arith.addi %0, %3 : i32
    %c0_i32 = arith.constant 0 : i32
    %c0_i32_1 = arith.constant 0 : i32
    %c0_i32_2 = arith.constant 0 : i32
    return %arg0, %4, %c0_i32, %c0_i32_1 : i32, i32, i32, i32
  }
  func.func @transform_1(%arg0: i32, %arg1: i32) -> (i32, i32, i32) {
    %c0_i32 = arith.constant 0 : i32
    %c0_i32_0 = arith.constant 0 : i32
    %c0_i32_1 = arith.constant 0 : i32
    return %arg0, %c0_i32, %c0_i32_0 : i32, i32, i32
  }
  func.func @transform_2(%arg0: i32, %arg1: i32) -> (i32, i32, i32) {
    %c1_i32 = arith.constant 1 : i32
    %0 = arith.muli %arg0, %c1_i32 : i32
    %c2_i32 = arith.constant 2 : i32
    %1 = arith.muli %c2_i32, %arg0 : i32
    %c1_i32_0 = arith.constant 1 : i32
    %2 = arith.subi %c1_i32_0, %1 : i32
    %3 = arith.muli %2, %arg1 : i32
    %4 = arith.addi %0, %3 : i32
    %c0_i32 = arith.constant 0 : i32
    %c0_i32_1 = arith.constant 0 : i32
    return %4, %c0_i32, %arg0 : i32, i32, i32
  }
  func.func @transform_3(%arg0: i32, %arg1: i32) -> (i32, i32) {
    %c0_i32 = arith.constant 0 : i32
    %c0_i32_0 = arith.constant 0 : i32
    return %c0_i32, %arg0 : i32, i32
  }
  func.func @transform_4(%arg0: i32, %arg1: i32) -> (i32, i32) {
    %c0_i32 = arith.constant 0 : i32
    %c0_i32_0 = arith.constant 0 : i32
    return %c0_i32, %arg0 : i32, i32
  }
}

module attributes {stable_mosaic.version = 11 : i64} {
  func.func @dual_linear_kernel(%arg0: i32, %arg1: memref<1x2x256xf32, #tpu.memory_space<vmem>>, %arg2: memref<1x256x128xf32, #tpu.memory_space<vmem>>, %arg3: memref<1x1x128xf32, #tpu.memory_space<vmem>>, %arg4: memref<1x2x128xf32, #tpu.memory_space<vmem>>) attributes {dimension_semantics = [#tpu.dimension_semantics<parallel>], iteration_bounds = array<i64: 2>, scalar_prefetch = 0 : i64, scratch_operands = 0 : i64, tpu.core_type = #tpu.core_type<tc>, window_params = [{transform_indices = @transform_0, window_bounds = array<i64: 1, 2, 256>}, {transform_indices = @transform_1, window_bounds = array<i64: 1, 256, 128>}, {transform_indices = @transform_2, window_bounds = array<i64: 1, 1, 128>}, {transform_indices = @transform_3, window_bounds = array<i64: 1, 2, 128>}]} {
    %c0 = arith.constant 0 : index
    %c0_0 = arith.constant 0 : index
    %c0_1 = arith.constant 0 : index
    %0 = vector.load %arg1[%c0, %c0_0, %c0_1] : memref<1x2x256xf32, #tpu.memory_space<vmem>>, vector<1x2x256xf32>
    %1 = vector.shape_cast %0 : vector<1x2x256xf32> to vector<2x256xf32>
    %c0_2 = arith.constant 0 : index
    %c0_3 = arith.constant 0 : index
    %c0_4 = arith.constant 0 : index
    %2 = vector.load %arg2[%c0_2, %c0_3, %c0_4] : memref<1x256x128xf32, #tpu.memory_space<vmem>>, vector<1x256x128xf32>
    %3 = vector.shape_cast %2 : vector<1x256x128xf32> to vector<256x128xf32>
    %cst = arith.constant dense<0.000000e+00> : vector<2x128xf32>
    %4 = tpu.matmul %1, %3, %cst {dimension_numbers = #tpu.dot_dimension_numbers<[1], [0], [0], [1], [0, 0, 1, 1], [], []>} : vector<2x256xf32>, vector<256x128xf32>, vector<2x128xf32> -> vector<2x128xf32>
    %c0_5 = arith.constant 0 : index
    %c0_6 = arith.constant 0 : index
    %c0_7 = arith.constant 0 : index
    %5 = vector.load %arg3[%c0_5, %c0_6, %c0_7] : memref<1x1x128xf32, #tpu.memory_space<vmem>>, vector<1x1x128xf32>
    %6 = vector.shape_cast %5 : vector<1x1x128xf32> to vector<1x128xf32>
    %7 = vector.broadcast %6 : vector<1x128xf32> to vector<2x128xf32>
    %8 = arith.addf %4, %7 : vector<2x128xf32>
    %c0_8 = arith.constant 0 : index
    %c0_9 = arith.constant 0 : index
    %c0_10 = arith.constant 0 : index
    %9 = vector.load %arg4[%c0_8, %c0_9, %c0_10] : memref<1x2x128xf32, #tpu.memory_space<vmem>>, vector<1x2x128xf32>
    %10 = vector.shape_cast %9 : vector<1x2x128xf32> to vector<2x128xf32>
    %11 = vector.shape_cast %8 : vector<2x128xf32> to vector<1x2x128xf32>
    tpu.vector_store %arg4[%c0_8, %c0_9, %c0_10], %11 {strides = array<i32>} : memref<1x2x128xf32, #tpu.memory_space<vmem>>, vector<1x2x128xf32>,
    return
  }
  func.func @transform_0(%arg0: i32) -> (i32, i32, i32) {
    %c0_i32 = arith.constant 0 : i32
    %c0_i32_0 = arith.constant 0 : i32
    %c0_i32_1 = arith.constant 0 : i32
    return %arg0, %c0_i32, %c0_i32_0 : i32, i32, i32
  }
  func.func @transform_1(%arg0: i32) -> (i32, i32, i32) {
    %c0_i32 = arith.constant 0 : i32
    %c0_i32_0 = arith.constant 0 : i32
    %c0_i32_1 = arith.constant 0 : i32
    return %arg0, %c0_i32, %c0_i32_0 : i32, i32, i32
  }
  func.func @transform_2(%arg0: i32) -> (i32, i32, i32) {
    %c0_i32 = arith.constant 0 : i32
    %c0_i32_0 = arith.constant 0 : i32
    %c0_i32_1 = arith.constant 0 : i32
    return %arg0, %c0_i32, %c0_i32_0 : i32, i32, i32
  }
  func.func @transform_3(%arg0: i32) -> (i32, i32, i32) {
    %c0_i32 = arith.constant 0 : i32
    %c0_i32_0 = arith.constant 0 : i32
    %c0_i32_1 = arith.constant 0 : i32
    return %arg0, %c0_i32, %c0_i32_0 : i32, i32, i32
  }
}

</mosaic_0001>

<bundles_post_ra>
// kernel: encoder_forward.7
= control target key start
LH: loop header
LB: loop body
LE: loop exit
PB: predicated region body
PF: predicated region fallthrough
CT: control target
= control target key end

     0   :  { %s982_s12 = smov 0   ;;  %s1079_s0 = inlined_call_operand.vmem [shape: bf16[16,256], index: 0, kind: input, shape index: {}]   ;;  %s1080_s1 = inlined_call_operand.vmem [shape: bf16[2,256,512], index: 1, kind: input, shape index: {}]   ;;  %s1081_s2 = inlined_call_operand.vmem [shape: f32[2,1,512], index: 2, kind: input, shape index: {}]   ;;  %s1082_s3 = inlined_call_operand.vmem [shape: f32[2,16,512], index: 3, kind: output, shape index: {}]  }
   0x1 LB: > { %s767_s13 = sadd.s32 4294967295, %s960_s12   ;;  %p771_p0 = scmp.ge.s32.totalorder %s960_s12, 1  ;;  %s960_s12 = sphi %s982_s12, %s13_s12  }
   0x2   : > { %p146_p1 = scmp.lt.s32.totalorder %s960_s12, 3 }
   0x4   : > { %p147_p2 = pnand %p771_p0, %p146_p1 }
   0x5   : > { %p174_p3 = scmp.lt.s32.totalorder (!%p147_p2), %s767_s13, 1 }
   0x6   : > { %150 = sbr.rel (%p147_p2) target bundleno = 281 (0x119), region = 32 }
   0xb   : > { %v953_v0 = vld [vmem:[%s1079_s0 + $0x4] ss:$8 sps:$4 sm:$0xff]   ;;  %s1084_s13 = smov (!%p174_p3, %s767_s13), 1 }
   0xc   : > { %638 = vmatprep.mubr.bf16.mxu0 %v953_v0  ;;  %681 = vmatprep.mubr.bf16.mxu1 %v953_v0  ;;  %s845_s16 = sshll.u32 %s1084_s13, 9  ;;  %s774_s22 = sshll.u32 %s1084_s13, 2 }
   0xd   : > { %s999_s19 = scalar_lea.vmem %s1080_s1, %s845_s16  ;;  %s182_s25 = scalar_lea.vmem %s1081_s2, %s774_s22 }
   0xe   : > { %v855_v1 = vld [vmem:[%s999_s19 + $0xe4] ss:$16 sps:$4 sm:$0xff]   ;;  %v857_v2 = vld [vmem:[%s999_s19 + $0xec] ss:$16 sps:$4 sm:$0xff]   ;;  %v859_v3 = vld [vmem:[%s999_s19 + $0xe0] ss:$16 sps:$4 sm:$0xff]  }
   0xf   : > { %606 = vmatprep.subr.bf16.mxu0 %v855_v1  ;;  %v860_v4 = vld [vmem:[%s999_s19 + $0xe8] ss:$16 sps:$4 sm:$0xff]   ;;  %649 = vmatprep.subr.bf16.mxu1 %v857_v2  ;;  %v861_v5 = vld [vmem:[%s999_s19 + $0xc4] ss:$16 sps:$4 sm:$0xff]   ;;  %v863_v6 = vld [vmem:[%s999_s19 + $0xcc] ss:$16 sps:$4 sm:$0xff]   ;;  %v256_v2 = vlaneseq }
  0x10   : > { %607 = vmatpush1.bf16.msra.mxu0 %v859_v3  ;;  %650 = vmatpush1.bf16.msra.mxu1 %v860_v4  ;;  %v865_v7 = vld [vmem:[%s999_s19 + $0xc0] ss:$16 sps:$4 sm:$0xff]   ;;  %v866_v8 = vld [vmem:[%s999_s19 + $0xc8] ss:$16 sps:$4 sm:$0xff]   ;;  %v867_v9 = vld [vmem:[%s999_s19 + $0xa4] ss:$16 sps:$4 sm:$0xff]  }
  0x11   : > { %608 = vmatprep.subr.bf16.mxu0 %v861_v5  ;;  %651 = vmatprep.subr.bf16.mxu1 %v863_v6  ;;  %v869_v10 = vld [vmem:[%s999_s19 + $0xac] ss:$16 sps:$4 sm:$0xff]   ;;  %v871_v11 = vld [vmem:[%s999_s19 + $0xa0] ss:$16 sps:$4 sm:$0xff]   ;;  %v872_v12 = vld [vmem:[%s999_s19 + $0xa8] ss:$16 sps:$4 sm:$0xff]  }
  0x12   : > { %v873_v13 = vld [vmem:[%s999_s19 + $0x84] ss:$16 sps:$4 sm:$0xff]   ;;  %v875_v14 = vld [vmem:[%s999_s19 + $0x8c] ss:$16 sps:$4 sm:$0xff]   ;;  %v877_v15 = vld [vmem:[%s999_s19 + $0x80] ss:$16 sps:$4 sm:$0xff]  }
  0x13   : > { %v878_v16 = vld [vmem:[%s999_s19 + $0x88] ss:$16 sps:$4 sm:$0xff]   ;;  %v879_v17 = vld [vmem:[%s999_s19 + $0x64] ss:$16 sps:$4 sm:$0xff]   ;;  %v881_v18 = vld [vmem:[%s999_s19 + $0x6c] ss:$16 sps:$4 sm:$0xff]  }
  0x14   : > { %609 = vmatpush1.bf16.msra.mxu0 %v865_v7  ;;  %652 = vmatpush1.bf16.msra.mxu1 %v866_v8  ;;  %v883_v19 = vld [vmem:[%s999_s19 + $0x60] ss:$16 sps:$4 sm:$0xff]   ;;  %v884_v20 = vld [vmem:[%s999_s19 + $0x68] ss:$16 sps:$4 sm:$0xff]   ;;  %v885_v21 = vld [vmem:[%s999_s19 + $0x44] ss:$16 sps:$4 sm:$0xff]  }
  0x15   : > { %610 = vmatprep.subr.bf16.mxu0 %v867_v9  ;;  %653 = vmatprep.subr.bf16.mxu1 %v869_v10  ;;  %v887_v22 = vld [vmem:[%s999_s19 + $0x4c] ss:$16 sps:$4 sm:$0xff]   ;;  %v889_v23 = vld [vmem:[%s999_s19 + $0x40] ss:$16 sps:$4 sm:$0xff]   ;;  %v890_v24 = vld [vmem:[%s999_s19 + $0x48] ss:$16 sps:$4 sm:$0xff]  }
  0x16   : > { %v891_v25 = vld [vmem:[%s999_s19 + $0x24] ss:$16 sps:$4 sm:$0xff]   ;;  %v893_v26 = vld [vmem:[%s999_s19 + $0x2c] ss:$16 sps:$4 sm:$0xff]   ;;  %v895_v27 = vld [vmem:[%s999_s19 + $0x20] ss:$16 sps:$4 sm:$0xff]  }
  0x17   : > { %v896_v28 = vld [vmem:[%s999_s19 + $0x28] ss:$16 sps:$4 sm:$0xff]   ;;  %v897_v29 = vld [vmem:[%s999_s19 + $0x4] ss:$16 sps:$4 sm:$0xff]   ;;  %v899_v30 = vld [vmem:[%s999_s19 + $0xc] ss:$16 sps:$4 sm:$0xff]  }
  0x18   : > { %611 = vmatpush1.bf16.msra.mxu0 %v871_v11  ;;  %654 = vmatpush1.bf16.msra.mxu1 %v872_v12  ;;  %v901_v31 = vld [vmem:[%s999_s19] ss:$16 sps:$4 sm:$0xff]   ;;  %v902_v32 = vld [vmem:[%s999_s19 + $0x8] ss:$16 sps:$4 sm:$0xff]   ;;  %v903_v33 = vld [vmem:[%s999_s19 + $0x1e4] ss:$16 sps:$4 sm:$0xff]  }
  0x19   : > { %612 = vmatprep.subr.bf16.mxu0 %v873_v13  ;;  %655 = vmatprep.subr.bf16.mxu1 %v875_v14  ;;  %v905_v34 = vld [vmem:[%s999_s19 + $0x1ec] ss:$16 sps:$4 sm:$0xff]   ;;  %v907_v35 = vld [vmem:[%s999_s19 + $0x1e0] ss:$16 sps:$4 sm:$0xff]   ;;  %v908_v36 = vld [vmem:[%s999_s19 + $0x1e8] ss:$16 sps:$4 sm:$0xff]  }
  0x1a   : > { %v909_v37 = vld [vmem:[%s999_s19 + $0x1c4] ss:$16 sps:$4 sm:$0xff]   ;;  %v911_v38 = vld [vmem:[%s999_s19 + $0x1cc] ss:$16 sps:$4 sm:$0xff]   ;;  %v913_v39 = vld [vmem:[%s999_s19 + $0x1c0] ss:$16 sps:$4 sm:$0xff]  }
  0x1b   : > { %v914_v40 = vld [vmem:[%s999_s19 + $0x1c8] ss:$16 sps:$4 sm:$0xff]   ;;  %v915_v41 = vld [vmem:[%s999_s19 + $0x1a4] ss:$16 sps:$4 sm:$0xff]   ;;  %v917_v42 = vld [vmem:[%s999_s19 + $0x1ac] ss:$16 sps:$4 sm:$0xff]  }
  0x1c   : > { %613 = vmatpush1.bf16.msra.mxu0 %v877_v15  ;;  %656 = vmatpush1.bf16.msra.mxu1 %v878_v16  ;;  %v919_v43 = vld [vmem:[%s999_s19 + $0x1a0] ss:$16 sps:$4 sm:$0xff]   ;;  %v920_v44 = vld [vmem:[%s999_s19 + $0x1a8] ss:$16 sps:$4 sm:$0xff]   ;;  %v921_v45 = vld [vmem:[%s999_s19 + $0x184] ss:$16 sps:$4 sm:$0xff]  }
  0x1d   : > { %614 = vmatprep.subr.bf16.mxu0 %v879_v17  ;;  %657 = vmatprep.subr.bf16.mxu1 %v881_v18  ;;  %v923_v46 = vld [vmem:[%s999_s19 + $0x18c] ss:$16 sps:$4 sm:$0xff]   ;;  %v925_v47 = vld [vmem:[%s999_s19 + $0x180] ss:$16 sps:$4 sm:$0xff]   ;;  %v926_v48 = vld [vmem:[%s999_s19 + $0x188] ss:$16 sps:$4 sm:$0xff]  }
  0x1e   : > { %v927_v49 = vld [vmem:[%s999_s19 + $0x164] ss:$16 sps:$4 sm:$0xff]   ;;  %v929_v50 = vld [vmem:[%s999_s19 + $0x16c] ss:$16 sps:$4 sm:$0xff]   ;;  %v931_v51 = vld [vmem:[%s999_s19 + $0x160] ss:$16 sps:$4 sm:$0xff]  }
  0x1f   : > { %v932_v52 = vld [vmem:[%s999_s19 + $0x168] ss:$16 sps:$4 sm:$0xff]   ;;  %v933_v53 = vld [vmem:[%s999_s19 + $0x144] ss:$16 sps:$4 sm:$0xff]   ;;  %v935_v54 = vld [vmem:[%s999_s19 + $0x14c] ss:$16 sps:$4 sm:$0xff]  }
  0x20   : > { %615 = vmatpush1.bf16.msra.mxu0 %v883_v19  ;;  %658 = vmatpush1.bf16.msra.mxu1 %v884_v20  ;;  %v937_v55 = vld [vmem:[%s999_s19 + $0x140] ss:$16 sps:$4 sm:$0xff]   ;;  %v938_v56 = vld [vmem:[%s999_s19 + $0x148] ss:$16 sps:$4 sm:$0xff]   ;;  %v939_v57 = vld [vmem:[%s999_s19 + $0x124] ss:$16 sps:$4 sm:$0xff]  }
  0x21   : > { %616 = vmatprep.subr.bf16.mxu0 %v885_v21  ;;  %659 = vmatprep.subr.bf16.mxu1 %v887_v22  ;;  %v941_v58 = vld [vmem:[%s999_s19 + $0x12c] ss:$16 sps:$4 sm:$0xff]   ;;  %v943_v59 = vld [vmem:[%s999_s19 + $0x120] ss:$16 sps:$4 sm:$0xff]   ;;  %v944_v60 = vld [vmem:[%s999_s19 + $0x128] ss:$16 sps:$4 sm:$0xff]  }
  0x22   : > { %v945_v61 = vld [vmem:[%s999_s19 + $0x104] ss:$16 sps:$4 sm:$0xff]   ;;  %v947_v62 = vld [vmem:[%s999_s19 + $0x10c] ss:$16 sps:$4 sm:$0xff]   ;;  %v949_v63 = vld [vmem:[%s999_s19 + $0x100] ss:$16 sps:$4 sm:$0xff]  }
  0x23   : > { %v950_v0 = vld [vmem:[%s999_s19 + $0x108] ss:$16 sps:$4 sm:$0xff]   ;;  %v257_v3 = vshrl.u32 %v256_v2, 7  ;;  %v254_v6 = vld [vmem:[%s182_s25] sm:$0xf]  ;;  %s846_s26 = sshll.u32 %s1084_s13, 6 }
  0x24   : > { %617 = vmatpush1.bf16.msra.mxu0 %v889_v23  ;;  %660 = vmatpush1.bf16.msra.mxu1 %v890_v24  ;;  %v951_v1 = vld [vmem:[%s1079_s0] ss:$8 sps:$4 sm:$0xff]   ;;  %s187_s29 = scalar_lea.vmem %s1082_s3, %s846_s26 }
  0x25   : > { %618 = vmatprep.subr.bf16.mxu0 %v891_v25  ;;  %661 = vmatprep.subr.bf16.mxu1 %v893_v26  ;;  %v258_v4 = vsub.s32 0, %v257_v3  ;;  %v266_v5 = vsub.s32 2, %v257_v3  ;;  %v262_v7 = vsub.s32 1, %v257_v3  ;;  %v270_v8 = vsub.s32 3, %v257_v3 }
  0x27   : > { %v259_v9 = vrot.slane %v254_v6, %v258_v4  ;;  %v267_v10 = vrot.slane %v254_v6, %v266_v5  ;;  %v263_v11 = vrot.slane %v254_v6, %v262_v7  ;;  %v271_v12 = vrot.slane %v254_v6, %v270_v8 }
  0x28   : > { %619 = vmatpush1.bf16.msra.mxu0 %v895_v27  ;;  %662 = vmatpush1.bf16.msra.mxu1 %v896_v28 }
  0x29   : > { %620 = vmatprep.subr.bf16.mxu0 %v897_v29  ;;  %663 = vmatprep.subr.bf16.mxu1 %v899_v30 }
  0x2c   : > { %621 = vmatpush1.bf16.msra.mxu0 %v901_v31  ;;  %664 = vmatpush1.bf16.msra.mxu1 %v902_v32 }
  0x2d   : > { %622 = vmatprep.subr.bf16.mxu0 %v903_v33  ;;  %665 = vmatprep.subr.bf16.mxu1 %v905_v34 }
  0x30   : > { %623 = vmatpush2.bf16.msra.mxu0 %v907_v35  ;;  %666 = vmatpush2.bf16.msra.mxu1 %v908_v36 }
  0x31   : > { %624 = vmatprep.subr.bf16.mxu0 %v909_v37  ;;  %667 = vmatprep.subr.bf16.mxu1 %v911_v38 }
  0x34   : > { %625 = vmatpush2.bf16.msra.mxu0 %v913_v39  ;;  %668 = vmatpush2.bf16.msra.mxu1 %v914_v40 }
  0x35   : > { %626 = vmatprep.subr.bf16.mxu0 %v915_v41  ;;  %669 = vmatprep.subr.bf16.mxu1 %v917_v42 }
  0x38   : > { %627 = vmatpush2.bf16.msra.mxu0 %v919_v43  ;;  %670 = vmatpush2.bf16.msra.mxu1 %v920_v44 }
  0x39   : > { %628 = vmatprep.subr.bf16.mxu0 %v921_v45  ;;  %671 = vmatprep.subr.bf16.mxu1 %v923_v46 }
  0x3c   : > { %629 = vmatpush2.bf16.msra.mxu0 %v925_v47  ;;  %672 = vmatpush2.bf16.msra.mxu1 %v926_v48 }
  0x3d   : > { %630 = vmatprep.subr.bf16.mxu0 %v927_v49  ;;  %673 = vmatprep.subr.bf16.mxu1 %v929_v50 }
  0x40   : > { %631 = vmatpush2.bf16.msra.mxu0 %v931_v51  ;;  %674 = vmatpush2.bf16.msra.mxu1 %v932_v52 }
  0x41   : > { %632 = vmatprep.subr.bf16.mxu0 %v933_v53  ;;  %675 = vmatprep.subr.bf16.mxu1 %v935_v54 }
  0x44   : > { %633 = vmatpush2.bf16.msra.mxu0 %v937_v55  ;;  %676 = vmatpush2.bf16.msra.mxu1 %v938_v56 }
  0x45   : > { %634 = vmatprep.subr.bf16.mxu0 %v939_v57  ;;  %677 = vmatprep.subr.bf16.mxu1 %v941_v58 }
  0x48   : > { %635 = vmatpush2.bf16.msra.mxu0 %v943_v59  ;;  %678 = vmatpush2.bf16.msra.mxu1 %v944_v60 }
  0x49   : > { %636 = vmatprep.subr.bf16.mxu0 %v945_v61  ;;  %679 = vmatprep.subr.bf16.mxu1 %v947_v62 }
  0x4c   : > { %637 = vmatpush2.bf16.msra.mxu0 %v949_v63  ;;  %680 = vmatpush2.bf16.msra.mxu1 %v950_v0 }
  0x4f   : > { %639 = vmatmul.mubr.bf16.vlgmr.msra.gmra.mxu0 %v951_v1  ;;  %682 = vmatmul.mubr.bf16.vlgmr.msra.gmra.mxu1 %v951_v1 }
 0x10f   : > { %v640_v13 = vpop.f32.mrf.mxu0  ;;  %v683_v14 = vpop.f32.mrf.mxu1 }
 0x110   : > { %v641_v15 = vadd.f32 %v640_v13, %v259_v9  ;;  %v684_v16 = vadd.f32 %v683_v14, %v267_v10 }
 0x111   : > { %v642_v17 = vpop.f32.mrf.mxu0  ;;  %v685_v18 = vpop.f32.mrf.mxu1 }
 0x112   : > { %692 = vst [vmem:[%s187_s29] sm:$0xff] %v641_v15  ;;  %694 = vst [vmem:[%s187_s29 + $0x10] sm:$0xff] %v684_v16  ;;  %v643_v19 = vadd.f32 %v642_v17, %v263_v11  ;;  %v686_v20 = vadd.f32 %v685_v18, %v271_v12 }
 0x113   : > { %v644_v21 = vpop.f32.mrf.mxu0  ;;  %v687_v22 = vpop.f32.mrf.mxu1 }
 0x114   : > { %693 = vst [vmem:[%s187_s29 + $0x8] sm:$0xff] %v643_v19  ;;  %695 = vst [vmem:[%s187_s29 + $0x18] sm:$0xff] %v686_v20  ;;  %v645_v23 = vadd.f32 %v644_v21, %v259_v9  ;;  %v688_v24 = vadd.f32 %v687_v22, %v267_v10 }
 0x115   : > { %v646_v25 = vpop.f32.mrf.mxu0  ;;  %v689_v26 = vpop.f32.mrf.mxu1 }
 0x116   : > { %696 = vst [vmem:[%s187_s29 + $0x20] sm:$0xff] %v645_v23  ;;  %698 = vst [vmem:[%s187_s29 + $0x30] sm:$0xff] %v688_v24  ;;  %v647_v27 = vadd.f32 %v646_v25, %v263_v11  ;;  %v690_v28 = vadd.f32 %v689_v26, %v271_v12 }
 0x118   : > { %697 = vst [vmem:[%s187_s29 + $0x28] sm:$0xff] %v647_v27  ;;  %699 = vst [vmem:[%s187_s29 + $0x38] sm:$0xff] %v690_v28 }
 0x119 PF: > { %s13_s12 = sadd.s32 1, %s960_s12  }
 0x11a   : > { %p10_p4 = scmp.ge.s32.totalorder %s13_s12, 4  }
 0x11c   :  { %12 = sbr.rel (!%p10_p4) target bundleno = 1 (0x1), region = 65 }

// kernel: encoder_forward.5
= control target key start
LH: loop header
LB: loop body
LE: loop exit
PB: predicated region body
PF: predicated region fallthrough
CT: control target
= control target key end

     0   :  { %8 = vsyncpa [#allocation3], 0  ;;  %s1091_s0 = inlined_call_operand.vmem [shape: bf16[16,128], index: 0, kind: input, shape index: {}]   ;;  %s1092_s1 = inlined_call_operand.hbm [shape: bf16[2,128,512], index: 1, kind: input, shape index: {}]   ;;  %s1093_s2 = inlined_call_operand.hbm [shape: f32[2,1,512], index: 2, kind: input, shape index: {}]   ;;  %s1094_s3 = inlined_call_operand.vmem [shape: f32[2,16,512], index: 3, kind: output, shape index: {}]  }
   0x1   :  { %10 = vsyncpa [#allocation3 + $0x1], 0 }
   0x2   :  { %11 = vsyncpa [#allocation5], 0 }
   0x3   :  { %13 = vsyncpa [#allocation5 + $0x1], 0  ;;  %s905_s12 = smov 0   ;;  %s907_s13 = smov 0  }
   0x4   :  { %s909_s14 = smov 0   ;;  %s911_s15 = smov 0  }
   0x5 LB: > { %s924_s16 = sadd.s32 4294967295, %s878_s15   ;;  %s927_s17 = sadd.s32 1, %s878_s15   ;;  %s878_s15 = sphi %s911_s15, %s1105_s15   ;;  %s874_s14 = sphi %s909_s14, %s1104_s14   ;;  %s870_s13 = sphi %s907_s13, %s1103_s13   ;;  %s866_s12 = sphi %s905_s12, %s1102_s12  }
   0x6   : > { %s44_s18 = ssub.s32 %s878_s15, %s927_s17  ;;  %s47_s19 = sadd.s32 1, %s874_s14 }
   0x7   : > { %p45_p0 = scmp.eq.s32.totalorder %s44_s18, 0  ;;  %p54_p1 = scmp.ne.s32.totalorder %s874_s14, %s870_s13 }
   0x8   : > { %p55_p2 = scmp.eq.s32.totalorder %s878_s15, 0  ;;  %p60_p3 = scmp.ne.s32.totalorder %s870_s13, %s866_s12 }
   0x9   : > { %s937_s20 = scalar_select %p45_p0, %s874_s14, %s47_s19  }
   0xa   : > { %p56_p4 = por %p55_p2, %p54_p1  ;;  %p61_p5 = scmp.eq.s32.totalorder %s924_s16, 0 }
   0xb   : > { %p699_p6 = scmp.lt.s32.totalorder %s878_s15, 2  ;;  %s946_s22 = sand.u32 1, %s874_s14  }
   0xc   : > { %p941_p7 = por %p61_p5, %p60_p3  ;;  %s639_s23 = sshll.u32 %s946_s22, 8 }
   0xd   : > { %s685_s24 = sshll.u32 %s878_s15, 12  ;;  %s143_s28 = scalar_lea.vmem [#allocation2], %s639_s23 }
   0xe   : > { %s1096_s21 = scalar_select %p941_p7, 1, 0 }
   0xf   : > { %s953_s27 = scalar_lea.hbm %s1092_s1, %s685_s24  ;;  %s150_s29 = sshll.u32 %s143_s28, 4  ;;  %s955_s29 = int_to_ptr.vmem [resolvable:$true] %s150_s29 }
  0x10   : > { %p957_p8 = pnand %p699_p6, %p56_p4  ;;  %s140_s4 = scalar_lea.sflag [#allocation3], %s946_s22 }
  0x11   : > { %s784_s5 = scalar_lea.hbm %s953_s27, 4096  ;;  %s789_s8 = scalar_lea.hbm %s1092_s1, 8192 }
  0x12   : > { %p785_p10 = scmp.ne.s32.totalorder %s953_s27, %s784_s5  ;;  %p786_p11 = pneg %p957_p8 }
  0x13   : > { %p790_p0 = scmp.lt.s32.totalorder %s953_s27, %s1092_s1  ;;  %p791_p1 = scmp.lt.s32.totalorder %s789_s8, %s784_s5 }
  0x14   : > { %p787_p12 = pnand %p786_p11, %p785_p10 }
  0x15   : > { %p792_p2 = por %p791_p1, %p790_p0 }
  0x16   : > { %p788_p13 = pneg %p787_p12 }
  0x18   : > { %p793_p3 = pnand %p792_p2, %p788_p13 }
  0x1a   : > { %796 = shalt.err (!%p793_p3)
}
  0x1b   : > { %s797_s11 = scalar_lea.vmem %s955_s29, 4096  ;;  %s880_s12 = smov [#allocation2]  }
  0x1c   : > { %p798_p4 = scmp.ne.s32.totalorder %s955_s29, %s797_s11  ;;  %s802_s18 = sshll.u32 %s880_s12, 4  ;;  %s803_s18 = int_to_ptr.vmem [resolvable:$false] %s802_s18 }
  0x1d   : > { %s804_s19 = scalar_lea.vmem %s803_s18, 8192  ;;  %p805_p10 = scmp.lt.s32.totalorder %s955_s29, %s803_s18 }
  0x1e   : > { %p800_p5 = pnand %p798_p4, %p786_p11  ;;  %p806_p12 = scmp.lt.s32.totalorder %s804_s19, %s797_s11 }
  0x20   : > { %p801_p6 = pneg %p800_p5  ;;  %p807_p9 = por %p806_p12, %p805_p10 }
  0x22   : > { %p808_p0 = pnand %p807_p9, %p801_p6 }
  0x24   : > { %811 = shalt.err (!%p808_p0)
}
  0x25   : > { %s881_s23 = smov 256   ;;  %s882_s24 = smov 16  }
  0x26   : > { %695 = dma.hbm_to_vmem [thread:$0]  (!%p957_p8), %s953_s27, 4096, %s955_s29, %s140_s4, %s881_s23, %s881_s23, %s882_s24  }
  0x27   : > { %p177_p13 = scmp.lt.s32.totalorder %s878_s15, 3  ;;  %s642_s25 = sshll.u32 %s946_s22, 2 }
  0x28   : > { %s686_s26 = sshll.u32 %s878_s15, 6  ;;  %p1098_p9 = scmp.ge.s32.totalorder %s878_s15, 1 }
  0x29   : > { %s1001_s7 = scalar_lea.hbm %s1093_s2, %s686_s26  ;;  %s164_s8 = scalar_lea.vmem [#allocation4], %s642_s25 }
  0x2a   : > { %p994_p1 = pnand %p1098_p9, %p177_p13  ;;  %s172_s9 = sshll.u32 %s164_s8, 4  ;;  %s173_s9 = int_to_ptr.vmem [resolvable:$true] %s172_s9 }
  0x2b   : > { %s161_s27 = scalar_lea.sflag [#allocation5], %s946_s22  ;;  %s812_s29 = scalar_lea.hbm %s1001_s7, 64 }
  0x2c   : > { %s1099_s28 = scalar_select %p994_p1, 1, 0 }
  0x2d   : > { %p813_p2 = scmp.ne.s32.totalorder %s1001_s7, %s812_s29  ;;  %s817_s10 = scalar_lea.hbm %s1093_s2, 128 }
  0x2e   : > { %p818_p5 = scmp.lt.s32.totalorder %s1001_s7, %s1093_s2  ;;  %p819_p6 = scmp.lt.s32.totalorder %s817_s10, %s812_s29 }
  0x2f   : > { %p815_p3 = pnand %p813_p2, %p786_p11 }
  0x30   : > { %p820_p10 = por %p819_p6, %p818_p5 }
  0x31   : > { %p816_p4 = pneg %p815_p3 }
  0x33   : > { %p821_p12 = pnand %p820_p10, %p816_p4 }
  0x35   : > { %824 = shalt.err (!%p821_p12)
}
  0x36   : > { %s825_s18 = scalar_lea.vmem %s173_s9, 64  ;;  %s883_s22 = smov [#allocation4]  }
  0x37   : > { %p826_p0 = scmp.ne.s32.totalorder %s173_s9, %s825_s18  ;;  %s830_s19 = sshll.u32 %s883_s22, 4  ;;  %s831_s19 = int_to_ptr.vmem [resolvable:$false] %s830_s19 }
  0x38   : > { %s832_s23 = scalar_lea.vmem %s831_s19, 128  ;;  %p833_p2 = scmp.lt.s32.totalorder %s173_s9, %s831_s19 }
  0x39   : > { %p828_p13 = pnand %p826_p0, %p786_p11  ;;  %p834_p3 = scmp.lt.s32.totalorder %s832_s23, %s825_s18 }
  0x3b   : > { %p829_p9 = pneg %p828_p13  ;;  %p835_p7 = por %p834_p3, %p833_p2 }
  0x3d   : > { %p836_p1 = pnand %p835_p7, %p829_p9 }
  0x3f   : > { %839 = shalt.err (!%p836_p1)
}
  0x40   : > { %698 = dma.hbm_to_vmem [thread:$0]  (!%p957_p8), %s1001_s7, 64, %s173_s9, %s161_s27  }
  0x41   : > { %p1100_p4 = scmp.ne.s32.totalorder %s1099_s28, 0 }
  0x42   : > { %s183_s24 = sand.u32 (!%p1100_p4), 1, %s870_s13   ;;  %p1101_p11 = scmp.ne.s32.totalorder (!%p1100_p4), %s1096_s21, 0 }
  0x43   : > { %181 = sbr.rel (%p1100_p4) target bundleno = 312 (0x138), region = 32  ;;  %s646_s25 = sshll.u32 (!%p1100_p4), %s183_s24, 8 }
  0x44   : > { %s184_s26 = scalar_lea.sflag (!%p1100_p4), [#allocation3], %s183_s24  ;;  %s1025_s5 = scalar_lea.vmem (!%p1100_p4), [#allocation2], %s646_s25 }
  0x48   : > { %857 = dma.done.wait (%p1101_p11), %s184_s26, 4096  }
  0x49   : > { %859 = vsyncadd (%p1101_p11), %s184_s26, 4294963200  ;;  %s647_s6 = sshll.u32 %s183_s24, 2  ;;  %s193_s30 = scalar_lea.sflag [#allocation5], %s183_s24 }
  0x4a   : > { %s1031_s8 = scalar_lea.vmem [#allocation4], %s647_s6 }
  0x4b   : > { %861 = dma.done.wait (%p1101_p11), %s193_s30, 64  }
  0x4c   : > { %863 = vsyncadd (%p1101_p11), %s193_s30, 4294967232  ;;  %v884_v0 = vmov 0   ;;  %v735_v1 = vld [vmem:[%s1025_s5 + $0xe4] ss:$16 sps:$4 sm:$0xff]   ;;  %v737_v2 = vld [vmem:[%s1025_s5 + $0xec] ss:$16 sps:$4 sm:$0xff]   ;;  %v266_v34 = vlaneseq }
  0x4d   : > { %484 = vmatprep.mubr.bf16.mxu0 %v884_v0  ;;  %527 = vmatprep.mubr.bf16.mxu1 %v884_v0  ;;  %v739_v3 = vld [vmem:[%s1025_s5 + $0xe0] ss:$16 sps:$4 sm:$0xff]   ;;  %v740_v4 = vld [vmem:[%s1025_s5 + $0xe8] ss:$16 sps:$4 sm:$0xff]   ;;  %v741_v5 = vld [vmem:[%s1025_s5 + $0xc4] ss:$16 sps:$4 sm:$0xff]  }
  0x4e   : > { %452 = vmatprep.subr.bf16.mxu0 %v735_v1  ;;  %495 = vmatprep.subr.bf16.mxu1 %v737_v2  ;;  %v743_v6 = vld [vmem:[%s1025_s5 + $0xcc] ss:$16 sps:$4 sm:$0xff]   ;;  %v745_v7 = vld [vmem:[%s1025_s5 + $0xc0] ss:$16 sps:$4 sm:$0xff]   ;;  %v746_v8 = vld [vmem:[%s1025_s5 + $0xc8] ss:$16 sps:$4 sm:$0xff]  }
  0x4f   : > { %453 = vmatpush1.bf16.msra.mxu0 %v739_v3  ;;  %496 = vmatpush1.bf16.msra.mxu1 %v740_v4  ;;  %v747_v9 = vld [vmem:[%s1025_s5 + $0xa4] ss:$16 sps:$4 sm:$0xff]   ;;  %v749_v10 = vld [vmem:[%s1025_s5 + $0xac] ss:$16 sps:$4 sm:$0xff]   ;;  %v751_v11 = vld [vmem:[%s1025_s5 + $0xa0] ss:$16 sps:$4 sm:$0xff]  }
  0x50   : > { %454 = vmatprep.subr.bf16.mxu0 %v741_v5  ;;  %497 = vmatprep.subr.bf16.mxu1 %v743_v6  ;;  %v752_v12 = vld [vmem:[%s1025_s5 + $0xa8] ss:$16 sps:$4 sm:$0xff]   ;;  %v753_v13 = vld [vmem:[%s1025_s5 + $0x84] ss:$16 sps:$4 sm:$0xff]   ;;  %v755_v14 = vld [vmem:[%s1025_s5 + $0x8c] ss:$16 sps:$4 sm:$0xff]  }
  0x51   : > { %v757_v15 = vld [vmem:[%s1025_s5 + $0x80] ss:$16 sps:$4 sm:$0xff]   ;;  %v758_v16 = vld [vmem:[%s1025_s5 + $0x88] ss:$16 sps:$4 sm:$0xff]   ;;  %v759_v17 = vld [vmem:[%s1025_s5 + $0x64] ss:$16 sps:$4 sm:$0xff]  }
  0x52   : > { %v761_v18 = vld [vmem:[%s1025_s5 + $0x6c] ss:$16 sps:$4 sm:$0xff]   ;;  %v763_v19 = vld [vmem:[%s1025_s5 + $0x60] ss:$16 sps:$4 sm:$0xff]   ;;  %v764_v20 = vld [vmem:[%s1025_s5 + $0x68] ss:$16 sps:$4 sm:$0xff]  }
  0x53   : > { %455 = vmatpush1.bf16.msra.mxu0 %v745_v7  ;;  %498 = vmatpush1.bf16.msra.mxu1 %v746_v8  ;;  %v765_v21 = vld [vmem:[%s1025_s5 + $0x44] ss:$16 sps:$4 sm:$0xff]   ;;  %v767_v22 = vld [vmem:[%s1025_s5 + $0x4c] ss:$16 sps:$4 sm:$0xff]   ;;  %v769_v23 = vld [vmem:[%s1025_s5 + $0x40] ss:$16 sps:$4 sm:$0xff]  }
  0x54   : > { %456 = vmatprep.subr.bf16.mxu0 %v747_v9  ;;  %499 = vmatprep.subr.bf16.mxu1 %v749_v10  ;;  %v770_v24 = vld [vmem:[%s1025_s5 + $0x48] ss:$16 sps:$4 sm:$0xff]   ;;  %v771_v25 = vld [vmem:[%s1025_s5 + $0x24] ss:$16 sps:$4 sm:$0xff]   ;;  %v773_v26 = vld [vmem:[%s1025_s5 + $0x2c] ss:$16 sps:$4 sm:$0xff]  }
  0x55   : > { %v775_v27 = vld [vmem:[%s1025_s5 + $0x20] ss:$16 sps:$4 sm:$0xff]   ;;  %v776_v28 = vld [vmem:[%s1025_s5 + $0x28] ss:$16 sps:$4 sm:$0xff]   ;;  %v777_v29 = vld [vmem:[%s1025_s5 + $0x4] ss:$16 sps:$4 sm:$0xff]  }
  0x56   : > { %v779_v30 = vld [vmem:[%s1025_s5 + $0xc] ss:$16 sps:$4 sm:$0xff]   ;;  %v781_v31 = vld [vmem:[%s1025_s5] ss:$16 sps:$4 sm:$0xff]   ;;  %v782_v32 = vld [vmem:[%s1025_s5 + $0x8] ss:$16 sps:$4 sm:$0xff]  }
  0x57   : > { %457 = vmatpush1.bf16.msra.mxu0 %v751_v11  ;;  %500 = vmatpush1.bf16.msra.mxu1 %v752_v12  ;;  %v783_v33 = vld [vmem:[%s1091_s0] sm:$0xff]   ;;  %p224_p7 = scmp.lt.s32.totalorder %s924_s16, 1  ;;  %v267_v35 = vshrl.u32 %v266_v34, 7 }
  0x58   : > { %458 = vmatprep.subr.bf16.mxu0 %v753_v13  ;;  %501 = vmatprep.subr.bf16.mxu1 %v755_v14  ;;  %v264_v38 = vld [vmem:[%s1031_s8] sm:$0xf] }
  0x59   : > { %s1107_s16 = smov (!%p224_p7, %s924_s16), 1  ;;  %v268_v36 = vsub.s32 0, %v267_v35  ;;  %v276_v37 = vsub.s32 2, %v267_v35  ;;  %v272_v39 = vsub.s32 1, %v267_v35  ;;  %v280_v40 = vsub.s32 3, %v267_v35 }
  0x5a   : > { %s687_s7 = sshll.u32 %s1107_s16, 6 }
  0x5b   : > { %459 = vmatpush1.bf16.msra.mxu0 %v757_v15  ;;  %502 = vmatpush1.bf16.msra.mxu1 %v758_v16  ;;  %v269_v41 = vrot.slane %v264_v38, %v268_v36  ;;  %v277_v42 = vrot.slane %v264_v38, %v276_v37  ;;  %v273_v43 = vrot.slane %v264_v38, %v272_v39  ;;  %s228_s29 = scalar_lea.vmem %s1094_s3, %s687_s7 }
  0x5c   : > { %460 = vmatprep.subr.bf16.mxu0 %v759_v17  ;;  %503 = vmatprep.subr.bf16.mxu1 %v761_v18  ;;  %v281_v44 = vrot.slane %v264_v38, %v280_v40 }
  0x5f   : > { %461 = vmatpush1.bf16.msra.mxu0 %v763_v19  ;;  %504 = vmatpush1.bf16.msra.mxu1 %v764_v20 }
  0x60   : > { %462 = vmatprep.subr.bf16.mxu0 %v765_v21  ;;  %505 = vmatprep.subr.bf16.mxu1 %v767_v22 }
  0x63   : > { %463 = vmatpush1.bf16.msra.mxu0 %v769_v23  ;;  %506 = vmatpush1.bf16.msra.mxu1 %v770_v24 }
  0x64   : > { %464 = vmatprep.subr.bf16.mxu0 %v771_v25  ;;  %507 = vmatprep.subr.bf16.mxu1 %v773_v26 }
  0x67   : > { %465 = vmatpush1.bf16.msra.mxu0 %v775_v27  ;;  %508 = vmatpush1.bf16.msra.mxu1 %v776_v28 }
  0x68   : > { %466 = vmatprep.subr.bf16.mxu0 %v777_v29  ;;  %509 = vmatprep.subr.bf16.mxu1 %v779_v30 }
  0x6b   : > { %467 = vmatpush1.bf16.msra.mxu0 %v781_v31  ;;  %510 = vmatpush1.bf16.msra.mxu1 %v782_v32 }
  0x6e   : > { %485 = vmatmul.mubr.bf16.vlgmr.msra.gmra.mxu0 %v783_v33  ;;  %528 = vmatmul.mubr.bf16.vlgmr.msra.gmra.mxu1 %v783_v33 }
 0x12e   : > { %v486_v45 = vpop.f32.mrf.mxu0  ;;  %v529_v46 = vpop.f32.mrf.mxu1 }
 0x12f   : > { %v487_v47 = vadd.f32 %v486_v45, %v269_v41  ;;  %v530_v48 = vadd.f32 %v529_v46, %v277_v42 }
 0x130   : > { %v488_v49 = vpop.f32.mrf.mxu0  ;;  %v531_v50 = vpop.f32.mrf.mxu1 }
 0x131   : > { %538 = vst [vmem:[%s228_s29] sm:$0xff] %v487_v47  ;;  %540 = vst [vmem:[%s228_s29 + $0x10] sm:$0xff] %v530_v48  ;;  %v489_v51 = vadd.f32 %v488_v49, %v273_v43  ;;  %v532_v52 = vadd.f32 %v531_v50, %v281_v44 }
 0x132   : > { %v490_v53 = vpop.f32.mrf.mxu0  ;;  %v533_v54 = vpop.f32.mrf.mxu1 }
 0x133   : > { %539 = vst [vmem:[%s228_s29 + $0x8] sm:$0xff] %v489_v51  ;;  %541 = vst [vmem:[%s228_s29 + $0x18] sm:$0xff] %v532_v52  ;;  %v491_v55 = vadd.f32 %v490_v53, %v269_v41  ;;  %v534_v56 = vadd.f32 %v533_v54, %v277_v42 }
 0x134   : > { %v492_v57 = vpop.f32.mrf.mxu0  ;;  %v535_v58 = vpop.f32.mrf.mxu1 }
 0x135   : > { %542 = vst [vmem:[%s228_s29 + $0x20] sm:$0xff] %v491_v55  ;;  %544 = vst [vmem:[%s228_s29 + $0x30] sm:$0xff] %v534_v56  ;;  %v493_v59 = vadd.f32 %v492_v57, %v273_v43  ;;  %v536_v60 = vadd.f32 %v535_v58, %v281_v44 }
 0x137   : > { %543 = vst [vmem:[%s228_s29 + $0x28] sm:$0xff] %v493_v59  ;;  %545 = vst [vmem:[%s228_s29 + $0x38] sm:$0xff] %v536_v60 }
 0x138 PF: > { %p16_p8 = scmp.ge.s32.totalorder %s927_s17, 4   ;;  %s1102_s12 = smov %s870_s13 }
 0x139   : > { %s1103_s13 = smov %s874_s14  ;;  %s1104_s14 = smov %s937_s20 }
 0x13a   : > { %s1105_s15 = smov %s927_s17  ;;  %18 = sbr.rel (!%p16_p8) target bundleno = 5 (0x5), region = 85 }
 0x13f   :  { %567 = vsyncpa [#allocation3], 1 }
 0x140   :  { %569 = vsyncpa [#allocation3 + $0x1], 1 }
 0x141   :  { %570 = vsyncpa [#allocation5], 1 }
 0x142   :  { %572 = vsyncpa [#allocation5 + $0x1], 1 }

// kernel: encoder_forward.9
= control target key start
LH: loop header
LB: loop body
LE: loop exit
PB: predicated region body
PF: predicated region fallthrough
CT: control target
= control target key end

     0   :  { %s486_s12 = smov 0   ;;  %s549_s0 = inlined_call_operand.vmem [shape: f32[2,2,256], index: 0, kind: input, shape index: {}]   ;;  %s550_s1 = inlined_call_operand.vmem [shape: f32[2,256,128], index: 1, kind: input, shape index: {}]   ;;  %s551_s2 = inlined_call_operand.vmem [shape: f32[2,1,128], index: 2, kind: input, shape index: {}]   ;;  %s552_s3 = inlined_call_operand.vmem [shape: f32[2,2,128], index: 3, kind: output, shape index: {}]  }
   0x1 LB: > { %s399_s13 = sadd.s32 4294967295, %s464_s12   ;;  %p403_p0 = scmp.ge.s32.totalorder %s464_s12, 1  ;;  %s464_s12 = sphi %s486_s12, %s13_s12  }
   0x2   : > { %p155_p1 = scmp.lt.s32.totalorder %s464_s12, 3 }
   0x4   : > { %p156_p2 = pnand %p403_p0, %p155_p1 }
   0x5   : > { %p186_p3 = scmp.lt.s32.totalorder (!%p156_p2), %s399_s13, 1 }
   0x6   : > { %159 = sbr.rel (%p156_p2) target bundleno = 247 (0xf7), region = 32 }
   0xb   : > { %s554_s13 = smov (!%p186_p3, %s399_s13), 1 }
   0xc   : > { %s414_s14 = sshll.u32 %s554_s13, 8  ;;  %s413_s18 = sshll.u32 %s554_s13, 2 }
   0xd   : > { %s500_s17 = scalar_lea.vmem %s550_s1, %s414_s14  ;;  %s190_s21 = scalar_lea.vmem %s549_s0, %s413_s18 }
   0xe   : > { %v235_v0 = vld [vmem:[%s500_s17 + $0xf8] sm:$0xff]  ;;  %v234_v2 = vld [vmem:[%s500_s17 + $0xf0] sm:$0xff]  ;;  %v233_v4 = vld [vmem:[%s500_s17 + $0xe8] sm:$0xff]  ;;  %s198_s24 = scalar_lea.vmem %s551_s2, %s554_s13  ;;  %s408_s25 = sshll.u32 %s554_s13, 1 }
   0xf   : > { %v219_v1 = vld [vmem:[%s500_s17 + $0x78] sm:$0xff]  ;;  %415 = vmatprep.subr.mxu0 %v235_v0  ;;  %v218_v3 = vld [vmem:[%s500_s17 + $0x70] sm:$0xff]  ;;  %v217_v5 = vld [vmem:[%s500_s17 + $0x68] sm:$0xff]  ;;  %s202_s28 = scalar_lea.vmem %s552_s3, %s408_s25 }
  0x10   : > { %416 = vmatpush3.msra.mxu0 %v219_v1  ;;  %v232_v6 = vld [vmem:[%s500_s17 + $0xe0] sm:$0xff]  ;;  %v231_v8 = vld [vmem:[%s500_s17 + $0xd8] sm:$0xff]  ;;  %v230_v10 = vld [vmem:[%s500_s17 + $0xd0] sm:$0xff] }
  0x11   : > { %417 = vmatprep.subr.mxu0 %v234_v2  ;;  %v216_v7 = vld [vmem:[%s500_s17 + $0x60] sm:$0xff]  ;;  %v215_v9 = vld [vmem:[%s500_s17 + $0x58] sm:$0xff]  ;;  %v214_v11 = vld [vmem:[%s500_s17 + $0x50] sm:$0xff] }
  0x12   : > { %418 = vmatpush3.msra.mxu0 %v218_v3  ;;  %v229_v12 = vld [vmem:[%s500_s17 + $0xc8] sm:$0xff]  ;;  %v410_v13 = vld.sshfl [vmem:[%s190_s21] sm:$0x33 pattern:$0x76325410]  ;;  %v227_v18 = vld [vmem:[%s500_s17 + $0xb8] sm:$0xff] }
  0x13   : > { %419 = vmatprep.subr.mxu0 %v233_v4  ;;  %v213_v14 = vld [vmem:[%s500_s17 + $0x48] sm:$0xff]  ;;  %v251_v15 = vcombine.high %v410_v13, %v410_v13  ;;  %v228_v16 = vld [vmem:[%s500_s17 + $0xc0] sm:$0xff]  ;;  %v211_v19 = vld [vmem:[%s500_s17 + $0x38] sm:$0xff] }
  0x14   : > { %420 = vmatpush3.msra.mxu0 %v217_v5  ;;  %v212_v17 = vld [vmem:[%s500_s17 + $0x40] sm:$0xff]  ;;  %v226_v20 = vld [vmem:[%s500_s17 + $0xb0] sm:$0xff]  ;;  %v225_v22 = vld [vmem:[%s500_s17 + $0xa8] sm:$0xff] }
  0x15   : > { %421 = vmatprep.subr.mxu0 %v232_v6  ;;  %318 = vmatprep.mubr.f32.mxu0 %v251_v15  ;;  %v210_v21 = vld [vmem:[%s500_s17 + $0x30] sm:$0xff]  ;;  %v209_v23 = vld [vmem:[%s500_s17 + $0x28] sm:$0xff]  ;;  %v224_v24 = vld [vmem:[%s500_s17 + $0xa0] sm:$0xff] }
  0x16   : > { %422 = vmatpush3.msra.mxu0 %v216_v7  ;;  %v208_v25 = vld [vmem:[%s500_s17 + $0x20] sm:$0xff]  ;;  %v223_v26 = vld [vmem:[%s500_s17 + $0x98] sm:$0xff]  ;;  %v222_v28 = vld [vmem:[%s500_s17 + $0x90] sm:$0xff] }
  0x17   : > { %423 = vmatprep.subr.mxu0 %v231_v8  ;;  %v207_v27 = vld [vmem:[%s500_s17 + $0x18] sm:$0xff]  ;;  %v206_v29 = vld [vmem:[%s500_s17 + $0x10] sm:$0xff]  ;;  %v221_v30 = vld [vmem:[%s500_s17 + $0x88] sm:$0xff] }
  0x18   : > { %424 = vmatpush3.msra.mxu0 %v215_v9  ;;  %v205_v31 = vld [vmem:[%s500_s17 + $0x8] sm:$0xff]  ;;  %v220_v32 = vld [vmem:[%s500_s17 + $0x80] sm:$0xff] }
  0x19   : > { %425 = vmatprep.subr.mxu0 %v230_v10  ;;  %v204_v33 = vld [vmem:[%s500_s17] sm:$0xff] }
  0x1a   : > { %426 = vmatpush3.msra.mxu0 %v214_v11  ;;  %v409_v35 = vld [vmem:[%s198_s24] ss:$0 sm:$0xff] }
  0x1b   : > { %427 = vmatprep.subr.mxu0 %v229_v12 }
  0x1c   : > { %428 = vmatpush3.msra.mxu0 %v213_v14 }
  0x1d   : > { %429 = vmatprep.subr.mxu0 %v228_v16 }
  0x1e   : > { %430 = vmatpush3.msra.mxu0 %v212_v17 }
  0x1f   : > { %431 = vmatprep.subr.mxu0 %v227_v18 }
  0x20   : > { %432 = vmatpush3.msra.mxu0 %v211_v19 }
  0x21   : > { %433 = vmatprep.subr.mxu0 %v226_v20 }
  0x22   : > { %434 = vmatpush3.msra.mxu0 %v210_v21 }
  0x23   : > { %435 = vmatprep.subr.mxu0 %v225_v22 }
  0x24   : > { %436 = vmatpush3.msra.mxu0 %v209_v23 }
  0x25   : > { %437 = vmatprep.subr.mxu0 %v224_v24 }
  0x26   : > { %438 = vmatpush3.msra.mxu0 %v208_v25 }
  0x27   : > { %439 = vmatprep.subr.mxu0 %v223_v26 }
  0x28   : > { %440 = vmatpush3.msra.mxu0 %v207_v27 }
  0x29   : > { %441 = vmatprep.subr.mxu0 %v222_v28 }
  0x2a   : > { %442 = vmatpush3.msra.mxu0 %v206_v29 }
  0x2b   : > { %443 = vmatprep.subr.mxu0 %v221_v30 }
  0x2c   : > { %444 = vmatpush3.msra.mxu0 %v205_v31 }
  0x2d   : > { %445 = vmatprep.subr.mxu0 %v220_v32 }
  0x2e   : > { %446 = vmatpush3.msra.mxu0 %v204_v33 }
  0x2f   : > { %319 = vmatmul.mubr.f32.vlgmr.msra.gmra.mxu0 %v410_v13 }
  0xef   : > { %v447_v34 = vpop.f32.mrf.mxu0 }
  0xf1   : > { %v448_v36 = vpop.f32.mrf.mxu0 }
  0xf2   : > { %v449_v37 = vadd.f32 %v448_v36, %v447_v34 }
  0xf4   : > { %v321_v38 = vadd.f32 %v449_v37, %v409_v35 }
  0xf6   : > { %324 = vst [vmem:[%s202_s28] sm:$0x3] %v321_v38 }
  0xf7 PF: > { %s13_s12 = sadd.s32 1, %s464_s12  }
  0xf8   : > { %p10_p4 = scmp.ge.s32.totalorder %s13_s12, 4  }
  0xfa   :  { %12 = sbr.rel (!%p10_p4) target bundleno = 1 (0x1), region = 68 }

// kernel: encoder_forward.8
= control target key start
LH: loop header
LB: loop body
LE: loop exit
PB: predicated region body
PF: predicated region fallthrough
CT: control target
= control target key end

     0   :  { %10 = vsyncpa [#allocation5], 0  ;;  %s4645_s0 = inlined_call_operand.vmem [shape: f32[2,8,2,512], index: 0, kind: input, shape index: {}]   ;;  %s4646_s1 = inlined_call_operand.vmem [shape: bf16[2,128,512], index: 1, kind: input, shape index: {}]   ;;  %s4647_s2 = inlined_call_operand.hbm [shape: bf16[8,2,256], index: 2, kind: output, shape index: {0}]   ;;  %s4648_s3 = inlined_call_operand.vmem [shape: f32[2,256], index: 3, kind: output, shape index: {1}]   ;;  %s4649_s4 = inlined_call_operand.vmem [shape: f32[2,256], index: 4, kind: output, shape index: {2}]  }
   0x1   :  { %12 = vsyncpa [#allocation5 + $0x1], 0  ;;  %s3968_s15 = smov 0   ;;  %s3970_s16 = smov 0  }
   0x2   :  { %s3972_s17 = smov 0   ;;  %s3974_s18 = smov 0  }
   0x3   :  { %s3976_s19 = smov 0   ;;  %s3978_s20 = smov 0  }
   0x4   :  { %s3980_s21 = smov 0   ;;  %s3982_s22 = smov 0  }
   0x5 LB: > { %4658 = sst [smem:[#allocation7_spill]] %s3904_s15  ;;  %s3213_s23 = sadd.s32 4294967295, %s3932_s22   ;;  %s3932_s22 = sphi %s3982_s22, %s18_s22   ;;  %s3928_s21 = sphi %s3980_s21, %s4676_s21   ;;  %s3924_s20 = sphi %s3978_s20, %s4675_s20   ;;  %s3920_s19 = sphi %s3976_s19, %s4674_s19   ;;  %s3916_s18 = sphi %s3974_s18, %s4679_s18   ;;  %s3912_s17 = sphi %s3972_s17, %s4672_s17   ;;  %s3908_s16 = sphi %s3970_s16, %s4678_s16   ;;  %s3904_s15 = sphi %s3968_s15, %s4677_s15  }
   0x6   : > { %4659 = sst [smem:[#allocation8_spill]] %s3912_s17  ;;  %s27_s24 = sadd.s32 1, %s3924_s20 }
   0x7   : > { %4660 = sst [smem:[#allocation9_spill]] %s3924_s20  ;;  %s30_s25 = sadd.s32 1, %s3928_s21 }
   0x8   : > { %4661 = sst [smem:[#allocation10_spill]] %s3928_s21  ;;  %p28_p0 = scmp.ge.s32.totalorder %s27_s24, 2 }
   0x9   : > { %s3217_s26 = sshll.u32 %s3928_s21, 1  ;;  %s3214_s27 = sadd.s32 4294967294, %s3932_s22  }
   0xa   : > { %s97_s28 = ssub.s32 1, %s3217_s26  ;;  %s4681_s24 = smov (%p28_p0, %s27_s24), 0 }
   0xb   : > { %4662 = sst [smem:[#allocation11_spill]] %s4681_s24  ;;  %s4683_s25 = smov (!%p28_p0, %s30_s25), %s3928_s21 }
   0xc   : > { %s98_s29 = smul.u32 %s3924_s20, %s97_s28  ;;  %p119_p1 = scmp.ne.s32.totalorder %s3912_s17, %s3908_s16 }
   0xd   : > { %p32_p2 = scmp.ge.s32.totalorder %s4683_s25, 2  ;;  %p120_p3 = scmp.eq.s32.totalorder %s3213_s23, 3 }
   0xe   : > { %p125_p4 = scmp.ne.s32.totalorder %s3908_s16, %s3904_s15  ;;  %p126_p6 = scmp.eq.s32.totalorder %s3214_s27, 3 }
   0xf   : > { %s4685_s25 = smov (%p32_p2, %s4683_s25), 0  ;;  %p4023_p5 = por %p120_p3, %p119_p1 }
  0x10   : > { %4663 = sst [smem:[#allocation12_spill]] %s4685_s25  ;;  %s99_s5 = sadd.s32 %s3928_s21, %s98_s29 }
  0x11   : > { %s3218_s6 = sshll.u32 %s4685_s25, 1  ;;  %p4029_p7 = por %p126_p6, %p125_p4 }
  0x12   : > { %s101_s7 = ssub.s32 1, %s3218_s6  ;;  %p3221_p8 = scmp.ge.s32.totalorder %s3932_s22, 1 }
  0x13   : > { %s4665_s8 = scalar_select %p4029_p7, 1, 0 }
  0x14   : > { %s102_s9 = smul.u32 %s101_s7, %s4681_s24  ;;  %s105_s10 = ssub.s32 %s3928_s21, %s4685_s25 }
  0x15   : > { %4666 = sst [smem:[#allocation13_spill]] %s4665_s8  ;;  %p226_p9 = scmp.lt.s32.totalorder %s3932_s22, 5 }
  0x16   : > { %s103_s11 = sadd.s32 %s102_s9, %s4685_s25  ;;  %s109_s14 = sadd.s32 1, %s3912_s17 }
  0x17   : > { %s104_s12 = ssub.s32 %s99_s5, %s103_s11  ;;  %p227_p10 = pnand %p3221_p8, %p226_p9 }
  0x18   : > { %s106_s13 = sor.u32 %s105_s10, %s104_s12  ;;  %s4652_s26 = sand.u32 (!%p227_p10), 1, %s3908_s16  }
  0x19   : > { %p107_p11 = scmp.eq.s32.totalorder %s106_s13, 0  ;;  %230 = sbr.rel (%p227_p10) target bundleno = 2285 (0x8ed), region = 28 }
  0x1a   : > { %s3223_s27 = sshll.u32 (!%p227_p10), %s3920_s19, 1  ;;  %s3222_s28 = sshll.u32 (!%p227_p10), %s4652_s26, 2 }
  0x1b   : > { %s4041_s23 = scalar_select %p107_p11, %s3912_s17, %s109_s14  }
  0x1c   : > { %s275_s29 = ssub.s32 (!%p227_p10), 1, %s3223_s27  ;;  %p279_p12 = scmp.lt.s32.totalorder (!%p227_p10), %s3920_s19, 1 }
  0x1d   : > { %4667 = sst [smem:[#allocation14_spill]] %s4041_s23  ;;  %s276_s5 = smul.u32 (!%p227_p10), %s3916_s18, %s275_s29 }
  0x1e   : > { %s280_s9 = scalar_select %p279_p12, %s3920_s19, 1 }
  0x1f   : > { %s4050_s6 = sadd.s32 %s3920_s19, %s276_s5  ;;  %p3232_p0 = scmp.ne.s32.totalorder %s3916_s18, 0 }
  0x20   : > { %s3224_s7 = sshll.u32 %s4050_s6, 2  ;;  %s3226_s10 = sshll.u32 %s280_s9, 5 }
  0x21   : > { %p281_p13 = scmp.lt.s32.totalorder %s3224_s7, 7  ;;  %s3535_s11 = sshll.u32 %s280_s9, 8 }
  0x22   : > { %s4057_s14 = scalar_lea.vmem %s4646_s1, %s3535_s11  ;;  %s3230_s25 = sshll.u32 %s280_s9, 1 }
  0x23   : > { %s4687_s7 = smov (!%p281_p13, %s3224_s7), 7  ;;  %s4062_s29 = scalar_lea.vmem %s4648_s3, %s3230_s25 }
  0x24   : > { %s3225_s24 = sshll.u32 %s4687_s7, 2  ;;  %s4067_s23 = scalar_lea.vmem %s4649_s4, %s3230_s25 }
  0x25   : > { %s285_s5 = sadd.s32 %s3226_s10, %s3225_s24  ;;  %s4074_s11 = scalar_lea.vmem [#allocation4], %s3222_s28 }
  0x26   : > { %s3227_s17 = sshll.u32 %s285_s5, 1  ;;  %315 = sbr.rel (%p3232_p0) target bundleno = 45 (0x2d), region = 32 }
  0x27   : > { %s4072_s12 = scalar_lea.vmem %s4645_s0, %s3227_s17 }
  0x2b   : > { %v3934_v0 = vmov 0.0  }
  0x2c   : > { %316 = vst [vmem:[#allocation2] sm:$0x3] %v3934_v0  ;;  %317 = vst [vmem:[#allocation3] sm:$0x3] %v3934_v0 }
  0x2d PF: > { %p3233_p1 = scmp.ne.s32.totalorder %s3920_s19, 0 }
  0x2f   : > { %321 = sbr.rel (%p3233_p1) target bundleno = 1147 (0x47b), region = 36 }
  0x34   : > { %v4079_v1 = vld [vmem:[%s4057_s14 + $0xe4] ss:$16 sps:$4 sm:$0xff]   ;;  %v4082_v2 = vld [vmem:[%s4057_s14 + $0xec] ss:$16 sps:$4 sm:$0xff]   ;;  %v3935_v3 = vmov 0   ;;  %v608_v38 = vlaneseq }
  0x35   : > { %549 = vmatprep.mubr.bf16.mxu0 %v3935_v3  ;;  %590 = vmatprep.mubr.bf16.mxu1 %v3935_v3  ;;  %v4088_v4 = vld [vmem:[%s4057_s14 + $0xe0] ss:$16 sps:$4 sm:$0xff]   ;;  %v4091_v5 = vld [vmem:[%s4057_s14 + $0xe8] ss:$16 sps:$4 sm:$0xff]   ;;  %v4095_v6 = vld [vmem:[%s4057_s14 + $0xc4] ss:$16 sps:$4 sm:$0xff]  }
  0x36   : > { %517 = vmatprep.subr.bf16.mxu0 %v4079_v1  ;;  %558 = vmatprep.subr.bf16.mxu1 %v4082_v2  ;;  %v4100_v7 = vld [vmem:[%s4057_s14 + $0xcc] ss:$16 sps:$4 sm:$0xff]   ;;  %v4103_v8 = vld [vmem:[%s4057_s14 + $0xc0] ss:$16 sps:$4 sm:$0xff]   ;;  %v4107_v9 = vld [vmem:[%s4057_s14 + $0xc8] ss:$16 sps:$4 sm:$0xff]  }
  0x37   : > { %518 = vmatpush1.bf16.msra.mxu0 %v4088_v4  ;;  %559 = vmatpush1.bf16.msra.mxu1 %v4091_v5  ;;  %v4111_v10 = vld [vmem:[%s4057_s14 + $0xa4] ss:$16 sps:$4 sm:$0xff]   ;;  %v4114_v11 = vld [vmem:[%s4057_s14 + $0xac] ss:$16 sps:$4 sm:$0xff]   ;;  %v4117_v12 = vld [vmem:[%s4057_s14 + $0xa0] ss:$16 sps:$4 sm:$0xff]  }
  0x38   : > { %519 = vmatprep.subr.bf16.mxu0 %v4095_v6  ;;  %560 = vmatprep.subr.bf16.mxu1 %v4100_v7  ;;  %v4120_v13 = vld [vmem:[%s4057_s14 + $0xa8] ss:$16 sps:$4 sm:$0xff]   ;;  %v4125_v14 = vld [vmem:[%s4057_s14 + $0x84] ss:$16 sps:$4 sm:$0xff]   ;;  %v4130_v15 = vld [vmem:[%s4057_s14 + $0x8c] ss:$16 sps:$4 sm:$0xff]  }
  0x39   : > { %v4133_v16 = vld [vmem:[%s4057_s14 + $0x80] ss:$16 sps:$4 sm:$0xff]   ;;  %v4138_v17 = vld [vmem:[%s4057_s14 + $0x88] ss:$16 sps:$4 sm:$0xff]   ;;  %v4141_v18 = vld [vmem:[%s4057_s14 + $0x64] ss:$16 sps:$4 sm:$0xff]  }
  0x3a   : > { %v4146_v19 = vld [vmem:[%s4057_s14 + $0x6c] ss:$16 sps:$4 sm:$0xff]   ;;  %v4149_v20 = vld [vmem:[%s4057_s14 + $0x60] ss:$16 sps:$4 sm:$0xff]   ;;  %v4152_v21 = vld [vmem:[%s4057_s14 + $0x68] ss:$16 sps:$4 sm:$0xff]  }
  0x3b   : > { %520 = vmatpush1.bf16.msra.mxu0 %v4103_v8  ;;  %561 = vmatpush1.bf16.msra.mxu1 %v4107_v9  ;;  %v4157_v22 = vld [vmem:[%s4057_s14 + $0x44] ss:$16 sps:$4 sm:$0xff]   ;;  %v4162_v23 = vld [vmem:[%s4057_s14 + $0x4c] ss:$16 sps:$4 sm:$0xff]   ;;  %v4167_v24 = vld [vmem:[%s4057_s14 + $0x40] ss:$16 sps:$4 sm:$0xff]  }
  0x3c   : > { %521 = vmatprep.subr.bf16.mxu0 %v4111_v10  ;;  %562 = vmatprep.subr.bf16.mxu1 %v4114_v11  ;;  %v4170_v25 = vld [vmem:[%s4057_s14 + $0x48] ss:$16 sps:$4 sm:$0xff]   ;;  %v4175_v26 = vld [vmem:[%s4057_s14 + $0x24] ss:$16 sps:$4 sm:$0xff]   ;;  %v4178_v27 = vld [vmem:[%s4057_s14 + $0x2c] ss:$16 sps:$4 sm:$0xff]  }
  0x3d   : > { %v4183_v28 = vld [vmem:[%s4057_s14 + $0x20] ss:$16 sps:$4 sm:$0xff]   ;;  %v4186_v29 = vld [vmem:[%s4057_s14 + $0x28] ss:$16 sps:$4 sm:$0xff]   ;;  %v4191_v30 = vld [vmem:[%s4057_s14 + $0x4] ss:$16 sps:$4 sm:$0xff]  }
  0x3e   : > { %v4194_v31 = vld [vmem:[%s4057_s14 + $0xc] ss:$16 sps:$4 sm:$0xff]   ;;  %v4199_v32 = vld [vmem:[%s4057_s14] ss:$16 sps:$4 sm:$0xff]   ;;  %v4202_v33 = vld [vmem:[%s4057_s14 + $0x8] ss:$16 sps:$4 sm:$0xff]  }
  0x3f   : > { %522 = vmatpush1.bf16.msra.mxu0 %v4117_v12  ;;  %563 = vmatpush1.bf16.msra.mxu1 %v4120_v13  ;;  %v323_v34 = vld [vmem:[#allocation2] sm:$0x3]  ;;  %v3936_v36 = vmov 1983009808   ;;  %v609_v40 = vshrl.u32 %v608_v38, 7 }
  0x40   : > { %523 = vmatprep.subr.bf16.mxu0 %v4125_v14  ;;  %564 = vmatprep.subr.bf16.mxu1 %v4130_v15  ;;  %v324_v35 = vpack.c.bf16 %v323_v34, %v323_v34  ;;  %v606_v37 = vunpack.c.l.s4 %v3936_v36  ;;  %v322_v52 = vld [vmem:[%s4072_s12] sm:$0xff] }
  0x41   : > { %v648_v38 = vld [vmem:[#allocation3] sm:$0x3] }
  0x42   : > { %v607_v39 = vunpack.c.0.s8 %v606_v37 }
  0x43   : > { %524 = vmatpush1.bf16.msra.mxu0 %v4133_v16  ;;  %565 = vmatpush1.bf16.msra.mxu1 %v4138_v17 }
  0x44   : > { %525 = vmatprep.subr.bf16.mxu0 %v4141_v18  ;;  %566 = vmatprep.subr.bf16.mxu1 %v4146_v19  ;;  %v4244_v43 = vsub.s32 %v607_v39, %v609_v40 }
  0x47   : > { %526 = vmatpush1.bf16.msra.mxu0 %v4149_v20  ;;  %567 = vmatpush1.bf16.msra.mxu1 %v4152_v21 }
  0x48   : > { %527 = vmatprep.subr.bf16.mxu0 %v4157_v22  ;;  %568 = vmatprep.subr.bf16.mxu1 %v4162_v23 }
  0x4b   : > { %528 = vmatpush1.bf16.msra.mxu0 %v4167_v24  ;;  %569 = vmatpush1.bf16.msra.mxu1 %v4170_v25 }
  0x4c   : > { %529 = vmatprep.subr.bf16.mxu0 %v4175_v26  ;;  %570 = vmatprep.subr.bf16.mxu1 %v4178_v27 }
  0x4f   : > { %530 = vmatpush1.bf16.msra.mxu0 %v4183_v28  ;;  %571 = vmatpush1.bf16.msra.mxu1 %v4186_v29 }
  0x50   : > { %531 = vmatprep.subr.bf16.mxu0 %v4191_v30  ;;  %572 = vmatprep.subr.bf16.mxu1 %v4194_v31 }
  0x53   : > { %532 = vmatpush1.bf16.msra.mxu0 %v4199_v32  ;;  %573 = vmatpush1.bf16.msra.mxu1 %v4202_v33 }
  0x54   : > { %854 = vmatprep.subr.bf16.mxu0 %v4079_v1  ;;  %895 = vmatprep.subr.bf16.mxu1 %v4082_v2 }
  0x56   : > { %550 = vmatmul.mubr.bf16.vlgmr.msra.gmra.mxu0 %v324_v35  ;;  %591 = vmatmul.mubr.bf16.vlgmr.msra.gmra.mxu1 %v324_v35 }
  0x57   : > { %855 = vmatpush1.bf16.msra.mxu0 %v4088_v4  ;;  %896 = vmatpush1.bf16.msra.mxu1 %v4091_v5 }
  0x58   : > { %856 = vmatprep.subr.bf16.mxu0 %v4095_v6  ;;  %897 = vmatprep.subr.bf16.mxu1 %v4100_v7 }
  0x59   : > { %886 = vmatprep.mubr.bf16.mxu0 %v3935_v3  ;;  %927 = vmatprep.mubr.bf16.mxu1 %v3935_v3 }
  0x5b   : > { %857 = vmatpush1.bf16.msra.mxu0 %v4103_v8  ;;  %898 = vmatpush1.bf16.msra.mxu1 %v4107_v9 }
  0x5c   : > { %858 = vmatprep.subr.bf16.mxu0 %v4111_v10  ;;  %899 = vmatprep.subr.bf16.mxu1 %v4114_v11 }
  0x5f   : > { %859 = vmatpush1.bf16.msra.mxu0 %v4117_v12  ;;  %900 = vmatpush1.bf16.msra.mxu1 %v4120_v13 }
  0x60   : > { %860 = vmatprep.subr.bf16.mxu0 %v4125_v14  ;;  %901 = vmatprep.subr.bf16.mxu1 %v4130_v15 }
  0x63   : > { %861 = vmatpush1.bf16.msra.mxu0 %v4133_v16  ;;  %902 = vmatpush1.bf16.msra.mxu1 %v4138_v17 }
  0x64   : > { %862 = vmatprep.subr.bf16.mxu0 %v4141_v18  ;;  %903 = vmatprep.subr.bf16.mxu1 %v4146_v19 }
  0x67   : > { %863 = vmatpush1.bf16.msra.mxu0 %v4149_v20  ;;  %904 = vmatpush1.bf16.msra.mxu1 %v4152_v21 }
  0x68   : > { %864 = vmatprep.subr.bf16.mxu0 %v4157_v22  ;;  %905 = vmatprep.subr.bf16.mxu1 %v4162_v23 }
  0x6b   : > { %865 = vmatpush1.bf16.msra.mxu0 %v4167_v24  ;;  %906 = vmatpush1.bf16.msra.mxu1 %v4170_v25 }
  0x6c   : > { %866 = vmatprep.subr.bf16.mxu0 %v4175_v26  ;;  %907 = vmatprep.subr.bf16.mxu1 %v4178_v27 }
  0x6f   : > { %867 = vmatpush1.bf16.msra.mxu0 %v4183_v28  ;;  %908 = vmatpush1.bf16.msra.mxu1 %v4186_v29 }
  0x70   : > { %868 = vmatprep.subr.bf16.mxu0 %v4191_v30  ;;  %909 = vmatprep.subr.bf16.mxu1 %v4194_v31 }
  0x73   : > { %869 = vmatpush1.bf16.msra.mxu0 %v4199_v32  ;;  %910 = vmatpush1.bf16.msra.mxu1 %v4202_v33 }
  0x74   : > { %1192 = vmatprep.subr.bf16.mxu0 %v4079_v1  ;;  %1233 = vmatprep.subr.bf16.mxu1 %v4082_v2 }
 0x116   : > { %v551_v41 = vpop.f32.mrf.mxu0  ;;  %v592_v42 = vpop.f32.mrf.mxu1 }
 0x118   : > { %v553_v44 = vpop.f32.mrf.mxu0  ;;  %v594_v45 = vpop.f32.mrf.mxu1 }
 0x119   : > { %v603_v46 = vcombine.low %v551_v41, %v553_v44  ;;  %v604_v47 = vcombine.low %v592_v42, %v594_v45 }
 0x11a   : > { %v555_v48 = vpop.f32.mrf.mxu0  ;;  %v596_v49 = vpop.f32.mrf.mxu1 }
 0x11b   : > { %v611_v50 = vrot.slane %v603_v46, %v4244_v43  ;;  %v618_v51 = vrot.slane %v604_v47, %v4244_v43 }
 0x11c   : > { %v556_v53 = vpop.f32.mrf.mxu0  ;;  %v597_v54 = vpop.f32.mrf.mxu1 }
 0x11d   : > { %v619_v55 = vcombine.low %v611_v50, %v618_v51 }
 0x11f   : > { %v621_v56 = vadd.f32 %v619_v55, %v322_v52 }
 0x121   : > { %v3266_v57 = vmul.f32 -1.442695, %v621_v56  ;;  %v629_v58 = vrot.slane %v621_v56, 2  ;;  %v640_v60 = vrot.slane %v621_v56, 6  ;;  %v637_v63 = vrot.slane %v621_v56, 4 }
 0x123   : > { %3664 = vpow2.f32 %v3266_v57  ;;  %v3267_v59 = vmul.f32 -1.442695, %v629_v58  ;;  %v3268_v61 = vmul.f32 -1.442695, %v640_v60 }
 0x125   : > { %3666 = vpow2.f32 %v3267_v59 }
 0x126   : > { %3668 = vpow2.f32 %v3268_v61 }
 0x130   : > { %v3665_v62 = vpop.eup %3664 }
 0x131   : > { %v625_v0 = vadd.f32 1.0, %v3665_v62  ;;  %v3269_v62 = vld [vmem:[%s4072_s12 + $0x8] sm:$0xff] }
 0x132   : > { %v3667_v34 = vpop.eup %3666 }
 0x133   : > { %3670 = vrcp.f32 %v625_v0  ;;  %v634_v35 = vadd.f32 1.0, %v3667_v34  ;;  %v3669_v36 = vpop.eup %3668 }
 0x134   : > { %3672 = vtanh.f32 %v637_v63  ;;  %v645_v41 = vadd.f32 1.0, %v3669_v36 }
 0x135   : > { %3674 = vrcp.f32 %v634_v35 }
 0x136   : > { %3676 = vrcp.f32 %v645_v41 }
 0x140   : > { %v3671_v37 = vpop.eup %3670 }
 0x141   : > { %v3673_v39 = vpop.eup %3672 }
 0x142   : > { %v3675_v40 = vpop.eup %3674  ;;  %v650_v44 = vmul.f32 %v3673_v39, %v3671_v37 }
 0x143   : > { %v649_v42 = vmul.f32 %v3675_v40, %v648_v38  ;;  %v3677_v46 = vpop.eup %3676 }
 0x145   : > { %v651_v45 = vadd.f32 %v650_v44, %v649_v42 }
 0x147   : > { %3678 = vtanh.f32 %v651_v45  ;;  %654 = vst [vmem:[#allocation3] sm:$0x3] %v651_v45 }
 0x154   : > { %v3679_v47 = vpop.eup %3678 }
 0x155   : > { %v653_v48 = vmul.f32 %v3679_v47, %v3677_v46 }
 0x157   : > { %655 = vst [vmem:[#allocation2] sm:$0x3] %v653_v48  ;;  %v656_v49 = vpack.c.bf16 %v653_v48, %v653_v48 }
 0x159   : > { %657 = vst [vmem:[%s4074_s11] sm:$0x1] %v656_v49 }
 0x15e   : > { %v660_v50 = vld [vmem:[#allocation2] sm:$0x3] }
 0x15f   : > { %v661_v51 = vpack.c.bf16 %v660_v50, %v660_v50  ;;  %v985_v50 = vld [vmem:[#allocation3] sm:$0x3] }
 0x161   : > { %887 = vmatmul.mubr.bf16.vlgmr.msra.gmra.mxu0 %v661_v51  ;;  %928 = vmatmul.mubr.bf16.vlgmr.msra.gmra.mxu1 %v661_v51 }
 0x162   : > { %1193 = vmatpush1.bf16.msra.mxu0 %v4088_v4  ;;  %1234 = vmatpush1.bf16.msra.mxu1 %v4091_v5 }
 0x163   : > { %1194 = vmatprep.subr.bf16.mxu0 %v4095_v6  ;;  %1235 = vmatprep.subr.bf16.mxu1 %v4100_v7 }
 0x164   : > { %1224 = vmatprep.mubr.bf16.mxu0 %v3935_v3  ;;  %1265 = vmatprep.mubr.bf16.mxu1 %v3935_v3 }
 0x166   : > { %1195 = vmatpush1.bf16.msra.mxu0 %v4103_v8  ;;  %1236 = vmatpush1.bf16.msra.mxu1 %v4107_v9 }
 0x167   : > { %1196 = vmatprep.subr.bf16.mxu0 %v4111_v10  ;;  %1237 = vmatprep.subr.bf16.mxu1 %v4114_v11 }
 0x16a   : > { %1197 = vmatpush1.bf16.msra.mxu0 %v4117_v12  ;;  %1238 = vmatpush1.bf16.msra.mxu1 %v4120_v13 }
 0x16b   : > { %1198 = vmatprep.subr.bf16.mxu0 %v4125_v14  ;;  %1239 = vmatprep.subr.bf16.mxu1 %v4130_v15 }
 0x16e   : > { %1199 = vmatpush1.bf16.msra.mxu0 %v4133_v16  ;;  %1240 = vmatpush1.bf16.msra.mxu1 %v4138_v17 }
 0x16f   : > { %1200 = vmatprep.subr.bf16.mxu0 %v4141_v18  ;;  %1241 = vmatprep.subr.bf16.mxu1 %v4146_v19 }
 0x172   : > { %1201 = vmatpush1.bf16.msra.mxu0 %v4149_v20  ;;  %1242 = vmatpush1.bf16.msra.mxu1 %v4152_v21 }
 0x173   : > { %1202 = vmatprep.subr.bf16.mxu0 %v4157_v22  ;;  %1243 = vmatprep.subr.bf16.mxu1 %v4162_v23 }
 0x176   : > { %1203 = vmatpush1.bf16.msra.mxu0 %v4167_v24  ;;  %1244 = vmatpush1.bf16.msra.mxu1 %v4170_v25 }
 0x177   : > { %1204 = vmatprep.subr.bf16.mxu0 %v4175_v26  ;;  %1245 = vmatprep.subr.bf16.mxu1 %v4178_v27 }
 0x17a   : > { %1205 = vmatpush1.bf16.msra.mxu0 %v4183_v28  ;;  %1246 = vmatpush1.bf16.msra.mxu1 %v4186_v29 }
 0x17b   : > { %1206 = vmatprep.subr.bf16.mxu0 %v4191_v30  ;;  %1247 = vmatprep.subr.bf16.mxu1 %v4194_v31 }
 0x17e   : > { %1207 = vmatpush1.bf16.msra.mxu0 %v4199_v32  ;;  %1248 = vmatpush1.bf16.msra.mxu1 %v4202_v33 }
 0x17f   : > { %1530 = vmatprep.subr.bf16.mxu0 %v4079_v1  ;;  %1571 = vmatprep.subr.bf16.mxu1 %v4082_v2 }
 0x221   : > { %v888_v52 = vpop.f32.mrf.mxu0  ;;  %v929_v53 = vpop.f32.mrf.mxu1 }
 0x223   : > { %v890_v54 = vpop.f32.mrf.mxu0  ;;  %v931_v55 = vpop.f32.mrf.mxu1 }
 0x224   : > { %v940_v56 = vcombine.low %v888_v52, %v890_v54  ;;  %v941_v57 = vcombine.low %v929_v53, %v931_v55 }
 0x225   : > { %v892_v58 = vpop.f32.mrf.mxu0  ;;  %v933_v59 = vpop.f32.mrf.mxu1 }
 0x226   : > { %v948_v60 = vrot.slane %v940_v56, %v4244_v43  ;;  %v955_v61 = vrot.slane %v941_v57, %v4244_v43 }
 0x227   : > { %v893_v63 = vpop.f32.mrf.mxu0  ;;  %v934_v0 = vpop.f32.mrf.mxu1 }
 0x228   : > { %v956_v34 = vcombine.low %v948_v60, %v955_v61 }
 0x22a   : > { %v958_v35 = vadd.f32 %v3269_v62, %v956_v34 }
 0x22c   : > { %v3302_v1 = vmul.f32 -1.442695, %v958_v35  ;;  %v966_v36 = vrot.slane %v958_v35, 2  ;;  %v977_v37 = vrot.slane %v958_v35, 6  ;;  %v974_v40 = vrot.slane %v958_v35, 4 }
 0x22e   : > { %3680 = vpow2.f32 %v3302_v1  ;;  %v3303_v2 = vmul.f32 -1.442695, %v966_v36  ;;  %v3304_v38 = vmul.f32 -1.442695, %v977_v37 }
 0x230   : > { %3682 = vpow2.f32 %v3303_v2 }
 0x231   : > { %3684 = vpow2.f32 %v3304_v38 }
 0x23b   : > { %v3681_v39 = vpop.eup %3680 }
 0x23c   : > { %v962_v41 = vadd.f32 1.0, %v3681_v39 }
 0x23d   : > { %v3683_v42 = vpop.eup %3682 }
 0x23e   : > { %3686 = vrcp.f32 %v962_v41  ;;  %v971_v44 = vadd.f32 1.0, %v3683_v42  ;;  %v3685_v45 = vpop.eup %3684 }
 0x23f   : > { %3688 = vtanh.f32 %v974_v40  ;;  %v982_v49 = vadd.f32 1.0, %v3685_v45 }
 0x240   : > { %3690 = vrcp.f32 %v971_v44 }
 0x241   : > { %3692 = vrcp.f32 %v982_v49 }
 0x24b   : > { %v3687_v46 = vpop.eup %3686 }
 0x24c   : > { %v3689_v47 = vpop.eup %3688 }
 0x24d   : > { %v3691_v48 = vpop.eup %3690  ;;  %v987_v52 = vmul.f32 %v3689_v47, %v3687_v46  ;;  %v3343_v47 = vld [vmem:[%s4072_s12 + $0x18] sm:$0xff] }
 0x24e   : > { %v986_v51 = vmul.f32 %v3691_v48, %v985_v50  ;;  %v3693_v54 = vpop.eup %3692 }
 0x250   : > { %v988_v53 = vadd.f32 %v987_v52, %v986_v51 }
 0x252   : > { %3694 = vtanh.f32 %v988_v53  ;;  %991 = vst [vmem:[#allocation3] sm:$0x3] %v988_v53 }
 0x25f   : > { %v3695_v55 = vpop.eup %3694 }
 0x260   : > { %v990_v56 = vmul.f32 %v3695_v55, %v3693_v54 }
 0x262   : > { %992 = vst [vmem:[#allocation2] sm:$0x3] %v990_v56  ;;  %v993_v57 = vpack.c.bf16 %v990_v56, %v990_v56 }
 0x264   : > { %3305 = vst [vmem:[%s4074_s11 + $0x1] sm:$0x1] %v993_v57 }
 0x269   : > { %v998_v58 = vld [vmem:[#allocation2] sm:$0x3] }
 0x26a   : > { %v999_v59 = vpack.c.bf16 %v998_v58, %v998_v58 }
 0x26c   : > { %1225 = vmatmul.mubr.bf16.vlgmr.msra.gmra.mxu0 %v999_v59  ;;  %1266 = vmatmul.mubr.bf16.vlgmr.msra.gmra.mxu1 %v999_v59 }
 0x26d   : > { %1531 = vmatpush1.bf16.msra.mxu0 %v4088_v4  ;;  %1572 = vmatpush1.bf16.msra.mxu1 %v4091_v5 }
 0x26e   : > { %1532 = vmatprep.subr.bf16.mxu0 %v4095_v6  ;;  %1573 = vmatprep.subr.bf16.mxu1 %v4100_v7 }
 0x26f   : > { %1562 = vmatprep.mubr.bf16.mxu0 %v3935_v3  ;;  %1603 = vmatprep.mubr.bf16.mxu1 %v3935_v3 }
 0x271   : > { %1533 = vmatpush1.bf16.msra.mxu0 %v4103_v8  ;;  %1574 = vmatpush1.bf16.msra.mxu1 %v4107_v9 }
 0x272   : > { %1534 = vmatprep.subr.bf16.mxu0 %v4111_v10  ;;  %1575 = vmatprep.subr.bf16.mxu1 %v4114_v11 }
 0x275   : > { %1535 = vmatpush1.bf16.msra.mxu0 %v4117_v12  ;;  %1576 = vmatpush1.bf16.msra.mxu1 %v4120_v13  ;;  %v3306_v13 = vld [vmem:[%s4072_s12 + $0x10] sm:$0xff] }
 0x276   : > { %1536 = vmatprep.subr.bf16.mxu0 %v4125_v14  ;;  %1577 = vmatprep.subr.bf16.mxu1 %v4130_v15 }
 0x279   : > { %1537 = vmatpush1.bf16.msra.mxu0 %v4133_v16  ;;  %1578 = vmatpush1.bf16.msra.mxu1 %v4138_v17 }
 0x27a   : > { %1538 = vmatprep.subr.bf16.mxu0 %v4141_v18  ;;  %1579 = vmatprep.subr.bf16.mxu1 %v4146_v19 }
 0x27d   : > { %1539 = vmatpush1.bf16.msra.mxu0 %v4149_v20  ;;  %1580 = vmatpush1.bf16.msra.mxu1 %v4152_v21 }
 0x27e   : > { %1540 = vmatprep.subr.bf16.mxu0 %v4157_v22  ;;  %1581 = vmatprep.subr.bf16.mxu1 %v4162_v23 }
 0x281   : > { %1541 = vmatpush1.bf16.msra.mxu0 %v4167_v24  ;;  %1582 = vmatpush1.bf16.msra.mxu1 %v4170_v25 }
 0x282   : > { %1542 = vmatprep.subr.bf16.mxu0 %v4175_v26  ;;  %1583 = vmatprep.subr.bf16.mxu1 %v4178_v27 }
 0x285   : > { %1543 = vmatpush1.bf16.msra.mxu0 %v4183_v28  ;;  %1584 = vmatpush1.bf16.msra.mxu1 %v4186_v29 }
 0x286   : > { %1544 = vmatprep.subr.bf16.mxu0 %v4191_v30  ;;  %1585 = vmatprep.subr.bf16.mxu1 %v4194_v31 }
 0x289   : > { %1545 = vmatpush1.bf16.msra.mxu0 %v4199_v32  ;;  %1586 = vmatpush1.bf16.msra.mxu1 %v4202_v33  ;;  %v1323_v33 = vld [vmem:[#allocation3] sm:$0x3] }
 0x32c   : > { %v1226_v3 = vpop.f32.mrf.mxu0  ;;  %v1267_v4 = vpop.f32.mrf.mxu1 }
 0x32e   : > { %v1228_v5 = vpop.f32.mrf.mxu0  ;;  %v1269_v6 = vpop.f32.mrf.mxu1 }
 0x32f   : > { %v1278_v7 = vcombine.low %v1226_v3, %v1228_v5  ;;  %v1279_v8 = vcombine.low %v1267_v4, %v1269_v6 }
 0x330   : > { %v1230_v9 = vpop.f32.mrf.mxu0  ;;  %v1271_v10 = vpop.f32.mrf.mxu1 }
 0x331   : > { %v1286_v11 = vrot.slane %v1278_v7, %v4244_v43  ;;  %v1293_v12 = vrot.slane %v1279_v8, %v4244_v43 }
 0x332   : > { %v1231_v14 = vpop.f32.mrf.mxu0  ;;  %v1272_v15 = vpop.f32.mrf.mxu1 }
 0x333   : > { %v1294_v16 = vcombine.low %v1286_v11, %v1293_v12 }
 0x335   : > { %v1296_v17 = vadd.f32 %v3306_v13, %v1294_v16 }
 0x337   : > { %v3339_v18 = vmul.f32 -1.442695, %v1296_v17  ;;  %v1304_v19 = vrot.slane %v1296_v17, 2  ;;  %v1315_v21 = vrot.slane %v1296_v17, 6  ;;  %v1312_v24 = vrot.slane %v1296_v17, 4 }
 0x339   : > { %3696 = vpow2.f32 %v3339_v18  ;;  %v3340_v20 = vmul.f32 -1.442695, %v1304_v19  ;;  %v3341_v22 = vmul.f32 -1.442695, %v1315_v21 }
 0x33b   : > { %3698 = vpow2.f32 %v3340_v20 }
 0x33c   : > { %3700 = vpow2.f32 %v3341_v22 }
 0x346   : > { %v3697_v23 = vpop.eup %3696 }
 0x347   : > { %v1300_v25 = vadd.f32 1.0, %v3697_v23 }
 0x348   : > { %v3699_v26 = vpop.eup %3698 }
 0x349   : > { %3702 = vrcp.f32 %v1300_v25  ;;  %v1309_v27 = vadd.f32 1.0, %v3699_v26  ;;  %v3701_v28 = vpop.eup %3700 }
 0x34a   : > { %3704 = vtanh.f32 %v1312_v24  ;;  %v1320_v32 = vadd.f32 1.0, %v3701_v28 }
 0x34b   : > { %3706 = vrcp.f32 %v1309_v27 }
 0x34c   : > { %3708 = vrcp.f32 %v1320_v32 }
 0x356   : > { %v3703_v29 = vpop.eup %3702 }
 0x357   : > { %v3705_v30 = vpop.eup %3704 }
 0x358   : > { %v3707_v31 = vpop.eup %3706  ;;  %v1325_v61 = vmul.f32 %v3705_v30, %v3703_v29 }
 0x359   : > { %v1324_v60 = vmul.f32 %v3707_v31, %v1323_v33  ;;  %v3709_v63 = vpop.eup %3708 }
 0x35b   : > { %v1326_v62 = vadd.f32 %v1325_v61, %v1324_v60 }
 0x35d   : > { %3710 = vtanh.f32 %v1326_v62  ;;  %1329 = vst [vmem:[#allocation3] sm:$0x3] %v1326_v62 }
 0x364   : > { %v1661_v9 = vld [vmem:[#allocation3] sm:$0x3] }
 0x36a   : > { %v3711_v0 = vpop.eup %3710 }
 0x36b   : > { %v1328_v34 = vmul.f32 %v3711_v0, %v3709_v63 }
 0x36d   : > { %v1331_v35 = vpack.c.bf16 %v1328_v34, %v1328_v34  ;;  %1330 = vst [vmem:[#allocation2] sm:$0x3] %v1328_v34 }
 0x36f   : > { %3342 = vst [vmem:[%s4074_s11 + $0x2] sm:$0x1] %v1331_v35 }
 0x374   : > { %v1336_v1 = vld [vmem:[#allocation2] sm:$0x3] }
 0x375   : > { %v1337_v36 = vpack.c.bf16 %v1336_v1, %v1336_v1 }
 0x377   : > { %1563 = vmatmul.mubr.bf16.vlgmr.msra.gmra.mxu0 %v1337_v36  ;;  %1604 = vmatmul.mubr.bf16.vlgmr.msra.gmra.mxu1 %v1337_v36 }
 0x437   : > { %v1564_v2 = vpop.f32.mrf.mxu0  ;;  %v1605_v37 = vpop.f32.mrf.mxu1 }
 0x439   : > { %v1566_v38 = vpop.f32.mrf.mxu0  ;;  %v1607_v39 = vpop.f32.mrf.mxu1 }
 0x43a   : > { %v1616_v40 = vcombine.low %v1564_v2, %v1566_v38  ;;  %v1617_v41 = vcombine.low %v1605_v37, %v1607_v39 }
 0x43b   : > { %v1568_v42 = vpop.f32.mrf.mxu0  ;;  %v1609_v44 = vpop.f32.mrf.mxu1 }
 0x43c   : > { %v1624_v45 = vrot.slane %v1616_v40, %v4244_v43  ;;  %v1631_v46 = vrot.slane %v1617_v41, %v4244_v43 }
 0x43d   : > { %v1569_v48 = vpop.f32.mrf.mxu0  ;;  %v1610_v49 = vpop.f32.mrf.mxu1 }
 0x43e   : > { %v1632_v50 = vcombine.low %v1624_v45, %v1631_v46 }
 0x440   : > { %v1634_v51 = vadd.f32 %v3343_v47, %v1632_v50 }
 0x442   : > { %v3376_v52 = vmul.f32 -1.442695, %v1634_v51  ;;  %v1642_v53 = vrot.slane %v1634_v51, 2  ;;  %v1653_v55 = vrot.slane %v1634_v51, 6  ;;  %v1650_v58 = vrot.slane %v1634_v51, 4 }
 0x444   : > { %3712 = vpow2.f32 %v3376_v52  ;;  %v3377_v54 = vmul.f32 -1.442695, %v1642_v53  ;;  %v3378_v56 = vmul.f32 -1.442695, %v1653_v55 }
 0x446   : > { %3714 = vpow2.f32 %v3377_v54 }
 0x447   : > { %3716 = vpow2.f32 %v3378_v56 }
 0x451   : > { %v3713_v57 = vpop.eup %3712 }
 0x452   : > { %v1638_v59 = vadd.f32 1.0, %v3713_v57 }
 0x453   : > { %v3715_v3 = vpop.eup %3714 }
 0x454   : > { %3718 = vrcp.f32 %v1638_v59  ;;  %v1647_v4 = vadd.f32 1.0, %v3715_v3  ;;  %v3717_v43 = vpop.eup %3716 }
 0x455   : > { %3720 = vtanh.f32 %v1650_v58  ;;  %v1658_v8 = vadd.f32 1.0, %v3717_v43 }
 0x456   : > { %3722 = vrcp.f32 %v1647_v4 }
 0x457   : > { %3724 = vrcp.f32 %v1658_v8 }
 0x461   : > { %v3719_v5 = vpop.eup %3718 }
 0x462   : > { %v3721_v6 = vpop.eup %3720 }
 0x463   : > { %v3723_v7 = vpop.eup %3722  ;;  %v1663_v11 = vmul.f32 %v3721_v6, %v3719_v5 }
 0x464   : > { %v1662_v10 = vmul.f32 %v3723_v7, %v1661_v9  ;;  %v3725_v13 = vpop.eup %3724 }
 0x466   : > { %v1664_v12 = vadd.f32 %v1663_v11, %v1662_v10 }
 0x468   : > { %3726 = vtanh.f32 %v1664_v12  ;;  %1667 = vst [vmem:[#allocation3] sm:$0x3] %v1664_v12 }
 0x475   : > { %v3727_v14 = vpop.eup %3726 }
 0x476   : > { %v1666_v15 = vmul.f32 %v3727_v14, %v3725_v13 }
 0x478   : > { %1668 = vst [vmem:[#allocation2] sm:$0x3] %v1666_v15  ;;  %v1669_v16 = vpack.c.bf16 %v1666_v15, %v1666_v15 }
 0x47a   : > { %3379 = vst [vmem:[%s4074_s11 + $0x3] sm:$0x1] %v1669_v16 }
 0x47b PF: > { %p3380_p2 = scmp.ne.s32.totalorder %s3920_s19, 1 }
 0x47d   : > { %1675 = sbr.rel (%p3380_p2) target bundleno = 2249 (0x8c9), region = 40 }
 0x482   : > { %v4330_v17 = vld [vmem:[%s4057_s14 + $0xe4] ss:$16 sps:$4 sm:$0xff]   ;;  %v4333_v18 = vld [vmem:[%s4057_s14 + $0xec] ss:$16 sps:$4 sm:$0xff]   ;;  %v3937_v19 = vmov 0   ;;  %v1963_v48 = vlaneseq }
 0x483   : > { %1904 = vmatprep.mubr.bf16.mxu0 %v3937_v19  ;;  %1945 = vmatprep.mubr.bf16.mxu1 %v3937_v19  ;;  %v4339_v20 = vld [vmem:[%s4057_s14 + $0xe0] ss:$16 sps:$4 sm:$0xff]   ;;  %v4342_v21 = vld [vmem:[%s4057_s14 + $0xe8] ss:$16 sps:$4 sm:$0xff]   ;;  %v4346_v22 = vld [vmem:[%s4057_s14 + $0xc4] ss:$16 sps:$4 sm:$0xff]  }
 0x484   : > { %1872 = vmatprep.subr.bf16.mxu0 %v4330_v17  ;;  %1913 = vmatprep.subr.bf16.mxu1 %v4333_v18  ;;  %v4351_v23 = vld [vmem:[%s4057_s14 + $0xcc] ss:$16 sps:$4 sm:$0xff]   ;;  %v4354_v24 = vld [vmem:[%s4057_s14 + $0xc0] ss:$16 sps:$4 sm:$0xff]   ;;  %v4358_v25 = vld [vmem:[%s4057_s14 + $0xc8] ss:$16 sps:$4 sm:$0xff]  }
 0x485   : > { %1873 = vmatpush1.bf16.msra.mxu0 %v4339_v20  ;;  %1914 = vmatpush1.bf16.msra.mxu1 %v4342_v21  ;;  %v4362_v26 = vld [vmem:[%s4057_s14 + $0xa4] ss:$16 sps:$4 sm:$0xff]   ;;  %v4365_v27 = vld [vmem:[%s4057_s14 + $0xac] ss:$16 sps:$4 sm:$0xff]   ;;  %v4368_v28 = vld [vmem:[%s4057_s14 + $0xa0] ss:$16 sps:$4 sm:$0xff]  }
 0x486   : > { %1874 = vmatprep.subr.bf16.mxu0 %v4346_v22  ;;  %1915 = vmatprep.subr.bf16.mxu1 %v4351_v23  ;;  %v4371_v29 = vld [vmem:[%s4057_s14 + $0xa8] ss:$16 sps:$4 sm:$0xff]   ;;  %v4376_v30 = vld [vmem:[%s4057_s14 + $0x84] ss:$16 sps:$4 sm:$0xff]   ;;  %v4381_v31 = vld [vmem:[%s4057_s14 + $0x8c] ss:$16 sps:$4 sm:$0xff]  }
 0x487   : > { %v4384_v32 = vld [vmem:[%s4057_s14 + $0x80] ss:$16 sps:$4 sm:$0xff]   ;;  %v4389_v33 = vld [vmem:[%s4057_s14 + $0x88] ss:$16 sps:$4 sm:$0xff]   ;;  %v4392_v60 = vld [vmem:[%s4057_s14 + $0x64] ss:$16 sps:$4 sm:$0xff]  }
 0x488   : > { %v4397_v61 = vld [vmem:[%s4057_s14 + $0x6c] ss:$16 sps:$4 sm:$0xff]   ;;  %v4400_v62 = vld [vmem:[%s4057_s14 + $0x60] ss:$16 sps:$4 sm:$0xff]   ;;  %v4403_v63 = vld [vmem:[%s4057_s14 + $0x68] ss:$16 sps:$4 sm:$0xff]  }
 0x489   : > { %1875 = vmatpush1.bf16.msra.mxu0 %v4354_v24  ;;  %1916 = vmatpush1.bf16.msra.mxu1 %v4358_v25  ;;  %v4408_v0 = vld [vmem:[%s4057_s14 + $0x44] ss:$16 sps:$4 sm:$0xff]   ;;  %v4413_v34 = vld [vmem:[%s4057_s14 + $0x4c] ss:$16 sps:$4 sm:$0xff]   ;;  %v4418_v35 = vld [vmem:[%s4057_s14 + $0x40] ss:$16 sps:$4 sm:$0xff]  }
 0x48a   : > { %1876 = vmatprep.subr.bf16.mxu0 %v4362_v26  ;;  %1917 = vmatprep.subr.bf16.mxu1 %v4365_v27  ;;  %v4421_v1 = vld [vmem:[%s4057_s14 + $0x48] ss:$16 sps:$4 sm:$0xff]   ;;  %v4426_v36 = vld [vmem:[%s4057_s14 + $0x24] ss:$16 sps:$4 sm:$0xff]   ;;  %v4429_v2 = vld [vmem:[%s4057_s14 + $0x2c] ss:$16 sps:$4 sm:$0xff]  }
 0x48b   : > { %v4434_v37 = vld [vmem:[%s4057_s14 + $0x20] ss:$16 sps:$4 sm:$0xff]   ;;  %v4437_v38 = vld [vmem:[%s4057_s14 + $0x28] ss:$16 sps:$4 sm:$0xff]   ;;  %v4442_v39 = vld [vmem:[%s4057_s14 + $0x4] ss:$16 sps:$4 sm:$0xff]  }
 0x48c   : > { %v4445_v40 = vld [vmem:[%s4057_s14 + $0xc] ss:$16 sps:$4 sm:$0xff]   ;;  %v4450_v41 = vld [vmem:[%s4057_s14] ss:$16 sps:$4 sm:$0xff]   ;;  %v4453_v42 = vld [vmem:[%s4057_s14 + $0x8] ss:$16 sps:$4 sm:$0xff]  }
 0x48d   : > { %1877 = vmatpush1.bf16.msra.mxu0 %v4368_v28  ;;  %1918 = vmatpush1.bf16.msra.mxu1 %v4371_v29  ;;  %v1678_v44 = vld [vmem:[#allocation2] sm:$0x3]  ;;  %v3938_v46 = vmov 1983009808   ;;  %v1964_v50 = vshrl.u32 %v1963_v48, 7  ;;  %v3381_v43 = vld [vmem:[%s4072_s12 + $0x18] sm:$0xff] }
 0x48e   : > { %1878 = vmatprep.subr.bf16.mxu0 %v4376_v30  ;;  %1919 = vmatprep.subr.bf16.mxu1 %v4381_v31  ;;  %v1679_v45 = vpack.c.bf16 %v1678_v44, %v1678_v44  ;;  %v1961_v47 = vunpack.c.l.s4 %v3938_v46  ;;  %v2003_v48 = vld [vmem:[#allocation3] sm:$0x3] }
 0x490   : > { %v1962_v49 = vunpack.c.0.s8 %v1961_v47 }
 0x491   : > { %1879 = vmatpush1.bf16.msra.mxu0 %v4384_v32  ;;  %1920 = vmatpush1.bf16.msra.mxu1 %v4389_v33 }
 0x492   : > { %1880 = vmatprep.subr.bf16.mxu0 %v4392_v60  ;;  %1921 = vmatprep.subr.bf16.mxu1 %v4397_v61  ;;  %v4495_v53 = vsub.s32 %v1962_v49, %v1964_v50 }
 0x495   : > { %1881 = vmatpush1.bf16.msra.mxu0 %v4400_v62  ;;  %1922 = vmatpush1.bf16.msra.mxu1 %v4403_v63 }
 0x496   : > { %1882 = vmatprep.subr.bf16.mxu0 %v4408_v0  ;;  %1923 = vmatprep.subr.bf16.mxu1 %v4413_v34 }
 0x499   : > { %1883 = vmatpush1.bf16.msra.mxu0 %v4418_v35  ;;  %1924 = vmatpush1.bf16.msra.mxu1 %v4421_v1 }
 0x49a   : > { %1884 = vmatprep.subr.bf16.mxu0 %v4426_v36  ;;  %1925 = vmatprep.subr.bf16.mxu1 %v4429_v2 }
 0x49d   : > { %1885 = vmatpush1.bf16.msra.mxu0 %v4434_v37  ;;  %1926 = vmatpush1.bf16.msra.mxu1 %v4437_v38 }
 0x49e   : > { %1886 = vmatprep.subr.bf16.mxu0 %v4442_v39  ;;  %1927 = vmatprep.subr.bf16.mxu1 %v4445_v40 }
 0x4a1   : > { %1887 = vmatpush1.bf16.msra.mxu0 %v4450_v41  ;;  %1928 = vmatpush1.bf16.msra.mxu1 %v4453_v42 }
 0x4a2   : > { %2210 = vmatprep.subr.bf16.mxu0 %v4330_v17  ;;  %2251 = vmatprep.subr.bf16.mxu1 %v4333_v18 }
 0x4a4   : > { %1905 = vmatmul.mubr.bf16.vlgmr.msra.gmra.mxu0 %v1679_v45  ;;  %1946 = vmatmul.mubr.bf16.vlgmr.msra.gmra.mxu1 %v1679_v45 }
 0x4a5   : > { %2211 = vmatpush1.bf16.msra.mxu0 %v4339_v20  ;;  %2252 = vmatpush1.bf16.msra.mxu1 %v4342_v21 }
 0x4a6   : > { %2212 = vmatprep.subr.bf16.mxu0 %v4346_v22  ;;  %2253 = vmatprep.subr.bf16.mxu1 %v4351_v23 }
 0x4a7   : > { %2242 = vmatprep.mubr.bf16.mxu0 %v3937_v19  ;;  %2283 = vmatprep.mubr.bf16.mxu1 %v3937_v19 }
 0x4a9   : > { %2213 = vmatpush1.bf16.msra.mxu0 %v4354_v24  ;;  %2254 = vmatpush1.bf16.msra.mxu1 %v4358_v25 }
 0x4aa   : > { %2214 = vmatprep.subr.bf16.mxu0 %v4362_v26  ;;  %2255 = vmatprep.subr.bf16.mxu1 %v4365_v27 }
 0x4ad   : > { %2215 = vmatpush1.bf16.msra.mxu0 %v4368_v28  ;;  %2256 = vmatpush1.bf16.msra.mxu1 %v4371_v29 }
 0x4ae   : > { %2216 = vmatprep.subr.bf16.mxu0 %v4376_v30  ;;  %2257 = vmatprep.subr.bf16.mxu1 %v4381_v31 }
 0x4b1   : > { %2217 = vmatpush1.bf16.msra.mxu0 %v4384_v32  ;;  %2258 = vmatpush1.bf16.msra.mxu1 %v4389_v33 }
 0x4b2   : > { %2218 = vmatprep.subr.bf16.mxu0 %v4392_v60  ;;  %2259 = vmatprep.subr.bf16.mxu1 %v4397_v61 }
 0x4b5   : > { %2219 = vmatpush1.bf16.msra.mxu0 %v4400_v62  ;;  %2260 = vmatpush1.bf16.msra.mxu1 %v4403_v63 }
 0x4b6   : > { %2220 = vmatprep.subr.bf16.mxu0 %v4408_v0  ;;  %2261 = vmatprep.subr.bf16.mxu1 %v4413_v34 }
 0x4b9   : > { %2221 = vmatpush1.bf16.msra.mxu0 %v4418_v35  ;;  %2262 = vmatpush1.bf16.msra.mxu1 %v4421_v1 }
 0x4ba   : > { %2222 = vmatprep.subr.bf16.mxu0 %v4426_v36  ;;  %2263 = vmatprep.subr.bf16.mxu1 %v4429_v2 }
 0x4bd   : > { %2223 = vmatpush1.bf16.msra.mxu0 %v4434_v37  ;;  %2264 = vmatpush1.bf16.msra.mxu1 %v4437_v38 }
 0x4be   : > { %2224 = vmatprep.subr.bf16.mxu0 %v4442_v39  ;;  %2265 = vmatprep.subr.bf16.mxu1 %v4445_v40 }
 0x4c1   : > { %2225 = vmatpush1.bf16.msra.mxu0 %v4450_v41  ;;  %2266 = vmatpush1.bf16.msra.mxu1 %v4453_v42 }
 0x4c2   : > { %2548 = vmatprep.subr.bf16.mxu0 %v4330_v17  ;;  %2589 = vmatprep.subr.bf16.mxu1 %v4333_v18 }
 0x564   : > { %v1906_v51 = vpop.f32.mrf.mxu0  ;;  %v1947_v52 = vpop.f32.mrf.mxu1 }
 0x566   : > { %v1908_v54 = vpop.f32.mrf.mxu0  ;;  %v1949_v55 = vpop.f32.mrf.mxu1 }
 0x567   : > { %v1958_v56 = vcombine.low %v1906_v51, %v1908_v54  ;;  %v1959_v57 = vcombine.low %v1947_v52, %v1949_v55 }
 0x568   : > { %v1910_v58 = vpop.f32.mrf.mxu0  ;;  %v1951_v59 = vpop.f32.mrf.mxu1 }
 0x569   : > { %v1966_v3 = vrot.slane %v1958_v56, %v4495_v53  ;;  %v1973_v4 = vrot.slane %v1959_v57, %v4495_v53 }
 0x56a   : > { %v1911_v5 = vpop.f32.mrf.mxu0  ;;  %v1952_v6 = vpop.f32.mrf.mxu1 }
 0x56b   : > { %v1974_v7 = vcombine.low %v1966_v3, %v1973_v4 }
 0x56d   : > { %v1976_v8 = vadd.f32 %v3381_v43, %v1974_v7 }
 0x56f   : > { %v3414_v9 = vmul.f32 -1.442695, %v1976_v8  ;;  %v1984_v10 = vrot.slane %v1976_v8, 2  ;;  %v1995_v12 = vrot.slane %v1976_v8, 6  ;;  %v1992_v15 = vrot.slane %v1976_v8, 4 }
 0x571   : > { %3776 = vpow2.f32 %v3414_v9  ;;  %v3415_v11 = vmul.f32 -1.442695, %v1984_v10  ;;  %v3416_v13 = vmul.f32 -1.442695, %v1995_v12 }
 0x573   : > { %3778 = vpow2.f32 %v3415_v11 }
 0x574   : > { %3780 = vpow2.f32 %v3416_v13 }
 0x57e   : > { %v3777_v14 = vpop.eup %3776 }
 0x57f   : > { %v1980_v16 = vadd.f32 1.0, %v3777_v14  ;;  %v3418_v14 = vld [vmem:[%s4072_s12 + $0x10] sm:$0xff] }
 0x580   : > { %v3779_v44 = vpop.eup %3778 }
 0x581   : > { %3782 = vrcp.f32 %v1980_v16  ;;  %v1989_v45 = vadd.f32 1.0, %v3779_v44  ;;  %v3781_v46 = vpop.eup %3780 }
 0x582   : > { %3784 = vtanh.f32 %v1992_v15  ;;  %v2000_v51 = vadd.f32 1.0, %v3781_v46 }
 0x583   : > { %3786 = vrcp.f32 %v1989_v45 }
 0x584   : > { %3788 = vrcp.f32 %v2000_v51 }
 0x58e   : > { %v3783_v47 = vpop.eup %3782 }
 0x58f   : > { %v3785_v49 = vpop.eup %3784 }
 0x590   : > { %v3787_v50 = vpop.eup %3786  ;;  %v2005_v54 = vmul.f32 %v3785_v49, %v3783_v47 }
 0x591   : > { %v2004_v52 = vmul.f32 %v3787_v50, %v2003_v48  ;;  %v3789_v56 = vpop.eup %3788 }
 0x593   : > { %v2006_v55 = vadd.f32 %v2005_v54, %v2004_v52 }
 0x595   : > { %3790 = vtanh.f32 %v2006_v55  ;;  %2009 = vst [vmem:[#allocation3] sm:$0x3] %v2006_v55 }
 0x5a2   : > { %v3791_v57 = vpop.eup %3790 }
 0x5a3   : > { %v2008_v58 = vmul.f32 %v3791_v57, %v3789_v56 }
 0x5a5   : > { %2010 = vst [vmem:[#allocation2] sm:$0x3] %v2008_v58  ;;  %v2011_v59 = vpack.c.bf16 %v2008_v58, %v2008_v58 }
 0x5a7   : > { %3417 = vst [vmem:[%s4074_s11 + $0x3] sm:$0x1] %v2011_v59 }
 0x5ac   : > { %v2016_v3 = vld [vmem:[#allocation2] sm:$0x3] }
 0x5ad   : > { %v2017_v4 = vpack.c.bf16 %v2016_v3, %v2016_v3  ;;  %v2341_v3 = vld [vmem:[#allocation3] sm:$0x3] }
 0x5af   : > { %2243 = vmatmul.mubr.bf16.vlgmr.msra.gmra.mxu0 %v2017_v4  ;;  %2284 = vmatmul.mubr.bf16.vlgmr.msra.gmra.mxu1 %v2017_v4 }
 0x5b0   : > { %2549 = vmatpush1.bf16.msra.mxu0 %v4339_v20  ;;  %2590 = vmatpush1.bf16.msra.mxu1 %v4342_v21 }
 0x5b1   : > { %2550 = vmatprep.subr.bf16.mxu0 %v4346_v22  ;;  %2591 = vmatprep.subr.bf16.mxu1 %v4351_v23 }
 0x5b2   : > { %2580 = vmatprep.mubr.bf16.mxu0 %v3937_v19  ;;  %2621 = vmatprep.mubr.bf16.mxu1 %v3937_v19 }
 0x5b4   : > { %2551 = vmatpush1.bf16.msra.mxu0 %v4354_v24  ;;  %2592 = vmatpush1.bf16.msra.mxu1 %v4358_v25 }
 0x5b5   : > { %2552 = vmatprep.subr.bf16.mxu0 %v4362_v26  ;;  %2593 = vmatprep.subr.bf16.mxu1 %v4365_v27 }
 0x5b8   : > { %2553 = vmatpush1.bf16.msra.mxu0 %v4368_v28  ;;  %2594 = vmatpush1.bf16.msra.mxu1 %v4371_v29 }
 0x5b9   : > { %2554 = vmatprep.subr.bf16.mxu0 %v4376_v30  ;;  %2595 = vmatprep.subr.bf16.mxu1 %v4381_v31 }
 0x5bc   : > { %2555 = vmatpush1.bf16.msra.mxu0 %v4384_v32  ;;  %2596 = vmatpush1.bf16.msra.mxu1 %v4389_v33 }
 0x5bd   : > { %2556 = vmatprep.subr.bf16.mxu0 %v4392_v60  ;;  %2597 = vmatprep.subr.bf16.mxu1 %v4397_v61 }
 0x5c0   : > { %2557 = vmatpush1.bf16.msra.mxu0 %v4400_v62  ;;  %2598 = vmatpush1.bf16.msra.mxu1 %v4403_v63 }
 0x5c1   : > { %2558 = vmatprep.subr.bf16.mxu0 %v4408_v0  ;;  %2599 = vmatprep.subr.bf16.mxu1 %v4413_v34 }
 0x5c4   : > { %2559 = vmatpush1.bf16.msra.mxu0 %v4418_v35  ;;  %2600 = vmatpush1.bf16.msra.mxu1 %v4421_v1 }
 0x5c5   : > { %2560 = vmatprep.subr.bf16.mxu0 %v4426_v36  ;;  %2601 = vmatprep.subr.bf16.mxu1 %v4429_v2 }
 0x5c8   : > { %2561 = vmatpush1.bf16.msra.mxu0 %v4434_v37  ;;  %2602 = vmatpush1.bf16.msra.mxu1 %v4437_v38 }
 0x5c9   : > { %2562 = vmatprep.subr.bf16.mxu0 %v4442_v39  ;;  %2603 = vmatprep.subr.bf16.mxu1 %v4445_v40 }
 0x5cc   : > { %2563 = vmatpush1.bf16.msra.mxu0 %v4450_v41  ;;  %2604 = vmatpush1.bf16.msra.mxu1 %v4453_v42 }
 0x5cd   : > { %2885 = vmatprep.subr.bf16.mxu0 %v4330_v17  ;;  %2926 = vmatprep.subr.bf16.mxu1 %v4333_v18 }
 0x66f   : > { %v2244_v43 = vpop.f32.mrf.mxu0  ;;  %v2285_v5 = vpop.f32.mrf.mxu1 }
 0x671   : > { %v2246_v6 = vpop.f32.mrf.mxu0  ;;  %v2287_v7 = vpop.f32.mrf.mxu1 }
 0x672   : > { %v2296_v8 = vcombine.low %v2244_v43, %v2246_v6  ;;  %v2297_v9 = vcombine.low %v2285_v5, %v2287_v7 }
 0x673   : > { %v2248_v10 = vpop.f32.mrf.mxu0  ;;  %v2289_v11 = vpop.f32.mrf.mxu1 }
 0x674   : > { %v2304_v12 = vrot.slane %v2296_v8, %v4495_v53  ;;  %v2311_v13 = vrot.slane %v2297_v9, %v4495_v53 }
 0x675   : > { %v2249_v15 = vpop.f32.mrf.mxu0  ;;  %v2290_v16 = vpop.f32.mrf.mxu1 }
 0x676   : > { %v2312_v44 = vcombine.low %v2304_v12, %v2311_v13 }
 0x678   : > { %v2314_v45 = vadd.f32 %v3418_v14, %v2312_v44 }
 0x67a   : > { %v3451_v17 = vmul.f32 -1.442695, %v2314_v45  ;;  %v2322_v46 = vrot.slane %v2314_v45, 2  ;;  %v2333_v47 = vrot.slane %v2314_v45, 6  ;;  %v2330_v50 = vrot.slane %v2314_v45, 4 }
 0x67c   : > { %3792 = vpow2.f32 %v3451_v17  ;;  %v3452_v18 = vmul.f32 -1.442695, %v2322_v46  ;;  %v3453_v48 = vmul.f32 -1.442695, %v2333_v47 }
 0x67e   : > { %3794 = vpow2.f32 %v3452_v18 }
 0x67f   : > { %3796 = vpow2.f32 %v3453_v48 }
 0x689   : > { %v3793_v49 = vpop.eup %3792 }
 0x68a   : > { %v2318_v51 = vadd.f32 1.0, %v3793_v49 }
 0x68b   : > { %v3795_v52 = vpop.eup %3794 }
 0x68c   : > { %3798 = vrcp.f32 %v2318_v51  ;;  %v2327_v54 = vadd.f32 1.0, %v3795_v52  ;;  %v3797_v55 = vpop.eup %3796 }
 0x68d   : > { %3800 = vtanh.f32 %v2330_v50  ;;  %v2338_v59 = vadd.f32 1.0, %v3797_v55 }
 0x68e   : > { %3802 = vrcp.f32 %v2327_v54 }
 0x68f   : > { %3804 = vrcp.f32 %v2338_v59 }
 0x699   : > { %v3799_v56 = vpop.eup %3798 }
 0x69a   : > { %v3801_v57 = vpop.eup %3800 }
 0x69b   : > { %v3803_v58 = vpop.eup %3802  ;;  %v2343_v43 = vmul.f32 %v3801_v57, %v3799_v56  ;;  %v2690_v57 = vld [vmem:[%s4072_s12] sm:$0xff] }
 0x69c   : > { %v2342_v4 = vmul.f32 %v3803_v58, %v2341_v3  ;;  %v3805_v6 = vpop.eup %3804 }
 0x69e   : > { %v2344_v5 = vadd.f32 %v2343_v43, %v2342_v4 }
 0x6a0   : > { %3806 = vtanh.f32 %v2344_v5  ;;  %2347 = vst [vmem:[#allocation3] sm:$0x3] %v2344_v5 }
 0x6ad   : > { %v3807_v7 = vpop.eup %3806 }
 0x6ae   : > { %v2346_v8 = vmul.f32 %v3807_v7, %v3805_v6 }
 0x6b0   : > { %2348 = vst [vmem:[#allocation2] sm:$0x3] %v2346_v8  ;;  %v2349_v9 = vpack.c.bf16 %v2346_v8, %v2346_v8 }
 0x6b2   : > { %3454 = vst [vmem:[%s4074_s11 + $0x2] sm:$0x1] %v2349_v9 }
 0x6b7   : > { %v2354_v10 = vld [vmem:[#allocation2] sm:$0x3] }
 0x6b8   : > { %v2355_v11 = vpack.c.bf16 %v2354_v10, %v2354_v10 }
 0x6ba   : > { %2581 = vmatmul.mubr.bf16.vlgmr.msra.gmra.mxu0 %v2355_v11  ;;  %2622 = vmatmul.mubr.bf16.vlgmr.msra.gmra.mxu1 %v2355_v11 }
 0x6bb   : > { %2886 = vmatpush1.bf16.msra.mxu0 %v4339_v20  ;;  %2927 = vmatpush1.bf16.msra.mxu1 %v4342_v21 }
 0x6bc   : > { %2887 = vmatprep.subr.bf16.mxu0 %v4346_v22  ;;  %2928 = vmatprep.subr.bf16.mxu1 %v4351_v23 }
 0x6bd   : > { %2917 = vmatprep.mubr.bf16.mxu0 %v3937_v19  ;;  %2958 = vmatprep.mubr.bf16.mxu1 %v3937_v19 }
 0x6bf   : > { %2888 = vmatpush1.bf16.msra.mxu0 %v4354_v24  ;;  %2929 = vmatpush1.bf16.msra.mxu1 %v4358_v25 }
 0x6c0   : > { %2889 = vmatprep.subr.bf16.mxu0 %v4362_v26  ;;  %2930 = vmatprep.subr.bf16.mxu1 %v4365_v27 }
 0x6c3   : > { %2890 = vmatpush1.bf16.msra.mxu0 %v4368_v28  ;;  %2931 = vmatpush1.bf16.msra.mxu1 %v4371_v29  ;;  %v3455_v29 = vld [vmem:[%s4072_s12 + $0x8] sm:$0xff] }
 0x6c4   : > { %2891 = vmatprep.subr.bf16.mxu0 %v4376_v30  ;;  %2932 = vmatprep.subr.bf16.mxu1 %v4381_v31 }
 0x6c7   : > { %2892 = vmatpush1.bf16.msra.mxu0 %v4384_v32  ;;  %2933 = vmatpush1.bf16.msra.mxu1 %v4389_v33 }
 0x6c8   : > { %2893 = vmatprep.subr.bf16.mxu0 %v4392_v60  ;;  %2934 = vmatprep.subr.bf16.mxu1 %v4397_v61 }
 0x6cb   : > { %2894 = vmatpush1.bf16.msra.mxu0 %v4400_v62  ;;  %2935 = vmatpush1.bf16.msra.mxu1 %v4403_v63 }
 0x6cc   : > { %2895 = vmatprep.subr.bf16.mxu0 %v4408_v0  ;;  %2936 = vmatprep.subr.bf16.mxu1 %v4413_v34 }
 0x6cf   : > { %2896 = vmatpush1.bf16.msra.mxu0 %v4418_v35  ;;  %2937 = vmatpush1.bf16.msra.mxu1 %v4421_v1 }
 0x6d0   : > { %2897 = vmatprep.subr.bf16.mxu0 %v4426_v36  ;;  %2938 = vmatprep.subr.bf16.mxu1 %v4429_v2 }
 0x6d3   : > { %2898 = vmatpush1.bf16.msra.mxu0 %v4434_v37  ;;  %2939 = vmatpush1.bf16.msra.mxu1 %v4437_v38 }
 0x6d4   : > { %2899 = vmatprep.subr.bf16.mxu0 %v4442_v39  ;;  %2940 = vmatprep.subr.bf16.mxu1 %v4445_v40 }
 0x6d7   : > { %2900 = vmatpush1.bf16.msra.mxu0 %v4450_v41  ;;  %2941 = vmatpush1.bf16.msra.mxu1 %v4453_v42  ;;  %v2679_v42 = vld [vmem:[#allocation3] sm:$0x3] }
 0x77a   : > { %v2582_v19 = vpop.f32.mrf.mxu0  ;;  %v2623_v20 = vpop.f32.mrf.mxu1 }
 0x77c   : > { %v2584_v21 = vpop.f32.mrf.mxu0  ;;  %v2625_v22 = vpop.f32.mrf.mxu1 }
 0x77d   : > { %v2634_v23 = vcombine.low %v2582_v19, %v2584_v21  ;;  %v2635_v24 = vcombine.low %v2623_v20, %v2625_v22 }
 0x77e   : > { %v2586_v25 = vpop.f32.mrf.mxu0  ;;  %v2627_v26 = vpop.f32.mrf.mxu1 }
 0x77f   : > { %v2642_v27 = vrot.slane %v2634_v23, %v4495_v53  ;;  %v2649_v28 = vrot.slane %v2635_v24, %v4495_v53 }
 0x780   : > { %v2587_v30 = vpop.f32.mrf.mxu0  ;;  %v2628_v31 = vpop.f32.mrf.mxu1 }
 0x781   : > { %v2650_v32 = vcombine.low %v2642_v27, %v2649_v28 }
 0x783   : > { %v2652_v33 = vadd.f32 %v3455_v29, %v2650_v32 }
 0x785   : > { %v3488_v60 = vmul.f32 -1.442695, %v2652_v33  ;;  %v2660_v61 = vrot.slane %v2652_v33, 2  ;;  %v2671_v63 = vrot.slane %v2652_v33, 6  ;;  %v2668_v35 = vrot.slane %v2652_v33, 4 }
 0x787   : > { %3808 = vpow2.f32 %v3488_v60  ;;  %v3489_v62 = vmul.f32 -1.442695, %v2660_v61  ;;  %v3490_v0 = vmul.f32 -1.442695, %v2671_v63 }
 0x789   : > { %3810 = vpow2.f32 %v3489_v62 }
 0x78a   : > { %3812 = vpow2.f32 %v3490_v0 }
 0x794   : > { %v3809_v34 = vpop.eup %3808 }
 0x795   : > { %v2656_v1 = vadd.f32 1.0, %v3809_v34 }
 0x796   : > { %v3811_v36 = vpop.eup %3810 }
 0x797   : > { %3814 = vrcp.f32 %v2656_v1  ;;  %v2665_v2 = vadd.f32 1.0, %v3811_v36  ;;  %v3813_v37 = vpop.eup %3812 }
 0x798   : > { %3816 = vtanh.f32 %v2668_v35  ;;  %v2676_v41 = vadd.f32 1.0, %v3813_v37 }
 0x799   : > { %3818 = vrcp.f32 %v2665_v2 }
 0x79a   : > { %3820 = vrcp.f32 %v2676_v41 }
 0x7a4   : > { %v3815_v38 = vpop.eup %3814 }
 0x7a5   : > { %v3817_v39 = vpop.eup %3816 }
 0x7a6   : > { %v3819_v40 = vpop.eup %3818  ;;  %v2681_v13 = vmul.f32 %v3817_v39, %v3815_v38 }
 0x7a7   : > { %v2680_v12 = vmul.f32 %v3819_v40, %v2679_v42  ;;  %v3821_v15 = vpop.eup %3820 }
 0x7a9   : > { %v2682_v14 = vadd.f32 %v2681_v13, %v2680_v12 }
 0x7ab   : > { %3822 = vtanh.f32 %v2682_v14  ;;  %2685 = vst [vmem:[#allocation3] sm:$0x3] %v2682_v14 }
 0x7b2   : > { %v3016_v25 = vld [vmem:[#allocation3] sm:$0x3] }
 0x7b8   : > { %v3823_v16 = vpop.eup %3822 }
 0x7b9   : > { %v2684_v44 = vmul.f32 %v3823_v16, %v3821_v15 }
 0x7bb   : > { %v2687_v45 = vpack.c.bf16 %v2684_v44, %v2684_v44  ;;  %2686 = vst [vmem:[#allocation2] sm:$0x3] %v2684_v44 }
 0x7bd   : > { %3491 = vst [vmem:[%s4074_s11 + $0x1] sm:$0x1] %v2687_v45 }
 0x7c2   : > { %v2691_v17 = vld [vmem:[#allocation2] sm:$0x3] }
 0x7c3   : > { %v2692_v46 = vpack.c.bf16 %v2691_v17, %v2691_v17 }
 0x7c5   : > { %2918 = vmatmul.mubr.bf16.vlgmr.msra.gmra.mxu0 %v2692_v46  ;;  %2959 = vmatmul.mubr.bf16.vlgmr.msra.gmra.mxu1 %v2692_v46 }
 0x885   : > { %v2919_v18 = vpop.f32.mrf.mxu0  ;;  %v2960_v47 = vpop.f32.mrf.mxu1 }
 0x887   : > { %v2921_v48 = vpop.f32.mrf.mxu0  ;;  %v2962_v49 = vpop.f32.mrf.mxu1 }
 0x888   : > { %v2971_v50 = vcombine.low %v2919_v18, %v2921_v48  ;;  %v2972_v51 = vcombine.low %v2960_v47, %v2962_v49 }
 0x889   : > { %v2923_v52 = vpop.f32.mrf.mxu0  ;;  %v2964_v54 = vpop.f32.mrf.mxu1 }
 0x88a   : > { %v2979_v55 = vrot.slane %v2971_v50, %v4495_v53  ;;  %v2986_v56 = vrot.slane %v2972_v51, %v4495_v53 }
 0x88b   : > { %v2924_v58 = vpop.f32.mrf.mxu0  ;;  %v2965_v59 = vpop.f32.mrf.mxu1 }
 0x88c   : > { %v2987_v3 = vcombine.low %v2979_v55, %v2986_v56 }
 0x88e   : > { %v2989_v4 = vadd.f32 %v2987_v3, %v2690_v57 }
 0x890   : > { %v3524_v43 = vmul.f32 -1.442695, %v2989_v4  ;;  %v2997_v5 = vrot.slane %v2989_v4, 2  ;;  %v3008_v7 = vrot.slane %v2989_v4, 6  ;;  %v3005_v10 = vrot.slane %v2989_v4, 4 }
 0x892   : > { %3824 = vpow2.f32 %v3524_v43  ;;  %v3525_v6 = vmul.f32 -1.442695, %v2997_v5  ;;  %v3526_v8 = vmul.f32 -1.442695, %v3008_v7 }
 0x894   : > { %3826 = vpow2.f32 %v3525_v6 }
 0x895   : > { %3828 = vpow2.f32 %v3526_v8 }
 0x89f   : > { %v3825_v9 = vpop.eup %3824 }
 0x8a0   : > { %v2993_v11 = vadd.f32 1.0, %v3825_v9 }
 0x8a1   : > { %v3827_v19 = vpop.eup %3826 }
 0x8a2   : > { %3830 = vrcp.f32 %v2993_v11  ;;  %v3002_v20 = vadd.f32 1.0, %v3827_v19  ;;  %v3829_v53 = vpop.eup %3828 }
 0x8a3   : > { %3832 = vtanh.f32 %v3005_v10  ;;  %v3013_v24 = vadd.f32 1.0, %v3829_v53 }
 0x8a4   : > { %3834 = vrcp.f32 %v3002_v20 }
 0x8a5   : > { %3836 = vrcp.f32 %v3013_v24 }
 0x8af   : > { %v3831_v21 = vpop.eup %3830 }
 0x8b0   : > { %v3833_v22 = vpop.eup %3832 }
 0x8b1   : > { %v3835_v23 = vpop.eup %3834  ;;  %v3018_v27 = vmul.f32 %v3833_v22, %v3831_v21 }
 0x8b2   : > { %v3017_v26 = vmul.f32 %v3835_v23, %v3016_v25  ;;  %v3837_v29 = vpop.eup %3836 }
 0x8b4   : > { %v3019_v28 = vadd.f32 %v3018_v27, %v3017_v26 }
 0x8b6   : > { %3838 = vtanh.f32 %v3019_v28  ;;  %3022 = vst [vmem:[#allocation3] sm:$0x3] %v3019_v28 }
 0x8c3   : > { %v3839_v30 = vpop.eup %3838 }
 0x8c4   : > { %v3021_v31 = vmul.f32 %v3839_v30, %v3837_v29 }
 0x8c6   : > { %3023 = vst [vmem:[#allocation2] sm:$0x3] %v3021_v31  ;;  %v3024_v32 = vpack.c.bf16 %v3021_v31, %v3021_v31 }
 0x8c8   : > { %3025 = vst [vmem:[%s4074_s11] sm:$0x1] %v3024_v32 }
 0x8c9 PF: > { %p3527_p3 = scmp.ne.s32.totalorder %s3916_s18, 1 }
 0x8cb   : > { %3029 = sbr.rel (%p3527_p3) target bundleno = 2258 (0x8d2), region = 44 }
 0x8d0   : > { %v3030_v33 = vld [vmem:[#allocation2] sm:$0x3]  ;;  %v3032_v60 = vld [vmem:[#allocation3] sm:$0x3] }
 0x8d1   : > { %3031 = vst [vmem:[%s4062_s29] sm:$0x3] %v3030_v33  ;;  %3033 = vst [vmem:[%s4067_s23] sm:$0x3] %v3032_v60 }
 0x8d2 PF: > { %s3536_s15 = sshll.u32 %s4050_s6, 3  ;;  %s3062_s20 = sshll.u32 %s4074_s11, 4  ;;  %s4585_s20 = int_to_ptr.vmem [resolvable:$true] %s3062_s20 }
 0x8d3   : > { %s3059_s17 = sadd.s32 %s3920_s19, %s3536_s15  ;;  %s4668_s8 = sand.u32 1, %s3908_s16  }
 0x8d4   : > { %s3532_s21 = sshll.u32 %s3059_s17, 4  ;;  %s4594_s23 = scalar_lea.sflag [#allocation5], %s4668_s8 }
 0x8d5   : > { %s4590_s25 = scalar_lea.hbm %s4647_s2, %s3532_s21  ;;  %s3840_s26 = scalar_lea.vmem %s4585_s20, 64 }
 0x8d6   : > { %p3841_p4 = scmp.ne.s32.totalorder %s4585_s20, %s3840_s26  ;;  %s3939_s19 = smov [#allocation4]  }
 0x8d7   : > { %s3844_s28 = sshll.u32 %s3939_s19, 4  ;;  %s3845_s28 = int_to_ptr.vmem [resolvable:$false] %s3844_s28 }
 0x8d8   : > { %p3842_p6 = pnand %p3841_p4, %p4023_p5  ;;  %s3846_s6 = scalar_lea.vmem %s3845_s28, 128 }
 0x8d9   : > { %p3847_p9 = scmp.lt.s32.totalorder %s4585_s20, %s3845_s28  ;;  %p3848_p10 = scmp.lt.s32.totalorder %s3846_s6, %s3840_s26 }
 0x8da   : > { %p3843_p8 = pneg %p3842_p6 }
 0x8db   : > { %p3849_p11 = por %p3848_p10, %p3847_p9 }
 0x8dd   : > { %p3850_p12 = pnand %p3849_p11, %p3843_p8 }
 0x8df   : > { %3853 = shalt.err (!%p3850_p12)
}
 0x8e0   : > { %s3854_s7 = scalar_lea.hbm %s4590_s25, 64  ;;  %s3858_s13 = scalar_lea.hbm %s4647_s2, 256 }
 0x8e1   : > { %p3855_p13 = scmp.ne.s32.totalorder %s4590_s25, %s3854_s7  ;;  %p3859_p2 = scmp.lt.s32.totalorder %s4590_s25, %s4647_s2 }
 0x8e2   : > { %p3860_p3 = scmp.lt.s32.totalorder %s3858_s13, %s3854_s7 }
 0x8e3   : > { %p3856_p0 = pnand %p3855_p13, %p4023_p5 }
 0x8e4   : > { %p3861_p4 = por %p3860_p3, %p3859_p2 }
 0x8e5   : > { %p3857_p1 = pneg %p3856_p0 }
 0x8e7   : > { %p3862_p6 = pnand %p3861_p4, %p3857_p1 }
 0x8e9   : > { %3865 = shalt.err (!%p3862_p6)
}
 0x8ea   : > { %s3940_s29 = smov 16   ;;  %s3941_s5 = smov 32  }
 0x8eb   : > { %s3942_s12 = smov 1  }
 0x8ec   : > { %3537 = dma.vmem_to_hbm [thread:$0]  (%p4023_p5), %s4585_s20, 64, %s4590_s25, %s4594_s23, %s3940_s29, %s3941_s5, %s3942_s12  }
 0x8ed PF: > { %s4669_s11 = sld [smem:[#allocation7_spill]]  ;;  %p3543_p8 = scmp.ge.s32.totalorder %s3932_s22, 2 }
 0x8ef   : > { %p3540_p9 = pnand %p3543_p8, %p4029_p7 }
 0x8f1   : > { %p3541_p10 = pneg %p3540_p9 }
 0x8f3   : > { %s3083_s17 = sand.u32 1, %s4669_s11  }
 0x8f4   : > { %s3084_s21 = scalar_lea.sflag [#allocation5], %s3083_s17 }
 0x8f5   : > { %3899 = dma.done.wait (%p3541_p10), %s3084_s21, 64  }
 0x8f6   : > { %3901 = vsyncadd (%p3541_p10), %s3084_s21, 4294967232  ;;  %s18_s22 = sadd.s32 1, %s3932_s22   ;;  %s4671_s18 = sld [smem:[#allocation8_spill]] }
 0x8f7   : > { %p15_p11 = scmp.ge.s32.totalorder %s18_s22, 6   ;;  %s4672_s17 = sld [smem:[#allocation14_spill]] }
 0x8f8   : > { %s4673_s30 = sld [smem:[#allocation9_spill]]  ;;  %s4677_s15 = smov %s3908_s16 }
 0x8f9   : > { %s4674_s19 = sld [smem:[#allocation10_spill]] }
 0x8fa   : > { %s4675_s20 = sld [smem:[#allocation11_spill]]  ;;  %17 = sbr.rel (!%p15_p11) target bundleno = 5 (0x5), region = 118 }
 0x8fb   : > { %s4676_s21 = sld [smem:[#allocation12_spill]] }
 0x8fc   : > { %s4678_s16 = smov %s4671_s18 }
 0x8fe   : > { %s4679_s18 = smov %s4673_s30 }
 0x8ff   :  { %3103 = vsyncpa [#allocation5], 1 }
 0x900   :  { %3105 = vsyncpa [#allocation5 + $0x1], 1 }

// kernel: encoder_forward.6
= control target key start
LH: loop header
LB: loop body
LE: loop exit
PB: predicated region body
PF: predicated region fallthrough
CT: control target
= control target key end

     0   :  { %s4932_s0 = inlined_call_operand.vmem [shape: f32[2,8,2,512], index: 0, kind: input, shape index: {}]   ;;  %s4933_s1 = inlined_call_operand.hbm [shape: bf16[2,128,512], index: 1, kind: input, shape index: {}]   ;;  %s4934_s2 = inlined_call_operand.vmem [shape: bf16[8,2,256], index: 2, kind: output, shape index: {0}]   ;;  %s4935_s3 = inlined_call_operand.hbm [shape: f32[2,256], index: 3, kind: output, shape index: {1}]   ;;  %s4936_s4 = inlined_call_operand.hbm [shape: f32[2,256], index: 4, kind: output, shape index: {2}]  }
   0x1   :  { %4943 = sst [smem:[#allocation19_spill]] %s4933_s1 }
   0x2   :  { %4944 = sst [smem:[#allocation20_spill]] %s4935_s3 }
   0x3   :  { %4945 = sst [smem:[#allocation21_spill]] %s4936_s4 }
   0x4   :  { %10 = vsyncpa [#allocation5], 0 }
   0x5   :  { %12 = vsyncpa [#allocation5 + $0x1], 0 }
   0x6   :  { %13 = vsyncpa [#allocation6], 0 }
   0x7   :  { %15 = vsyncpa [#allocation6 + $0x1], 0 }
   0x8   :  { %16 = vsyncpa [#allocation10], 0 }
   0x9   :  { %18 = vsyncpa [#allocation10 + $0x1], 0  ;;  %s4172_s15 = smov 0   ;;  %s4174_s16 = smov 0  }
   0xa   :  { %s4176_s17 = smov 0   ;;  %s4178_s18 = smov 0  }
   0xb   :  { %s4180_s19 = smov 0   ;;  %s4182_s20 = smov 0  }
   0xc   :  { %s4184_s21 = smov 0   ;;  %s4186_s22 = smov 0  }
   0xd   :  { %s4188_s23 = smov 0   ;;  %s4190_s24 = smov 0  }
   0xe LB: > { %4946 = sst [smem:[#allocation14_spill]] %s4127_s22  ;;  %s3306_s25 = sadd.s32 4294967295, %s4135_s24   ;;  %s4135_s24 = sphi %s4190_s24, %s24_s24   ;;  %s4131_s23 = sphi %s4188_s23, %s4965_s23   ;;  %s4127_s22 = sphi %s4186_s22, %s4964_s22   ;;  %s4123_s21 = sphi %s4184_s21, %s4963_s21   ;;  %s4119_s20 = sphi %s4182_s20, %s4962_s20   ;;  %s4115_s19 = sphi %s4180_s19, %s4970_s19   ;;  %s4111_s18 = sphi %s4178_s18, %s4969_s18   ;;  %s4107_s17 = sphi %s4176_s17, %s4968_s17   ;;  %s4103_s16 = sphi %s4174_s16, %s4967_s16   ;;  %s4099_s15 = sphi %s4172_s15, %s4966_s15  }
   0xf   : > { %4947 = sst [smem:[#allocation15_spill]] %s4131_s23  ;;  %s3307_s26 = sadd.s32 4294967294, %s4135_s24  }
  0x10   : > { %s33_s27 = sadd.s32 1, %s4127_s22  ;;  %s36_s28 = sadd.s32 1, %s4131_s23 }
  0x11   : > { %p34_p0 = scmp.ge.s32.totalorder %s33_s27, 2  ;;  %s79_s29 = sadd.s32 1, %s4115_s19 }
  0x12   : > { %p86_p1 = scmp.ne.s32.totalorder %s4115_s19, %s4111_s18  ;;  %p87_p2 = scmp.eq.s32.totalorder %s4135_s24, 0 }
  0x13   : > { %s4972_s27 = smov (%p34_p0, %s33_s27), 0  ;;  %s4974_s28 = smov (!%p34_p0, %s36_s28), %s4131_s23 }
  0x14   : > { %4948 = sst [smem:[#allocation16_spill]] %s4972_s27  ;;  %p4236_p3 = por %p87_p2, %p86_p1 }
  0x15   : > { %p92_p4 = scmp.ne.s32.totalorder %s4111_s18, %s4107_s17  ;;  %p38_p5 = scmp.ge.s32.totalorder %s4974_s28, 2 }
  0x16   : > { %p93_p6 = scmp.eq.s32.totalorder %s3306_s25, 0  ;;  %s3310_s5 = sshll.u32 %s4131_s23, 1 }
  0x17   : > { %s115_s6 = sadd.s32 1, %s4103_s16  ;;  %s4976_s28 = smov (%p38_p5, %s4974_s28), 0 }
  0x18   : > { %4950 = sst [smem:[#allocation17_spill]] %s4976_s28  ;;  %p4249_p7 = por %p93_p6, %p92_p4 }
  0x19   : > { %s103_s8 = ssub.s32 1, %s3310_s5  ;;  %s76_s9 = ssub.s32 %s4131_s23, %s4976_s28 }
  0x1a   : > { %s104_s10 = smul.u32 %s4127_s22, %s103_s8  ;;  %p77_p8 = scmp.eq.s32.totalorder %s76_s9, 0 }
  0x1b   : > { %s3311_s11 = sshll.u32 %s4976_s28, 1  ;;  %p125_p9 = scmp.ne.s32.totalorder %s4103_s16, %s4099_s15 }
  0x1c   : > { %s105_s12 = sadd.s32 %s4131_s23, %s104_s10  ;;  %s107_s13 = ssub.s32 1, %s3311_s11 }
  0x1d   : > { %s4259_s14 = scalar_select %p77_p8, %s4115_s19, %s79_s29  }
  0x1e   : > { %s108_s4 = smul.u32 %s107_s13, %s4972_s27  ;;  %p126_p10 = scmp.eq.s32.totalorder %s3306_s25, 3 }
  0x1f   : > { %4952 = sst [smem:[#allocation18_spill]] %s4259_s14  ;;  %p158_p11 = scmp.eq.s32.totalorder %s3307_s26, 3 }
  0x20   : > { %s109_s5 = sadd.s32 %s108_s4, %s4976_s28  ;;  %p4265_p12 = por %p126_p10, %p125_p9 }
  0x21   : > { %s110_s3 = ssub.s32 %s105_s12, %s109_s5  ;;  %p4272_p13 = por %p126_p10, %p86_p1 }
  0x22   : > { %s112_s22 = sor.u32 %s110_s3, %s76_s9  ;;  %p4279_p2 = por %p158_p11, %p92_p4 }
  0x23   : > { %p113_p0 = scmp.eq.s32.totalorder %s112_s22, 0  ;;  %p3652_p5 = scmp.lt.s32.totalorder %s4135_s24, 4 }
  0x24   : > { %s4955_s29 = scalar_select %p4279_p2, 1, 0 }
  0x25   : > { %s226_s4 = sand.u32 1, %s4115_s19   ;;  %s3633_s11 = sshll.u32 %s4131_s23, 12 }
  0x26   : > { %s4286_s25 = scalar_select %p113_p0, %s4103_s16, %s115_s6  }
  0x27   : > { %s3314_s26 = sshll.u32 %s226_s4, 8  ;;  %s4956_s1 = sld [smem:[#allocation19_spill]] }
  0x28   : > { %s230_s9 = scalar_lea.vmem [#allocation4], %s3314_s26  ;;  %p4294_p1 = pnand %p3652_p5, %p4236_p3 }
  0x29   : > { %s237_s5 = sshll.u32 %s230_s9, 4  ;;  %p3317_p4 = scmp.ge.s32.totalorder %s4135_s24, 1  ;;  %s238_s5 = int_to_ptr.vmem [resolvable:$true] %s237_s5 }
  0x2a   : > { %s227_s28 = scalar_lea.sflag [#allocation5], %s226_s4  ;;  %p3967_p6 = pneg %p4294_p1 }
  0x2b   : > { %s3978_s6 = scalar_lea.vmem %s238_s5, 4096  ;;  %s4137_s27 = smov [#allocation4]  }
  0x2c   : > { %p3979_p8 = scmp.ne.s32.totalorder %s238_s5, %s3978_s6  ;;  %s3983_s12 = sshll.u32 %s4137_s27, 4  ;;  %s3984_s12 = int_to_ptr.vmem [resolvable:$false] %s3983_s12 }
  0x2d   : > { %s236_s3 = scalar_lea.hbm %s4956_s1, %s3633_s11  ;;  %s3985_s26 = scalar_lea.vmem %s3984_s12, 8192 }
  0x2e   : > { %p3981_p9 = pnand %p3979_p8, %p3967_p6  ;;  %p3986_p11 = scmp.lt.s32.totalorder %s238_s5, %s3984_s12 }
  0x2f   : > { %p3987_p0 = scmp.lt.s32.totalorder %s3985_s26, %s3978_s6 }
  0x30   : > { %p3982_p10 = pneg %p3981_p9 }
  0x31   : > { %p3988_p2 = por %p3987_p0, %p3986_p11 }
  0x33   : > { %p3989_p3 = pnand %p3988_p2, %p3982_p10 }
  0x35   : > { %3992 = shalt.err (!%p3989_p3)
}
  0x36   : > { %s4138_s30 = smov 256   ;;  %s4139_s4 = smov 16  }
  0x37   : > { %3644 = dma.hbm_to_vmem [thread:$0]  (!%p4294_p1), %s236_s3, 4096, %s238_s5, %s227_s28, %s4138_s30, %s4138_s30, %s4139_s4  }
  0x38   : > { %p245_p5 = scmp.lt.s32.totalorder %s4135_s24, 5 }
  0x3a   : > { %p246_p6 = pnand %p3317_p4, %p245_p5 }
  0x3b   : > { %s4307_s27 = sand.u32 (!%p246_p6), 1, %s4111_s18  }
  0x3c   : > { %249 = sbr.rel (%p246_p6) target bundleno = 2348 (0x92c), region = 28  ;;  %s3318_s11 = sshll.u32 (!%p246_p6), %s4307_s27, 8 }
  0x3d   : > { %s252_s13 = scalar_lea.sflag (!%p246_p6), [#allocation5], %s4307_s27  ;;  %s4311_s9 = scalar_lea.vmem (!%p246_p6), [#allocation4], %s3318_s11 }
  0x41   : > { %4086 = dma.done.wait (%p4249_p7), %s252_s13, 4096  }
  0x42   : > { %4088 = vsyncadd (%p4249_p7), %s252_s13, 4294963200  ;;  %s286_s28 = sand.u32 1, %s4099_s15   ;;  %s3320_s3 = sshll.u32 %s4307_s27, 1 }
  0x43   : > { %s3319_s5 = sshll.u32 %s286_s28, 2  ;;  %s3322_s22 = sshll.u32 %s4123_s21, 1 }
  0x44   : > { %p308_p2 = scmp.lt.s32.totalorder %s4123_s21, 1  ;;  %s304_s6 = ssub.s32 1, %s3322_s22 }
  0x45   : > { %s305_s12 = smul.u32 %s4119_s20, %s304_s6  ;;  %s4332_s28 = scalar_lea.vmem [#allocation7], %s3319_s5 }
  0x46   : > { %s309_s26 = scalar_select %p308_p2, %s4123_s21, 1 }
  0x47   : > { %s4324_s30 = sadd.s32 %s4123_s21, %s305_s12  ;;  %s4334_s22 = scalar_lea.vmem [#allocation8], %s3320_s3 }
  0x48   : > { %s3323_s7 = sshll.u32 %s4324_s30, 2  ;;  %s3325_s4 = sshll.u32 %s309_s26, 5 }
  0x49   : > { %p310_p7 = scmp.lt.s32.totalorder %s3323_s7, 7  ;;  %s4336_s6 = scalar_lea.vmem [#allocation9], %s3320_s3 }
  0x4a   : > { %p3327_p1 = scmp.ne.s32.totalorder %s4119_s20, 0 }
  0x4b   : > { %s4978_s7 = smov (!%p310_p7, %s3323_s7), 7 }
  0x4c   : > { %s3324_s11 = sshll.u32 %s4978_s7, 2  ;;  %331 = sbr.rel (%p3327_p1) target bundleno = 83 (0x53), region = 36 }
  0x4d   : > { %s314_s13 = sadd.s32 %s3325_s4, %s3324_s11 }
  0x4e   : > { %s3326_s1 = sshll.u32 %s314_s13, 1 }
  0x4f   : > { %s4330_s15 = scalar_lea.vmem %s4932_s0, %s3326_s1 }
  0x51   : > { %v4140_v0 = vmov 0.0  }
  0x52   : > { %332 = vst [vmem:[#allocation2] sm:$0x3] %v4140_v0  ;;  %333 = vst [vmem:[#allocation3] sm:$0x3] %v4140_v0 }
  0x53 PF: > { %p3328_p4 = scmp.ne.s32.totalorder %s4123_s21, 0 }
  0x55   : > { %337 = sbr.rel (%p3328_p4) target bundleno = 1185 (0x4a1), region = 40 }
  0x5a   : > { %v4341_v1 = vld [vmem:[%s4311_s9 + $0xe4] ss:$16 sps:$4 sm:$0xff]   ;;  %v4344_v2 = vld [vmem:[%s4311_s9 + $0xec] ss:$16 sps:$4 sm:$0xff]   ;;  %v4141_v3 = vmov 0   ;;  %v624_v38 = vlaneseq }
  0x5b   : > { %565 = vmatprep.mubr.bf16.mxu0 %v4141_v3  ;;  %606 = vmatprep.mubr.bf16.mxu1 %v4141_v3  ;;  %v4350_v4 = vld [vmem:[%s4311_s9 + $0xe0] ss:$16 sps:$4 sm:$0xff]   ;;  %v4353_v5 = vld [vmem:[%s4311_s9 + $0xe8] ss:$16 sps:$4 sm:$0xff]   ;;  %v4357_v6 = vld [vmem:[%s4311_s9 + $0xc4] ss:$16 sps:$4 sm:$0xff]  }
  0x5c   : > { %533 = vmatprep.subr.bf16.mxu0 %v4341_v1  ;;  %574 = vmatprep.subr.bf16.mxu1 %v4344_v2  ;;  %v4362_v7 = vld [vmem:[%s4311_s9 + $0xcc] ss:$16 sps:$4 sm:$0xff]   ;;  %v4365_v8 = vld [vmem:[%s4311_s9 + $0xc0] ss:$16 sps:$4 sm:$0xff]   ;;  %v4369_v9 = vld [vmem:[%s4311_s9 + $0xc8] ss:$16 sps:$4 sm:$0xff]  }
  0x5d   : > { %534 = vmatpush1.bf16.msra.mxu0 %v4350_v4  ;;  %575 = vmatpush1.bf16.msra.mxu1 %v4353_v5  ;;  %v4373_v10 = vld [vmem:[%s4311_s9 + $0xa4] ss:$16 sps:$4 sm:$0xff]   ;;  %v4376_v11 = vld [vmem:[%s4311_s9 + $0xac] ss:$16 sps:$4 sm:$0xff]   ;;  %v4379_v12 = vld [vmem:[%s4311_s9 + $0xa0] ss:$16 sps:$4 sm:$0xff]  }
  0x5e   : > { %535 = vmatprep.subr.bf16.mxu0 %v4357_v6  ;;  %576 = vmatprep.subr.bf16.mxu1 %v4362_v7  ;;  %v4382_v13 = vld [vmem:[%s4311_s9 + $0xa8] ss:$16 sps:$4 sm:$0xff]   ;;  %v4387_v14 = vld [vmem:[%s4311_s9 + $0x84] ss:$16 sps:$4 sm:$0xff]   ;;  %v4392_v15 = vld [vmem:[%s4311_s9 + $0x8c] ss:$16 sps:$4 sm:$0xff]  }
  0x5f   : > { %v4395_v16 = vld [vmem:[%s4311_s9 + $0x80] ss:$16 sps:$4 sm:$0xff]   ;;  %v4400_v17 = vld [vmem:[%s4311_s9 + $0x88] ss:$16 sps:$4 sm:$0xff]   ;;  %v4403_v18 = vld [vmem:[%s4311_s9 + $0x64] ss:$16 sps:$4 sm:$0xff]  }
  0x60   : > { %v4408_v19 = vld [vmem:[%s4311_s9 + $0x6c] ss:$16 sps:$4 sm:$0xff]   ;;  %v4411_v20 = vld [vmem:[%s4311_s9 + $0x60] ss:$16 sps:$4 sm:$0xff]   ;;  %v4414_v21 = vld [vmem:[%s4311_s9 + $0x68] ss:$16 sps:$4 sm:$0xff]  }
  0x61   : > { %536 = vmatpush1.bf16.msra.mxu0 %v4365_v8  ;;  %577 = vmatpush1.bf16.msra.mxu1 %v4369_v9  ;;  %v4419_v22 = vld [vmem:[%s4311_s9 + $0x44] ss:$16 sps:$4 sm:$0xff]   ;;  %v4424_v23 = vld [vmem:[%s4311_s9 + $0x4c] ss:$16 sps:$4 sm:$0xff]   ;;  %v4429_v24 = vld [vmem:[%s4311_s9 + $0x40] ss:$16 sps:$4 sm:$0xff]  }
  0x62   : > { %537 = vmatprep.subr.bf16.mxu0 %v4373_v10  ;;  %578 = vmatprep.subr.bf16.mxu1 %v4376_v11  ;;  %v4432_v25 = vld [vmem:[%s4311_s9 + $0x48] ss:$16 sps:$4 sm:$0xff]   ;;  %v4437_v26 = vld [vmem:[%s4311_s9 + $0x24] ss:$16 sps:$4 sm:$0xff]   ;;  %v4440_v27 = vld [vmem:[%s4311_s9 + $0x2c] ss:$16 sps:$4 sm:$0xff]  }
  0x63   : > { %v4445_v28 = vld [vmem:[%s4311_s9 + $0x20] ss:$16 sps:$4 sm:$0xff]   ;;  %v4448_v29 = vld [vmem:[%s4311_s9 + $0x28] ss:$16 sps:$4 sm:$0xff]   ;;  %v4453_v30 = vld [vmem:[%s4311_s9 + $0x4] ss:$16 sps:$4 sm:$0xff]  }
  0x64   : > { %v4456_v31 = vld [vmem:[%s4311_s9 + $0xc] ss:$16 sps:$4 sm:$0xff]   ;;  %v4461_v32 = vld [vmem:[%s4311_s9] ss:$16 sps:$4 sm:$0xff]   ;;  %v4464_v33 = vld [vmem:[%s4311_s9 + $0x8] ss:$16 sps:$4 sm:$0xff]  }
  0x65   : > { %538 = vmatpush1.bf16.msra.mxu0 %v4379_v12  ;;  %579 = vmatpush1.bf16.msra.mxu1 %v4382_v13  ;;  %v339_v34 = vld [vmem:[#allocation2] sm:$0x3]  ;;  %v4142_v36 = vmov 1983009808   ;;  %v625_v40 = vshrl.u32 %v624_v38, 7 }
  0x66   : > { %539 = vmatprep.subr.bf16.mxu0 %v4387_v14  ;;  %580 = vmatprep.subr.bf16.mxu1 %v4392_v15  ;;  %v340_v35 = vpack.c.bf16 %v339_v34, %v339_v34  ;;  %v622_v37 = vunpack.c.l.s4 %v4142_v36  ;;  %v338_v52 = vld [vmem:[%s4330_s15] sm:$0xff] }
  0x67   : > { %v664_v38 = vld [vmem:[#allocation3] sm:$0x3] }
  0x68   : > { %v623_v39 = vunpack.c.0.s8 %v622_v37 }
  0x69   : > { %540 = vmatpush1.bf16.msra.mxu0 %v4395_v16  ;;  %581 = vmatpush1.bf16.msra.mxu1 %v4400_v17 }
  0x6a   : > { %541 = vmatprep.subr.bf16.mxu0 %v4403_v18  ;;  %582 = vmatprep.subr.bf16.mxu1 %v4408_v19  ;;  %v4506_v43 = vsub.s32 %v623_v39, %v625_v40 }
  0x6d   : > { %542 = vmatpush1.bf16.msra.mxu0 %v4411_v20  ;;  %583 = vmatpush1.bf16.msra.mxu1 %v4414_v21 }
  0x6e   : > { %543 = vmatprep.subr.bf16.mxu0 %v4419_v22  ;;  %584 = vmatprep.subr.bf16.mxu1 %v4424_v23 }
  0x71   : > { %544 = vmatpush1.bf16.msra.mxu0 %v4429_v24  ;;  %585 = vmatpush1.bf16.msra.mxu1 %v4432_v25 }
  0x72   : > { %545 = vmatprep.subr.bf16.mxu0 %v4437_v26  ;;  %586 = vmatprep.subr.bf16.mxu1 %v4440_v27 }
  0x75   : > { %546 = vmatpush1.bf16.msra.mxu0 %v4445_v28  ;;  %587 = vmatpush1.bf16.msra.mxu1 %v4448_v29 }
  0x76   : > { %547 = vmatprep.subr.bf16.mxu0 %v4453_v30  ;;  %588 = vmatprep.subr.bf16.mxu1 %v4456_v31 }
  0x79   : > { %548 = vmatpush1.bf16.msra.mxu0 %v4461_v32  ;;  %589 = vmatpush1.bf16.msra.mxu1 %v4464_v33 }
  0x7a   : > { %870 = vmatprep.subr.bf16.mxu0 %v4341_v1  ;;  %911 = vmatprep.subr.bf16.mxu1 %v4344_v2 }
  0x7c   : > { %566 = vmatmul.mubr.bf16.vlgmr.msra.gmra.mxu0 %v340_v35  ;;  %607 = vmatmul.mubr.bf16.vlgmr.msra.gmra.mxu1 %v340_v35 }
  0x7d   : > { %871 = vmatpush1.bf16.msra.mxu0 %v4350_v4  ;;  %912 = vmatpush1.bf16.msra.mxu1 %v4353_v5 }
  0x7e   : > { %872 = vmatprep.subr.bf16.mxu0 %v4357_v6  ;;  %913 = vmatprep.subr.bf16.mxu1 %v4362_v7 }
  0x7f   : > { %902 = vmatprep.mubr.bf16.mxu0 %v4141_v3  ;;  %943 = vmatprep.mubr.bf16.mxu1 %v4141_v3 }
  0x81   : > { %873 = vmatpush1.bf16.msra.mxu0 %v4365_v8  ;;  %914 = vmatpush1.bf16.msra.mxu1 %v4369_v9 }
  0x82   : > { %874 = vmatprep.subr.bf16.mxu0 %v4373_v10  ;;  %915 = vmatprep.subr.bf16.mxu1 %v4376_v11 }
  0x85   : > { %875 = vmatpush1.bf16.msra.mxu0 %v4379_v12  ;;  %916 = vmatpush1.bf16.msra.mxu1 %v4382_v13 }
  0x86   : > { %876 = vmatprep.subr.bf16.mxu0 %v4387_v14  ;;  %917 = vmatprep.subr.bf16.mxu1 %v4392_v15 }
  0x89   : > { %877 = vmatpush1.bf16.msra.mxu0 %v4395_v16  ;;  %918 = vmatpush1.bf16.msra.mxu1 %v4400_v17 }
  0x8a   : > { %878 = vmatprep.subr.bf16.mxu0 %v4403_v18  ;;  %919 = vmatprep.subr.bf16.mxu1 %v4408_v19 }
  0x8d   : > { %879 = vmatpush1.bf16.msra.mxu0 %v4411_v20  ;;  %920 = vmatpush1.bf16.msra.mxu1 %v4414_v21 }
  0x8e   : > { %880 = vmatprep.subr.bf16.mxu0 %v4419_v22  ;;  %921 = vmatprep.subr.bf16.mxu1 %v4424_v23 }
  0x91   : > { %881 = vmatpush1.bf16.msra.mxu0 %v4429_v24  ;;  %922 = vmatpush1.bf16.msra.mxu1 %v4432_v25 }
  0x92   : > { %882 = vmatprep.subr.bf16.mxu0 %v4437_v26  ;;  %923 = vmatprep.subr.bf16.mxu1 %v4440_v27 }
  0x95   : > { %883 = vmatpush1.bf16.msra.mxu0 %v4445_v28  ;;  %924 = vmatpush1.bf16.msra.mxu1 %v4448_v29 }
  0x96   : > { %884 = vmatprep.subr.bf16.mxu0 %v4453_v30  ;;  %925 = vmatprep.subr.bf16.mxu1 %v4456_v31 }
  0x99   : > { %885 = vmatpush1.bf16.msra.mxu0 %v4461_v32  ;;  %926 = vmatpush1.bf16.msra.mxu1 %v4464_v33 }
  0x9a   : > { %1208 = vmatprep.subr.bf16.mxu0 %v4341_v1  ;;  %1249 = vmatprep.subr.bf16.mxu1 %v4344_v2 }
 0x13c   : > { %v567_v41 = vpop.f32.mrf.mxu0  ;;  %v608_v42 = vpop.f32.mrf.mxu1 }
 0x13e   : > { %v569_v44 = vpop.f32.mrf.mxu0  ;;  %v610_v45 = vpop.f32.mrf.mxu1 }
 0x13f   : > { %v619_v46 = vcombine.low %v567_v41, %v569_v44  ;;  %v620_v47 = vcombine.low %v608_v42, %v610_v45 }
 0x140   : > { %v571_v48 = vpop.f32.mrf.mxu0  ;;  %v612_v49 = vpop.f32.mrf.mxu1 }
 0x141   : > { %v627_v50 = vrot.slane %v619_v46, %v4506_v43  ;;  %v634_v51 = vrot.slane %v620_v47, %v4506_v43 }
 0x142   : > { %v572_v53 = vpop.f32.mrf.mxu0  ;;  %v613_v54 = vpop.f32.mrf.mxu1 }
 0x143   : > { %v635_v55 = vcombine.low %v627_v50, %v634_v51 }
 0x145   : > { %v637_v56 = vadd.f32 %v635_v55, %v338_v52 }
 0x147   : > { %v3361_v57 = vmul.f32 -1.442695, %v637_v56  ;;  %v645_v58 = vrot.slane %v637_v56, 2  ;;  %v656_v60 = vrot.slane %v637_v56, 6  ;;  %v653_v63 = vrot.slane %v637_v56, 4 }
 0x149   : > { %3789 = vpow2.f32 %v3361_v57  ;;  %v3362_v59 = vmul.f32 -1.442695, %v645_v58  ;;  %v3363_v61 = vmul.f32 -1.442695, %v656_v60 }
 0x14b   : > { %3791 = vpow2.f32 %v3362_v59 }
 0x14c   : > { %3793 = vpow2.f32 %v3363_v61 }
 0x156   : > { %v3790_v62 = vpop.eup %3789 }
 0x157   : > { %v641_v0 = vadd.f32 1.0, %v3790_v62  ;;  %v3364_v62 = vld [vmem:[%s4330_s15 + $0x8] sm:$0xff] }
 0x158   : > { %v3792_v34 = vpop.eup %3791 }
 0x159   : > { %3795 = vrcp.f32 %v641_v0  ;;  %v650_v35 = vadd.f32 1.0, %v3792_v34  ;;  %v3794_v36 = vpop.eup %3793 }
 0x15a   : > { %3797 = vtanh.f32 %v653_v63  ;;  %v661_v41 = vadd.f32 1.0, %v3794_v36 }
 0x15b   : > { %3799 = vrcp.f32 %v650_v35 }
 0x15c   : > { %3801 = vrcp.f32 %v661_v41 }
 0x166   : > { %v3796_v37 = vpop.eup %3795 }
 0x167   : > { %v3798_v39 = vpop.eup %3797 }
 0x168   : > { %v3800_v40 = vpop.eup %3799  ;;  %v666_v44 = vmul.f32 %v3798_v39, %v3796_v37 }
 0x169   : > { %v665_v42 = vmul.f32 %v3800_v40, %v664_v38  ;;  %v3802_v46 = vpop.eup %3801 }
 0x16b   : > { %v667_v45 = vadd.f32 %v666_v44, %v665_v42 }
 0x16d   : > { %3803 = vtanh.f32 %v667_v45  ;;  %670 = vst [vmem:[#allocation3] sm:$0x3] %v667_v45 }
 0x17a   : > { %v3804_v47 = vpop.eup %3803 }
 0x17b   : > { %v669_v48 = vmul.f32 %v3804_v47, %v3802_v46 }
 0x17d   : > { %671 = vst [vmem:[#allocation2] sm:$0x3] %v669_v48  ;;  %v672_v49 = vpack.c.bf16 %v669_v48, %v669_v48 }
 0x17f   : > { %673 = vst [vmem:[%s4332_s28] sm:$0x1] %v672_v49 }
 0x184   : > { %v676_v50 = vld [vmem:[#allocation2] sm:$0x3] }
 0x185   : > { %v677_v51 = vpack.c.bf16 %v676_v50, %v676_v50  ;;  %v1001_v50 = vld [vmem:[#allocation3] sm:$0x3] }
 0x187   : > { %903 = vmatmul.mubr.bf16.vlgmr.msra.gmra.mxu0 %v677_v51  ;;  %944 = vmatmul.mubr.bf16.vlgmr.msra.gmra.mxu1 %v677_v51 }
 0x188   : > { %1209 = vmatpush1.bf16.msra.mxu0 %v4350_v4  ;;  %1250 = vmatpush1.bf16.msra.mxu1 %v4353_v5 }
 0x189   : > { %1210 = vmatprep.subr.bf16.mxu0 %v4357_v6  ;;  %1251 = vmatprep.subr.bf16.mxu1 %v4362_v7 }
 0x18a   : > { %1240 = vmatprep.mubr.bf16.mxu0 %v4141_v3  ;;  %1281 = vmatprep.mubr.bf16.mxu1 %v4141_v3 }
 0x18c   : > { %1211 = vmatpush1.bf16.msra.mxu0 %v4365_v8  ;;  %1252 = vmatpush1.bf16.msra.mxu1 %v4369_v9 }
 0x18d   : > { %1212 = vmatprep.subr.bf16.mxu0 %v4373_v10  ;;  %1253 = vmatprep.subr.bf16.mxu1 %v4376_v11 }
 0x190   : > { %1213 = vmatpush1.bf16.msra.mxu0 %v4379_v12  ;;  %1254 = vmatpush1.bf16.msra.mxu1 %v4382_v13 }
 0x191   : > { %1214 = vmatprep.subr.bf16.mxu0 %v4387_v14  ;;  %1255 = vmatprep.subr.bf16.mxu1 %v4392_v15 }
 0x194   : > { %1215 = vmatpush1.bf16.msra.mxu0 %v4395_v16  ;;  %1256 = vmatpush1.bf16.msra.mxu1 %v4400_v17 }
 0x195   : > { %1216 = vmatprep.subr.bf16.mxu0 %v4403_v18  ;;  %1257 = vmatprep.subr.bf16.mxu1 %v4408_v19 }
 0x198   : > { %1217 = vmatpush1.bf16.msra.mxu0 %v4411_v20  ;;  %1258 = vmatpush1.bf16.msra.mxu1 %v4414_v21 }
 0x199   : > { %1218 = vmatprep.subr.bf16.mxu0 %v4419_v22  ;;  %1259 = vmatprep.subr.bf16.mxu1 %v4424_v23 }
 0x19c   : > { %1219 = vmatpush1.bf16.msra.mxu0 %v4429_v24  ;;  %1260 = vmatpush1.bf16.msra.mxu1 %v4432_v25 }
 0x19d   : > { %1220 = vmatprep.subr.bf16.mxu0 %v4437_v26  ;;  %1261 = vmatprep.subr.bf16.mxu1 %v4440_v27 }
 0x1a0   : > { %1221 = vmatpush1.bf16.msra.mxu0 %v4445_v28  ;;  %1262 = vmatpush1.bf16.msra.mxu1 %v4448_v29 }
 0x1a1   : > { %1222 = vmatprep.subr.bf16.mxu0 %v4453_v30  ;;  %1263 = vmatprep.subr.bf16.mxu1 %v4456_v31 }
 0x1a4   : > { %1223 = vmatpush1.bf16.msra.mxu0 %v4461_v32  ;;  %1264 = vmatpush1.bf16.msra.mxu1 %v4464_v33 }
 0x1a5   : > { %1546 = vmatprep.subr.bf16.mxu0 %v4341_v1  ;;  %1587 = vmatprep.subr.bf16.mxu1 %v4344_v2 }
 0x247   : > { %v904_v52 = vpop.f32.mrf.mxu0  ;;  %v945_v53 = vpop.f32.mrf.mxu1 }
 0x249   : > { %v906_v54 = vpop.f32.mrf.mxu0  ;;  %v947_v55 = vpop.f32.mrf.mxu1 }
 0x24a   : > { %v956_v56 = vcombine.low %v904_v52, %v906_v54  ;;  %v957_v57 = vcombine.low %v945_v53, %v947_v55 }
 0x24b   : > { %v908_v58 = vpop.f32.mrf.mxu0  ;;  %v949_v59 = vpop.f32.mrf.mxu1 }
 0x24c   : > { %v964_v60 = vrot.slane %v956_v56, %v4506_v43  ;;  %v971_v61 = vrot.slane %v957_v57, %v4506_v43 }
 0x24d   : > { %v909_v63 = vpop.f32.mrf.mxu0  ;;  %v950_v0 = vpop.f32.mrf.mxu1 }
 0x24e   : > { %v972_v34 = vcombine.low %v964_v60, %v971_v61 }
 0x250   : > { %v974_v35 = vadd.f32 %v3364_v62, %v972_v34 }
 0x252   : > { %v3397_v1 = vmul.f32 -1.442695, %v974_v35  ;;  %v982_v36 = vrot.slane %v974_v35, 2  ;;  %v993_v37 = vrot.slane %v974_v35, 6  ;;  %v990_v40 = vrot.slane %v974_v35, 4 }
 0x254   : > { %3805 = vpow2.f32 %v3397_v1  ;;  %v3398_v2 = vmul.f32 -1.442695, %v982_v36  ;;  %v3399_v38 = vmul.f32 -1.442695, %v993_v37 }
 0x256   : > { %3807 = vpow2.f32 %v3398_v2 }
 0x257   : > { %3809 = vpow2.f32 %v3399_v38 }
 0x261   : > { %v3806_v39 = vpop.eup %3805 }
 0x262   : > { %v978_v41 = vadd.f32 1.0, %v3806_v39 }
 0x263   : > { %v3808_v42 = vpop.eup %3807 }
 0x264   : > { %3811 = vrcp.f32 %v978_v41  ;;  %v987_v44 = vadd.f32 1.0, %v3808_v42  ;;  %v3810_v45 = vpop.eup %3809 }
 0x265   : > { %3813 = vtanh.f32 %v990_v40  ;;  %v998_v49 = vadd.f32 1.0, %v3810_v45 }
 0x266   : > { %3815 = vrcp.f32 %v987_v44 }
 0x267   : > { %3817 = vrcp.f32 %v998_v49 }
 0x271   : > { %v3812_v46 = vpop.eup %3811 }
 0x272   : > { %v3814_v47 = vpop.eup %3813 }
 0x273   : > { %v3816_v48 = vpop.eup %3815  ;;  %v1003_v52 = vmul.f32 %v3814_v47, %v3812_v46  ;;  %v3438_v47 = vld [vmem:[%s4330_s15 + $0x18] sm:$0xff] }
 0x274   : > { %v1002_v51 = vmul.f32 %v3816_v48, %v1001_v50  ;;  %v3818_v54 = vpop.eup %3817 }
 0x276   : > { %v1004_v53 = vadd.f32 %v1003_v52, %v1002_v51 }
 0x278   : > { %3819 = vtanh.f32 %v1004_v53  ;;  %1007 = vst [vmem:[#allocation3] sm:$0x3] %v1004_v53 }
 0x285   : > { %v3820_v55 = vpop.eup %3819 }
 0x286   : > { %v1006_v56 = vmul.f32 %v3820_v55, %v3818_v54 }
 0x288   : > { %1008 = vst [vmem:[#allocation2] sm:$0x3] %v1006_v56  ;;  %v1009_v57 = vpack.c.bf16 %v1006_v56, %v1006_v56 }
 0x28a   : > { %3400 = vst [vmem:[%s4332_s28 + $0x1] sm:$0x1] %v1009_v57 }
 0x28f   : > { %v1014_v58 = vld [vmem:[#allocation2] sm:$0x3] }
 0x290   : > { %v1015_v59 = vpack.c.bf16 %v1014_v58, %v1014_v58 }
 0x292   : > { %1241 = vmatmul.mubr.bf16.vlgmr.msra.gmra.mxu0 %v1015_v59  ;;  %1282 = vmatmul.mubr.bf16.vlgmr.msra.gmra.mxu1 %v1015_v59 }
 0x293   : > { %1547 = vmatpush1.bf16.msra.mxu0 %v4350_v4  ;;  %1588 = vmatpush1.bf16.msra.mxu1 %v4353_v5 }
 0x294   : > { %1548 = vmatprep.subr.bf16.mxu0 %v4357_v6  ;;  %1589 = vmatprep.subr.bf16.mxu1 %v4362_v7 }
 0x295   : > { %1578 = vmatprep.mubr.bf16.mxu0 %v4141_v3  ;;  %1619 = vmatprep.mubr.bf16.mxu1 %v4141_v3 }
 0x297   : > { %1549 = vmatpush1.bf16.msra.mxu0 %v4365_v8  ;;  %1590 = vmatpush1.bf16.msra.mxu1 %v4369_v9 }
 0x298   : > { %1550 = vmatprep.subr.bf16.mxu0 %v4373_v10  ;;  %1591 = vmatprep.subr.bf16.mxu1 %v4376_v11 }
 0x29b   : > { %1551 = vmatpush1.bf16.msra.mxu0 %v4379_v12  ;;  %1592 = vmatpush1.bf16.msra.mxu1 %v4382_v13  ;;  %v3401_v13 = vld [vmem:[%s4330_s15 + $0x10] sm:$0xff] }
 0x29c   : > { %1552 = vmatprep.subr.bf16.mxu0 %v4387_v14  ;;  %1593 = vmatprep.subr.bf16.mxu1 %v4392_v15 }
 0x29f   : > { %1553 = vmatpush1.bf16.msra.mxu0 %v4395_v16  ;;  %1594 = vmatpush1.bf16.msra.mxu1 %v4400_v17 }
 0x2a0   : > { %1554 = vmatprep.subr.bf16.mxu0 %v4403_v18  ;;  %1595 = vmatprep.subr.bf16.mxu1 %v4408_v19 }
 0x2a3   : > { %1555 = vmatpush1.bf16.msra.mxu0 %v4411_v20  ;;  %1596 = vmatpush1.bf16.msra.mxu1 %v4414_v21 }
 0x2a4   : > { %1556 = vmatprep.subr.bf16.mxu0 %v4419_v22  ;;  %1597 = vmatprep.subr.bf16.mxu1 %v4424_v23 }
 0x2a7   : > { %1557 = vmatpush1.bf16.msra.mxu0 %v4429_v24  ;;  %1598 = vmatpush1.bf16.msra.mxu1 %v4432_v25 }
 0x2a8   : > { %1558 = vmatprep.subr.bf16.mxu0 %v4437_v26  ;;  %1599 = vmatprep.subr.bf16.mxu1 %v4440_v27 }
 0x2ab   : > { %1559 = vmatpush1.bf16.msra.mxu0 %v4445_v28  ;;  %1600 = vmatpush1.bf16.msra.mxu1 %v4448_v29 }
 0x2ac   : > { %1560 = vmatprep.subr.bf16.mxu0 %v4453_v30  ;;  %1601 = vmatprep.subr.bf16.mxu1 %v4456_v31 }
 0x2af   : > { %1561 = vmatpush1.bf16.msra.mxu0 %v4461_v32  ;;  %1602 = vmatpush1.bf16.msra.mxu1 %v4464_v33  ;;  %v1339_v33 = vld [vmem:[#allocation3] sm:$0x3] }
 0x352   : > { %v1242_v3 = vpop.f32.mrf.mxu0  ;;  %v1283_v4 = vpop.f32.mrf.mxu1 }
 0x354   : > { %v1244_v5 = vpop.f32.mrf.mxu0  ;;  %v1285_v6 = vpop.f32.mrf.mxu1 }
 0x355   : > { %v1294_v7 = vcombine.low %v1242_v3, %v1244_v5  ;;  %v1295_v8 = vcombine.low %v1283_v4, %v1285_v6 }
 0x356   : > { %v1246_v9 = vpop.f32.mrf.mxu0  ;;  %v1287_v10 = vpop.f32.mrf.mxu1 }
 0x357   : > { %v1302_v11 = vrot.slane %v1294_v7, %v4506_v43  ;;  %v1309_v12 = vrot.slane %v1295_v8, %v4506_v43 }
 0x358   : > { %v1247_v14 = vpop.f32.mrf.mxu0  ;;  %v1288_v15 = vpop.f32.mrf.mxu1 }
 0x359   : > { %v1310_v16 = vcombine.low %v1302_v11, %v1309_v12 }
 0x35b   : > { %v1312_v17 = vadd.f32 %v3401_v13, %v1310_v16 }
 0x35d   : > { %v3434_v18 = vmul.f32 -1.442695, %v1312_v17  ;;  %v1320_v19 = vrot.slane %v1312_v17, 2  ;;  %v1331_v21 = vrot.slane %v1312_v17, 6  ;;  %v1328_v24 = vrot.slane %v1312_v17, 4 }
 0x35f   : > { %3821 = vpow2.f32 %v3434_v18  ;;  %v3435_v20 = vmul.f32 -1.442695, %v1320_v19  ;;  %v3436_v22 = vmul.f32 -1.442695, %v1331_v21 }
 0x361   : > { %3823 = vpow2.f32 %v3435_v20 }
 0x362   : > { %3825 = vpow2.f32 %v3436_v22 }
 0x36c   : > { %v3822_v23 = vpop.eup %3821 }
 0x36d   : > { %v1316_v25 = vadd.f32 1.0, %v3822_v23 }
 0x36e   : > { %v3824_v26 = vpop.eup %3823 }
 0x36f   : > { %3827 = vrcp.f32 %v1316_v25  ;;  %v1325_v27 = vadd.f32 1.0, %v3824_v26  ;;  %v3826_v28 = vpop.eup %3825 }
 0x370   : > { %3829 = vtanh.f32 %v1328_v24  ;;  %v1336_v32 = vadd.f32 1.0, %v3826_v28 }
 0x371   : > { %3831 = vrcp.f32 %v1325_v27 }
 0x372   : > { %3833 = vrcp.f32 %v1336_v32 }
 0x37c   : > { %v3828_v29 = vpop.eup %3827 }
 0x37d   : > { %v3830_v30 = vpop.eup %3829 }
 0x37e   : > { %v3832_v31 = vpop.eup %3831  ;;  %v1341_v61 = vmul.f32 %v3830_v30, %v3828_v29 }
 0x37f   : > { %v1340_v60 = vmul.f32 %v3832_v31, %v1339_v33  ;;  %v3834_v63 = vpop.eup %3833 }
 0x381   : > { %v1342_v62 = vadd.f32 %v1341_v61, %v1340_v60 }
 0x383   : > { %3835 = vtanh.f32 %v1342_v62  ;;  %1345 = vst [vmem:[#allocation3] sm:$0x3] %v1342_v62 }
 0x38a   : > { %v1677_v9 = vld [vmem:[#allocation3] sm:$0x3] }
 0x390   : > { %v3836_v0 = vpop.eup %3835 }
 0x391   : > { %v1344_v34 = vmul.f32 %v3836_v0, %v3834_v63 }
 0x393   : > { %v1347_v35 = vpack.c.bf16 %v1344_v34, %v1344_v34  ;;  %1346 = vst [vmem:[#allocation2] sm:$0x3] %v1344_v34 }
 0x395   : > { %3437 = vst [vmem:[%s4332_s28 + $0x2] sm:$0x1] %v1347_v35 }
 0x39a   : > { %v1352_v1 = vld [vmem:[#allocation2] sm:$0x3] }
 0x39b   : > { %v1353_v36 = vpack.c.bf16 %v1352_v1, %v1352_v1 }
 0x39d   : > { %1579 = vmatmul.mubr.bf16.vlgmr.msra.gmra.mxu0 %v1353_v36  ;;  %1620 = vmatmul.mubr.bf16.vlgmr.msra.gmra.mxu1 %v1353_v36 }
 0x45d   : > { %v1580_v2 = vpop.f32.mrf.mxu0  ;;  %v1621_v37 = vpop.f32.mrf.mxu1 }
 0x45f   : > { %v1582_v38 = vpop.f32.mrf.mxu0  ;;  %v1623_v39 = vpop.f32.mrf.mxu1 }
 0x460   : > { %v1632_v40 = vcombine.low %v1580_v2, %v1582_v38  ;;  %v1633_v41 = vcombine.low %v1621_v37, %v1623_v39 }
 0x461   : > { %v1584_v42 = vpop.f32.mrf.mxu0  ;;  %v1625_v44 = vpop.f32.mrf.mxu1 }
 0x462   : > { %v1640_v45 = vrot.slane %v1632_v40, %v4506_v43  ;;  %v1647_v46 = vrot.slane %v1633_v41, %v4506_v43 }
 0x463   : > { %v1585_v48 = vpop.f32.mrf.mxu0  ;;  %v1626_v49 = vpop.f32.mrf.mxu1 }
 0x464   : > { %v1648_v50 = vcombine.low %v1640_v45, %v1647_v46 }
 0x466   : > { %v1650_v51 = vadd.f32 %v3438_v47, %v1648_v50 }
 0x468   : > { %v3471_v52 = vmul.f32 -1.442695, %v1650_v51  ;;  %v1658_v53 = vrot.slane %v1650_v51, 2  ;;  %v1669_v55 = vrot.slane %v1650_v51, 6  ;;  %v1666_v58 = vrot.slane %v1650_v51, 4 }
 0x46a   : > { %3837 = vpow2.f32 %v3471_v52  ;;  %v3472_v54 = vmul.f32 -1.442695, %v1658_v53  ;;  %v3473_v56 = vmul.f32 -1.442695, %v1669_v55 }
 0x46c   : > { %3839 = vpow2.f32 %v3472_v54 }
 0x46d   : > { %3841 = vpow2.f32 %v3473_v56 }
 0x477   : > { %v3838_v57 = vpop.eup %3837 }
 0x478   : > { %v1654_v59 = vadd.f32 1.0, %v3838_v57 }
 0x479   : > { %v3840_v3 = vpop.eup %3839 }
 0x47a   : > { %3843 = vrcp.f32 %v1654_v59  ;;  %v1663_v4 = vadd.f32 1.0, %v3840_v3  ;;  %v3842_v43 = vpop.eup %3841 }
 0x47b   : > { %3845 = vtanh.f32 %v1666_v58  ;;  %v1674_v8 = vadd.f32 1.0, %v3842_v43 }
 0x47c   : > { %3847 = vrcp.f32 %v1663_v4 }
 0x47d   : > { %3849 = vrcp.f32 %v1674_v8 }
 0x487   : > { %v3844_v5 = vpop.eup %3843 }
 0x488   : > { %v3846_v6 = vpop.eup %3845 }
 0x489   : > { %v3848_v7 = vpop.eup %3847  ;;  %v1679_v11 = vmul.f32 %v3846_v6, %v3844_v5 }
 0x48a   : > { %v1678_v10 = vmul.f32 %v3848_v7, %v1677_v9  ;;  %v3850_v13 = vpop.eup %3849 }
 0x48c   : > { %v1680_v12 = vadd.f32 %v1679_v11, %v1678_v10 }
 0x48e   : > { %3851 = vtanh.f32 %v1680_v12  ;;  %1683 = vst [vmem:[#allocation3] sm:$0x3] %v1680_v12 }
 0x49b   : > { %v3852_v14 = vpop.eup %3851 }
 0x49c   : > { %v1682_v15 = vmul.f32 %v3852_v14, %v3850_v13 }
 0x49e   : > { %1684 = vst [vmem:[#allocation2] sm:$0x3] %v1682_v15  ;;  %v1685_v16 = vpack.c.bf16 %v1682_v15, %v1682_v15 }
 0x4a0   : > { %3474 = vst [vmem:[%s4332_s28 + $0x3] sm:$0x1] %v1685_v16 }
 0x4a1 PF: > { %p3475_p8 = scmp.ne.s32.totalorder %s4123_s21, 1 }
 0x4a3   : > { %1691 = sbr.rel (%p3475_p8) target bundleno = 2287 (0x8ef), region = 44 }
 0x4a8   : > { %v4592_v17 = vld [vmem:[%s4311_s9 + $0xe4] ss:$16 sps:$4 sm:$0xff]   ;;  %v4595_v18 = vld [vmem:[%s4311_s9 + $0xec] ss:$16 sps:$4 sm:$0xff]   ;;  %v4143_v19 = vmov 0   ;;  %v1979_v48 = vlaneseq }
 0x4a9   : > { %1920 = vmatprep.mubr.bf16.mxu0 %v4143_v19  ;;  %1961 = vmatprep.mubr.bf16.mxu1 %v4143_v19  ;;  %v4601_v20 = vld [vmem:[%s4311_s9 + $0xe0] ss:$16 sps:$4 sm:$0xff]   ;;  %v4604_v21 = vld [vmem:[%s4311_s9 + $0xe8] ss:$16 sps:$4 sm:$0xff]   ;;  %v4608_v22 = vld [vmem:[%s4311_s9 + $0xc4] ss:$16 sps:$4 sm:$0xff]  }
 0x4aa   : > { %1888 = vmatprep.subr.bf16.mxu0 %v4592_v17  ;;  %1929 = vmatprep.subr.bf16.mxu1 %v4595_v18  ;;  %v4613_v23 = vld [vmem:[%s4311_s9 + $0xcc] ss:$16 sps:$4 sm:$0xff]   ;;  %v4616_v24 = vld [vmem:[%s4311_s9 + $0xc0] ss:$16 sps:$4 sm:$0xff]   ;;  %v4620_v25 = vld [vmem:[%s4311_s9 + $0xc8] ss:$16 sps:$4 sm:$0xff]  }
 0x4ab   : > { %1889 = vmatpush1.bf16.msra.mxu0 %v4601_v20  ;;  %1930 = vmatpush1.bf16.msra.mxu1 %v4604_v21  ;;  %v4624_v26 = vld [vmem:[%s4311_s9 + $0xa4] ss:$16 sps:$4 sm:$0xff]   ;;  %v4627_v27 = vld [vmem:[%s4311_s9 + $0xac] ss:$16 sps:$4 sm:$0xff]   ;;  %v4630_v28 = vld [vmem:[%s4311_s9 + $0xa0] ss:$16 sps:$4 sm:$0xff]  }
 0x4ac   : > { %1890 = vmatprep.subr.bf16.mxu0 %v4608_v22  ;;  %1931 = vmatprep.subr.bf16.mxu1 %v4613_v23  ;;  %v4633_v29 = vld [vmem:[%s4311_s9 + $0xa8] ss:$16 sps:$4 sm:$0xff]   ;;  %v4638_v30 = vld [vmem:[%s4311_s9 + $0x84] ss:$16 sps:$4 sm:$0xff]   ;;  %v4643_v31 = vld [vmem:[%s4311_s9 + $0x8c] ss:$16 sps:$4 sm:$0xff]  }
 0x4ad   : > { %v4646_v32 = vld [vmem:[%s4311_s9 + $0x80] ss:$16 sps:$4 sm:$0xff]   ;;  %v4651_v33 = vld [vmem:[%s4311_s9 + $0x88] ss:$16 sps:$4 sm:$0xff]   ;;  %v4654_v60 = vld [vmem:[%s4311_s9 + $0x64] ss:$16 sps:$4 sm:$0xff]  }
 0x4ae   : > { %v4659_v61 = vld [vmem:[%s4311_s9 + $0x6c] ss:$16 sps:$4 sm:$0xff]   ;;  %v4662_v62 = vld [vmem:[%s4311_s9 + $0x60] ss:$16 sps:$4 sm:$0xff]   ;;  %v4665_v63 = vld [vmem:[%s4311_s9 + $0x68] ss:$16 sps:$4 sm:$0xff]  }
 0x4af   : > { %1891 = vmatpush1.bf16.msra.mxu0 %v4616_v24  ;;  %1932 = vmatpush1.bf16.msra.mxu1 %v4620_v25  ;;  %v4670_v0 = vld [vmem:[%s4311_s9 + $0x44] ss:$16 sps:$4 sm:$0xff]   ;;  %v4675_v34 = vld [vmem:[%s4311_s9 + $0x4c] ss:$16 sps:$4 sm:$0xff]   ;;  %v4680_v35 = vld [vmem:[%s4311_s9 + $0x40] ss:$16 sps:$4 sm:$0xff]  }
 0x4b0   : > { %1892 = vmatprep.subr.bf16.mxu0 %v4624_v26  ;;  %1933 = vmatprep.subr.bf16.mxu1 %v4627_v27  ;;  %v4683_v1 = vld [vmem:[%s4311_s9 + $0x48] ss:$16 sps:$4 sm:$0xff]   ;;  %v4688_v36 = vld [vmem:[%s4311_s9 + $0x24] ss:$16 sps:$4 sm:$0xff]   ;;  %v4691_v2 = vld [vmem:[%s4311_s9 + $0x2c] ss:$16 sps:$4 sm:$0xff]  }
 0x4b1   : > { %v4696_v37 = vld [vmem:[%s4311_s9 + $0x20] ss:$16 sps:$4 sm:$0xff]   ;;  %v4699_v38 = vld [vmem:[%s4311_s9 + $0x28] ss:$16 sps:$4 sm:$0xff]   ;;  %v4704_v39 = vld [vmem:[%s4311_s9 + $0x4] ss:$16 sps:$4 sm:$0xff]  }
 0x4b2   : > { %v4707_v40 = vld [vmem:[%s4311_s9 + $0xc] ss:$16 sps:$4 sm:$0xff]   ;;  %v4712_v41 = vld [vmem:[%s4311_s9] ss:$16 sps:$4 sm:$0xff]   ;;  %v4715_v42 = vld [vmem:[%s4311_s9 + $0x8] ss:$16 sps:$4 sm:$0xff]  }
 0x4b3   : > { %1893 = vmatpush1.bf16.msra.mxu0 %v4630_v28  ;;  %1934 = vmatpush1.bf16.msra.mxu1 %v4633_v29  ;;  %v1694_v44 = vld [vmem:[#allocation2] sm:$0x3]  ;;  %v4144_v46 = vmov 1983009808   ;;  %v1980_v50 = vshrl.u32 %v1979_v48, 7  ;;  %v3476_v43 = vld [vmem:[%s4330_s15 + $0x18] sm:$0xff] }
 0x4b4   : > { %1894 = vmatprep.subr.bf16.mxu0 %v4638_v30  ;;  %1935 = vmatprep.subr.bf16.mxu1 %v4643_v31  ;;  %v1695_v45 = vpack.c.bf16 %v1694_v44, %v1694_v44  ;;  %v1977_v47 = vunpack.c.l.s4 %v4144_v46  ;;  %v2019_v48 = vld [vmem:[#allocation3] sm:$0x3] }
 0x4b6   : > { %v1978_v49 = vunpack.c.0.s8 %v1977_v47 }
 0x4b7   : > { %1895 = vmatpush1.bf16.msra.mxu0 %v4646_v32  ;;  %1936 = vmatpush1.bf16.msra.mxu1 %v4651_v33 }
 0x4b8   : > { %1896 = vmatprep.subr.bf16.mxu0 %v4654_v60  ;;  %1937 = vmatprep.subr.bf16.mxu1 %v4659_v61  ;;  %v4757_v53 = vsub.s32 %v1978_v49, %v1980_v50 }
 0x4bb   : > { %1897 = vmatpush1.bf16.msra.mxu0 %v4662_v62  ;;  %1938 = vmatpush1.bf16.msra.mxu1 %v4665_v63 }
 0x4bc   : > { %1898 = vmatprep.subr.bf16.mxu0 %v4670_v0  ;;  %1939 = vmatprep.subr.bf16.mxu1 %v4675_v34 }
 0x4bf   : > { %1899 = vmatpush1.bf16.msra.mxu0 %v4680_v35  ;;  %1940 = vmatpush1.bf16.msra.mxu1 %v4683_v1 }
 0x4c0   : > { %1900 = vmatprep.subr.bf16.mxu0 %v4688_v36  ;;  %1941 = vmatprep.subr.bf16.mxu1 %v4691_v2 }
 0x4c3   : > { %1901 = vmatpush1.bf16.msra.mxu0 %v4696_v37  ;;  %1942 = vmatpush1.bf16.msra.mxu1 %v4699_v38 }
 0x4c4   : > { %1902 = vmatprep.subr.bf16.mxu0 %v4704_v39  ;;  %1943 = vmatprep.subr.bf16.mxu1 %v4707_v40 }
 0x4c7   : > { %1903 = vmatpush1.bf16.msra.mxu0 %v4712_v41  ;;  %1944 = vmatpush1.bf16.msra.mxu1 %v4715_v42 }
 0x4c8   : > { %2226 = vmatprep.subr.bf16.mxu0 %v4592_v17  ;;  %2267 = vmatprep.subr.bf16.mxu1 %v4595_v18 }
 0x4ca   : > { %1921 = vmatmul.mubr.bf16.vlgmr.msra.gmra.mxu0 %v1695_v45  ;;  %1962 = vmatmul.mubr.bf16.vlgmr.msra.gmra.mxu1 %v1695_v45 }
 0x4cb   : > { %2227 = vmatpush1.bf16.msra.mxu0 %v4601_v20  ;;  %2268 = vmatpush1.bf16.msra.mxu1 %v4604_v21 }
 0x4cc   : > { %2228 = vmatprep.subr.bf16.mxu0 %v4608_v22  ;;  %2269 = vmatprep.subr.bf16.mxu1 %v4613_v23 }
 0x4cd   : > { %2258 = vmatprep.mubr.bf16.mxu0 %v4143_v19  ;;  %2299 = vmatprep.mubr.bf16.mxu1 %v4143_v19 }
 0x4cf   : > { %2229 = vmatpush1.bf16.msra.mxu0 %v4616_v24  ;;  %2270 = vmatpush1.bf16.msra.mxu1 %v4620_v25 }
 0x4d0   : > { %2230 = vmatprep.subr.bf16.mxu0 %v4624_v26  ;;  %2271 = vmatprep.subr.bf16.mxu1 %v4627_v27 }
 0x4d3   : > { %2231 = vmatpush1.bf16.msra.mxu0 %v4630_v28  ;;  %2272 = vmatpush1.bf16.msra.mxu1 %v4633_v29 }
 0x4d4   : > { %2232 = vmatprep.subr.bf16.mxu0 %v4638_v30  ;;  %2273 = vmatprep.subr.bf16.mxu1 %v4643_v31 }
 0x4d7   : > { %2233 = vmatpush1.bf16.msra.mxu0 %v4646_v32  ;;  %2274 = vmatpush1.bf16.msra.mxu1 %v4651_v33 }
 0x4d8   : > { %2234 = vmatprep.subr.bf16.mxu0 %v4654_v60  ;;  %2275 = vmatprep.subr.bf16.mxu1 %v4659_v61 }
 0x4db   : > { %2235 = vmatpush1.bf16.msra.mxu0 %v4662_v62  ;;  %2276 = vmatpush1.bf16.msra.mxu1 %v4665_v63 }
 0x4dc   : > { %2236 = vmatprep.subr.bf16.mxu0 %v4670_v0  ;;  %2277 = vmatprep.subr.bf16.mxu1 %v4675_v34 }
 0x4df   : > { %2237 = vmatpush1.bf16.msra.mxu0 %v4680_v35  ;;  %2278 = vmatpush1.bf16.msra.mxu1 %v4683_v1 }
 0x4e0   : > { %2238 = vmatprep.subr.bf16.mxu0 %v4688_v36  ;;  %2279 = vmatprep.subr.bf16.mxu1 %v4691_v2 }
 0x4e3   : > { %2239 = vmatpush1.bf16.msra.mxu0 %v4696_v37  ;;  %2280 = vmatpush1.bf16.msra.mxu1 %v4699_v38 }
 0x4e4   : > { %2240 = vmatprep.subr.bf16.mxu0 %v4704_v39  ;;  %2281 = vmatprep.subr.bf16.mxu1 %v4707_v40 }
 0x4e7   : > { %2241 = vmatpush1.bf16.msra.mxu0 %v4712_v41  ;;  %2282 = vmatpush1.bf16.msra.mxu1 %v4715_v42 }
 0x4e8   : > { %2564 = vmatprep.subr.bf16.mxu0 %v4592_v17  ;;  %2605 = vmatprep.subr.bf16.mxu1 %v4595_v18 }
 0x58a   : > { %v1922_v51 = vpop.f32.mrf.mxu0  ;;  %v1963_v52 = vpop.f32.mrf.mxu1 }
 0x58c   : > { %v1924_v54 = vpop.f32.mrf.mxu0  ;;  %v1965_v55 = vpop.f32.mrf.mxu1 }
 0x58d   : > { %v1974_v56 = vcombine.low %v1922_v51, %v1924_v54  ;;  %v1975_v57 = vcombine.low %v1963_v52, %v1965_v55 }
 0x58e   : > { %v1926_v58 = vpop.f32.mrf.mxu0  ;;  %v1967_v59 = vpop.f32.mrf.mxu1 }
 0x58f   : > { %v1982_v3 = vrot.slane %v1974_v56, %v4757_v53  ;;  %v1989_v4 = vrot.slane %v1975_v57, %v4757_v53 }
 0x590   : > { %v1927_v5 = vpop.f32.mrf.mxu0  ;;  %v1968_v6 = vpop.f32.mrf.mxu1 }
 0x591   : > { %v1990_v7 = vcombine.low %v1982_v3, %v1989_v4 }
 0x593   : > { %v1992_v8 = vadd.f32 %v3476_v43, %v1990_v7 }
 0x595   : > { %v3509_v9 = vmul.f32 -1.442695, %v1992_v8  ;;  %v2000_v10 = vrot.slane %v1992_v8, 2  ;;  %v2011_v12 = vrot.slane %v1992_v8, 6  ;;  %v2008_v15 = vrot.slane %v1992_v8, 4 }
 0x597   : > { %3901 = vpow2.f32 %v3509_v9  ;;  %v3510_v11 = vmul.f32 -1.442695, %v2000_v10  ;;  %v3511_v13 = vmul.f32 -1.442695, %v2011_v12 }
 0x599   : > { %3903 = vpow2.f32 %v3510_v11 }
 0x59a   : > { %3905 = vpow2.f32 %v3511_v13 }
 0x5a4   : > { %v3902_v14 = vpop.eup %3901 }
 0x5a5   : > { %v1996_v16 = vadd.f32 1.0, %v3902_v14  ;;  %v3513_v14 = vld [vmem:[%s4330_s15 + $0x10] sm:$0xff] }
 0x5a6   : > { %v3904_v44 = vpop.eup %3903 }
 0x5a7   : > { %3907 = vrcp.f32 %v1996_v16  ;;  %v2005_v45 = vadd.f32 1.0, %v3904_v44  ;;  %v3906_v46 = vpop.eup %3905 }
 0x5a8   : > { %3909 = vtanh.f32 %v2008_v15  ;;  %v2016_v51 = vadd.f32 1.0, %v3906_v46 }
 0x5a9   : > { %3911 = vrcp.f32 %v2005_v45 }
 0x5aa   : > { %3913 = vrcp.f32 %v2016_v51 }
 0x5b4   : > { %v3908_v47 = vpop.eup %3907 }
 0x5b5   : > { %v3910_v49 = vpop.eup %3909 }
 0x5b6   : > { %v3912_v50 = vpop.eup %3911  ;;  %v2021_v54 = vmul.f32 %v3910_v49, %v3908_v47 }
 0x5b7   : > { %v2020_v52 = vmul.f32 %v3912_v50, %v2019_v48  ;;  %v3914_v56 = vpop.eup %3913 }
 0x5b9   : > { %v2022_v55 = vadd.f32 %v2021_v54, %v2020_v52 }
 0x5bb   : > { %3915 = vtanh.f32 %v2022_v55  ;;  %2025 = vst [vmem:[#allocation3] sm:$0x3] %v2022_v55 }
 0x5c8   : > { %v3916_v57 = vpop.eup %3915 }
 0x5c9   : > { %v2024_v58 = vmul.f32 %v3916_v57, %v3914_v56 }
 0x5cb   : > { %2026 = vst [vmem:[#allocation2] sm:$0x3] %v2024_v58  ;;  %v2027_v59 = vpack.c.bf16 %v2024_v58, %v2024_v58 }
 0x5cd   : > { %3512 = vst [vmem:[%s4332_s28 + $0x3] sm:$0x1] %v2027_v59 }
 0x5d2   : > { %v2032_v3 = vld [vmem:[#allocation2] sm:$0x3] }
 0x5d3   : > { %v2033_v4 = vpack.c.bf16 %v2032_v3, %v2032_v3  ;;  %v2357_v3 = vld [vmem:[#allocation3] sm:$0x3] }
 0x5d5   : > { %2259 = vmatmul.mubr.bf16.vlgmr.msra.gmra.mxu0 %v2033_v4  ;;  %2300 = vmatmul.mubr.bf16.vlgmr.msra.gmra.mxu1 %v2033_v4 }
 0x5d6   : > { %2565 = vmatpush1.bf16.msra.mxu0 %v4601_v20  ;;  %2606 = vmatpush1.bf16.msra.mxu1 %v4604_v21 }
 0x5d7   : > { %2566 = vmatprep.subr.bf16.mxu0 %v4608_v22  ;;  %2607 = vmatprep.subr.bf16.mxu1 %v4613_v23 }
 0x5d8   : > { %2596 = vmatprep.mubr.bf16.mxu0 %v4143_v19  ;;  %2637 = vmatprep.mubr.bf16.mxu1 %v4143_v19 }
 0x5da   : > { %2567 = vmatpush1.bf16.msra.mxu0 %v4616_v24  ;;  %2608 = vmatpush1.bf16.msra.mxu1 %v4620_v25 }
 0x5db   : > { %2568 = vmatprep.subr.bf16.mxu0 %v4624_v26  ;;  %2609 = vmatprep.subr.bf16.mxu1 %v4627_v27 }
 0x5de   : > { %2569 = vmatpush1.bf16.msra.mxu0 %v4630_v28  ;;  %2610 = vmatpush1.bf16.msra.mxu1 %v4633_v29 }
 0x5df   : > { %2570 = vmatprep.subr.bf16.mxu0 %v4638_v30  ;;  %2611 = vmatprep.subr.bf16.mxu1 %v4643_v31 }
 0x5e2   : > { %2571 = vmatpush1.bf16.msra.mxu0 %v4646_v32  ;;  %2612 = vmatpush1.bf16.msra.mxu1 %v4651_v33 }
 0x5e3   : > { %2572 = vmatprep.subr.bf16.mxu0 %v4654_v60  ;;  %2613 = vmatprep.subr.bf16.mxu1 %v4659_v61 }
 0x5e6   : > { %2573 = vmatpush1.bf16.msra.mxu0 %v4662_v62  ;;  %2614 = vmatpush1.bf16.msra.mxu1 %v4665_v63 }
 0x5e7   : > { %2574 = vmatprep.subr.bf16.mxu0 %v4670_v0  ;;  %2615 = vmatprep.subr.bf16.mxu1 %v4675_v34 }
 0x5ea   : > { %2575 = vmatpush1.bf16.msra.mxu0 %v4680_v35  ;;  %2616 = vmatpush1.bf16.msra.mxu1 %v4683_v1 }
 0x5eb   : > { %2576 = vmatprep.subr.bf16.mxu0 %v4688_v36  ;;  %2617 = vmatprep.subr.bf16.mxu1 %v4691_v2 }
 0x5ee   : > { %2577 = vmatpush1.bf16.msra.mxu0 %v4696_v37  ;;  %2618 = vmatpush1.bf16.msra.mxu1 %v4699_v38 }
 0x5ef   : > { %2578 = vmatprep.subr.bf16.mxu0 %v4704_v39  ;;  %2619 = vmatprep.subr.bf16.mxu1 %v4707_v40 }
 0x5f2   : > { %2579 = vmatpush1.bf16.msra.mxu0 %v4712_v41  ;;  %2620 = vmatpush1.bf16.msra.mxu1 %v4715_v42 }
 0x5f3   : > { %2901 = vmatprep.subr.bf16.mxu0 %v4592_v17  ;;  %2942 = vmatprep.subr.bf16.mxu1 %v4595_v18 }
 0x695   : > { %v2260_v43 = vpop.f32.mrf.mxu0  ;;  %v2301_v5 = vpop.f32.mrf.mxu1 }
 0x697   : > { %v2262_v6 = vpop.f32.mrf.mxu0  ;;  %v2303_v7 = vpop.f32.mrf.mxu1 }
 0x698   : > { %v2312_v8 = vcombine.low %v2260_v43, %v2262_v6  ;;  %v2313_v9 = vcombine.low %v2301_v5, %v2303_v7 }
 0x699   : > { %v2264_v10 = vpop.f32.mrf.mxu0  ;;  %v2305_v11 = vpop.f32.mrf.mxu1 }
 0x69a   : > { %v2320_v12 = vrot.slane %v2312_v8, %v4757_v53  ;;  %v2327_v13 = vrot.slane %v2313_v9, %v4757_v53 }
 0x69b   : > { %v2265_v15 = vpop.f32.mrf.mxu0  ;;  %v2306_v16 = vpop.f32.mrf.mxu1 }
 0x69c   : > { %v2328_v44 = vcombine.low %v2320_v12, %v2327_v13 }
 0x69e   : > { %v2330_v45 = vadd.f32 %v3513_v14, %v2328_v44 }
 0x6a0   : > { %v3546_v17 = vmul.f32 -1.442695, %v2330_v45  ;;  %v2338_v46 = vrot.slane %v2330_v45, 2  ;;  %v2349_v47 = vrot.slane %v2330_v45, 6  ;;  %v2346_v50 = vrot.slane %v2330_v45, 4 }
 0x6a2   : > { %3917 = vpow2.f32 %v3546_v17  ;;  %v3547_v18 = vmul.f32 -1.442695, %v2338_v46  ;;  %v3548_v48 = vmul.f32 -1.442695, %v2349_v47 }
 0x6a4   : > { %3919 = vpow2.f32 %v3547_v18 }
 0x6a5   : > { %3921 = vpow2.f32 %v3548_v48 }
 0x6af   : > { %v3918_v49 = vpop.eup %3917 }
 0x6b0   : > { %v2334_v51 = vadd.f32 1.0, %v3918_v49 }
 0x6b1   : > { %v3920_v52 = vpop.eup %3919 }
 0x6b2   : > { %3923 = vrcp.f32 %v2334_v51  ;;  %v2343_v54 = vadd.f32 1.0, %v3920_v52  ;;  %v3922_v55 = vpop.eup %3921 }
 0x6b3   : > { %3925 = vtanh.f32 %v2346_v50  ;;  %v2354_v59 = vadd.f32 1.0, %v3922_v55 }
 0x6b4   : > { %3927 = vrcp.f32 %v2343_v54 }
 0x6b5   : > { %3929 = vrcp.f32 %v2354_v59 }
 0x6bf   : > { %v3924_v56 = vpop.eup %3923 }
 0x6c0   : > { %v3926_v57 = vpop.eup %3925 }
 0x6c1   : > { %v3928_v58 = vpop.eup %3927  ;;  %v2359_v43 = vmul.f32 %v3926_v57, %v3924_v56  ;;  %v2706_v57 = vld [vmem:[%s4330_s15] sm:$0xff] }
 0x6c2   : > { %v2358_v4 = vmul.f32 %v3928_v58, %v2357_v3  ;;  %v3930_v6 = vpop.eup %3929 }
 0x6c4   : > { %v2360_v5 = vadd.f32 %v2359_v43, %v2358_v4 }
 0x6c6   : > { %3931 = vtanh.f32 %v2360_v5  ;;  %2363 = vst [vmem:[#allocation3] sm:$0x3] %v2360_v5 }
 0x6d3   : > { %v3932_v7 = vpop.eup %3931 }
 0x6d4   : > { %v2362_v8 = vmul.f32 %v3932_v7, %v3930_v6 }
 0x6d6   : > { %2364 = vst [vmem:[#allocation2] sm:$0x3] %v2362_v8  ;;  %v2365_v9 = vpack.c.bf16 %v2362_v8, %v2362_v8 }
 0x6d8   : > { %3549 = vst [vmem:[%s4332_s28 + $0x2] sm:$0x1] %v2365_v9 }
 0x6dd   : > { %v2370_v10 = vld [vmem:[#allocation2] sm:$0x3] }
 0x6de   : > { %v2371_v11 = vpack.c.bf16 %v2370_v10, %v2370_v10 }
 0x6e0   : > { %2597 = vmatmul.mubr.bf16.vlgmr.msra.gmra.mxu0 %v2371_v11  ;;  %2638 = vmatmul.mubr.bf16.vlgmr.msra.gmra.mxu1 %v2371_v11 }
 0x6e1   : > { %2902 = vmatpush1.bf16.msra.mxu0 %v4601_v20  ;;  %2943 = vmatpush1.bf16.msra.mxu1 %v4604_v21 }
 0x6e2   : > { %2903 = vmatprep.subr.bf16.mxu0 %v4608_v22  ;;  %2944 = vmatprep.subr.bf16.mxu1 %v4613_v23 }
 0x6e3   : > { %2933 = vmatprep.mubr.bf16.mxu0 %v4143_v19  ;;  %2974 = vmatprep.mubr.bf16.mxu1 %v4143_v19 }
 0x6e5   : > { %2904 = vmatpush1.bf16.msra.mxu0 %v4616_v24  ;;  %2945 = vmatpush1.bf16.msra.mxu1 %v4620_v25 }
 0x6e6   : > { %2905 = vmatprep.subr.bf16.mxu0 %v4624_v26  ;;  %2946 = vmatprep.subr.bf16.mxu1 %v4627_v27 }
 0x6e9   : > { %2906 = vmatpush1.bf16.msra.mxu0 %v4630_v28  ;;  %2947 = vmatpush1.bf16.msra.mxu1 %v4633_v29  ;;  %v3550_v29 = vld [vmem:[%s4330_s15 + $0x8] sm:$0xff] }
 0x6ea   : > { %2907 = vmatprep.subr.bf16.mxu0 %v4638_v30  ;;  %2948 = vmatprep.subr.bf16.mxu1 %v4643_v31 }
 0x6ed   : > { %2908 = vmatpush1.bf16.msra.mxu0 %v4646_v32  ;;  %2949 = vmatpush1.bf16.msra.mxu1 %v4651_v33 }
 0x6ee   : > { %2909 = vmatprep.subr.bf16.mxu0 %v4654_v60  ;;  %2950 = vmatprep.subr.bf16.mxu1 %v4659_v61 }
 0x6f1   : > { %2910 = vmatpush1.bf16.msra.mxu0 %v4662_v62  ;;  %2951 = vmatpush1.bf16.msra.mxu1 %v4665_v63 }
 0x6f2   : > { %2911 = vmatprep.subr.bf16.mxu0 %v4670_v0  ;;  %2952 = vmatprep.subr.bf16.mxu1 %v4675_v34 }
 0x6f5   : > { %2912 = vmatpush1.bf16.msra.mxu0 %v4680_v35  ;;  %2953 = vmatpush1.bf16.msra.mxu1 %v4683_v1 }
 0x6f6   : > { %2913 = vmatprep.subr.bf16.mxu0 %v4688_v36  ;;  %2954 = vmatprep.subr.bf16.mxu1 %v4691_v2 }
 0x6f9   : > { %2914 = vmatpush1.bf16.msra.mxu0 %v4696_v37  ;;  %2955 = vmatpush1.bf16.msra.mxu1 %v4699_v38 }
 0x6fa   : > { %2915 = vmatprep.subr.bf16.mxu0 %v4704_v39  ;;  %2956 = vmatprep.subr.bf16.mxu1 %v4707_v40 }
 0x6fd   : > { %2916 = vmatpush1.bf16.msra.mxu0 %v4712_v41  ;;  %2957 = vmatpush1.bf16.msra.mxu1 %v4715_v42  ;;  %v2695_v42 = vld [vmem:[#allocation3] sm:$0x3] }
 0x7a0   : > { %v2598_v19 = vpop.f32.mrf.mxu0  ;;  %v2639_v20 = vpop.f32.mrf.mxu1 }
 0x7a2   : > { %v2600_v21 = vpop.f32.mrf.mxu0  ;;  %v2641_v22 = vpop.f32.mrf.mxu1 }
 0x7a3   : > { %v2650_v23 = vcombine.low %v2598_v19, %v2600_v21  ;;  %v2651_v24 = vcombine.low %v2639_v20, %v2641_v22 }
 0x7a4   : > { %v2602_v25 = vpop.f32.mrf.mxu0  ;;  %v2643_v26 = vpop.f32.mrf.mxu1 }
 0x7a5   : > { %v2658_v27 = vrot.slane %v2650_v23, %v4757_v53  ;;  %v2665_v28 = vrot.slane %v2651_v24, %v4757_v53 }
 0x7a6   : > { %v2603_v30 = vpop.f32.mrf.mxu0  ;;  %v2644_v31 = vpop.f32.mrf.mxu1 }
 0x7a7   : > { %v2666_v32 = vcombine.low %v2658_v27, %v2665_v28 }
 0x7a9   : > { %v2668_v33 = vadd.f32 %v3550_v29, %v2666_v32 }
 0x7ab   : > { %v3583_v60 = vmul.f32 -1.442695, %v2668_v33  ;;  %v2676_v61 = vrot.slane %v2668_v33, 2  ;;  %v2687_v63 = vrot.slane %v2668_v33, 6  ;;  %v2684_v35 = vrot.slane %v2668_v33, 4 }
 0x7ad   : > { %3933 = vpow2.f32 %v3583_v60  ;;  %v3584_v62 = vmul.f32 -1.442695, %v2676_v61  ;;  %v3585_v0 = vmul.f32 -1.442695, %v2687_v63 }
 0x7af   : > { %3935 = vpow2.f32 %v3584_v62 }
 0x7b0   : > { %3937 = vpow2.f32 %v3585_v0 }
 0x7ba   : > { %v3934_v34 = vpop.eup %3933 }
 0x7bb   : > { %v2672_v1 = vadd.f32 1.0, %v3934_v34 }
 0x7bc   : > { %v3936_v36 = vpop.eup %3935 }
 0x7bd   : > { %3939 = vrcp.f32 %v2672_v1  ;;  %v2681_v2 = vadd.f32 1.0, %v3936_v36  ;;  %v3938_v37 = vpop.eup %3937 }
 0x7be   : > { %3941 = vtanh.f32 %v2684_v35  ;;  %v2692_v41 = vadd.f32 1.0, %v3938_v37 }
 0x7bf   : > { %3943 = vrcp.f32 %v2681_v2 }
 0x7c0   : > { %3945 = vrcp.f32 %v2692_v41 }
 0x7ca   : > { %v3940_v38 = vpop.eup %3939 }
 0x7cb   : > { %v3942_v39 = vpop.eup %3941 }
 0x7cc   : > { %v3944_v40 = vpop.eup %3943  ;;  %v2697_v13 = vmul.f32 %v3942_v39, %v3940_v38 }
 0x7cd   : > { %v2696_v12 = vmul.f32 %v3944_v40, %v2695_v42  ;;  %v3946_v15 = vpop.eup %3945 }
 0x7cf   : > { %v2698_v14 = vadd.f32 %v2697_v13, %v2696_v12 }
 0x7d1   : > { %3947 = vtanh.f32 %v2698_v14  ;;  %2701 = vst [vmem:[#allocation3] sm:$0x3] %v2698_v14 }
 0x7d8   : > { %v3032_v25 = vld [vmem:[#allocation3] sm:$0x3] }
 0x7de   : > { %v3948_v16 = vpop.eup %3947 }
 0x7df   : > { %v2700_v44 = vmul.f32 %v3948_v16, %v3946_v15 }
 0x7e1   : > { %v2703_v45 = vpack.c.bf16 %v2700_v44, %v2700_v44  ;;  %2702 = vst [vmem:[#allocation2] sm:$0x3] %v2700_v44 }
 0x7e3   : > { %3586 = vst [vmem:[%s4332_s28 + $0x1] sm:$0x1] %v2703_v45 }
 0x7e8   : > { %v2707_v17 = vld [vmem:[#allocation2] sm:$0x3] }
 0x7e9   : > { %v2708_v46 = vpack.c.bf16 %v2707_v17, %v2707_v17 }
 0x7eb   : > { %2934 = vmatmul.mubr.bf16.vlgmr.msra.gmra.mxu0 %v2708_v46  ;;  %2975 = vmatmul.mubr.bf16.vlgmr.msra.gmra.mxu1 %v2708_v46 }
 0x8ab   : > { %v2935_v18 = vpop.f32.mrf.mxu0  ;;  %v2976_v47 = vpop.f32.mrf.mxu1 }
 0x8ad   : > { %v2937_v48 = vpop.f32.mrf.mxu0  ;;  %v2978_v49 = vpop.f32.mrf.mxu1 }
 0x8ae   : > { %v2987_v50 = vcombine.low %v2935_v18, %v2937_v48  ;;  %v2988_v51 = vcombine.low %v2976_v47, %v2978_v49 }
 0x8af   : > { %v2939_v52 = vpop.f32.mrf.mxu0  ;;  %v2980_v54 = vpop.f32.mrf.mxu1 }
 0x8b0   : > { %v2995_v55 = vrot.slane %v2987_v50, %v4757_v53  ;;  %v3002_v56 = vrot.slane %v2988_v51, %v4757_v53 }
 0x8b1   : > { %v2940_v58 = vpop.f32.mrf.mxu0  ;;  %v2981_v59 = vpop.f32.mrf.mxu1 }
 0x8b2   : > { %v3003_v3 = vcombine.low %v2995_v55, %v3002_v56 }
 0x8b4   : > { %v3005_v4 = vadd.f32 %v3003_v3, %v2706_v57 }
 0x8b6   : > { %v3619_v43 = vmul.f32 -1.442695, %v3005_v4  ;;  %v3013_v5 = vrot.slane %v3005_v4, 2  ;;  %v3024_v7 = vrot.slane %v3005_v4, 6  ;;  %v3021_v10 = vrot.slane %v3005_v4, 4 }
 0x8b8   : > { %3949 = vpow2.f32 %v3619_v43  ;;  %v3620_v6 = vmul.f32 -1.442695, %v3013_v5  ;;  %v3621_v8 = vmul.f32 -1.442695, %v3024_v7 }
 0x8ba   : > { %3951 = vpow2.f32 %v3620_v6 }
 0x8bb   : > { %3953 = vpow2.f32 %v3621_v8 }
 0x8c5   : > { %v3950_v9 = vpop.eup %3949 }
 0x8c6   : > { %v3009_v11 = vadd.f32 1.0, %v3950_v9 }
 0x8c7   : > { %v3952_v19 = vpop.eup %3951 }
 0x8c8   : > { %3955 = vrcp.f32 %v3009_v11  ;;  %v3018_v20 = vadd.f32 1.0, %v3952_v19  ;;  %v3954_v53 = vpop.eup %3953 }
 0x8c9   : > { %3957 = vtanh.f32 %v3021_v10  ;;  %v3029_v24 = vadd.f32 1.0, %v3954_v53 }
 0x8ca   : > { %3959 = vrcp.f32 %v3018_v20 }
 0x8cb   : > { %3961 = vrcp.f32 %v3029_v24 }
 0x8d5   : > { %v3956_v21 = vpop.eup %3955 }
 0x8d6   : > { %v3958_v22 = vpop.eup %3957 }
 0x8d7   : > { %v3960_v23 = vpop.eup %3959  ;;  %v3034_v27 = vmul.f32 %v3958_v22, %v3956_v21 }
 0x8d8   : > { %v3033_v26 = vmul.f32 %v3960_v23, %v3032_v25  ;;  %v3962_v29 = vpop.eup %3961 }
 0x8da   : > { %v3035_v28 = vadd.f32 %v3034_v27, %v3033_v26 }
 0x8dc   : > { %3963 = vtanh.f32 %v3035_v28  ;;  %3038 = vst [vmem:[#allocation3] sm:$0x3] %v3035_v28 }
 0x8e9   : > { %v3964_v30 = vpop.eup %3963 }
 0x8ea   : > { %v3037_v31 = vmul.f32 %v3964_v30, %v3962_v29 }
 0x8ec   : > { %3039 = vst [vmem:[#allocation2] sm:$0x3] %v3037_v31  ;;  %v3040_v32 = vpack.c.bf16 %v3037_v31, %v3037_v31 }
 0x8ee   : > { %3041 = vst [vmem:[%s4332_s28] sm:$0x1] %v3040_v32 }
 0x8ef PF: > { %p3622_p9 = scmp.ne.s32.totalorder %s4119_s20, 1 }
 0x8f1   : > { %3045 = sbr.rel (%p3622_p9) target bundleno = 2296 (0x8f8), region = 48 }
 0x8f6   : > { %v3046_v33 = vld [vmem:[#allocation2] sm:$0x3]  ;;  %v3048_v60 = vld [vmem:[#allocation3] sm:$0x3] }
 0x8f7   : > { %3047 = vst [vmem:[%s4334_s22] sm:$0x3] %v3046_v33  ;;  %3049 = vst [vmem:[%s4336_s6] sm:$0x3] %v3048_v60 }
 0x8f8 PF: > { %s3055_s1 = scalar_lea.sflag [#allocation6], %s4307_s27  ;;  %s3060_s23 = scalar_lea.sflag [#allocation10], %s4307_s27  ;;  %v3091_v61 = vld [vmem:[%s4332_s28] sm:$0x1] (%p4265_p12)  ;;  %v3093_v62 = vld [vmem:[%s4332_s28 + $0x1] sm:$0x1] (%p4265_p12) }
 0x8f9   : > { %3066 = sbr.rel (!%p4265_p12) target bundleno = 2302 (0x8fe), region = 52  ;;  %s3634_s20 = sshll.u32 (%p4265_p12), %s4324_s30, 3  ;;  %v3095_v63 = vld [vmem:[%s4332_s28 + $0x2] sm:$0x1] (%p4265_p12)  ;;  %v3097_v0 = vld [vmem:[%s4332_s28 + $0x3] sm:$0x1] (%p4265_p12) }
 0x8fa   : > { %s3073_s14 = sadd.s32 (%p4265_p12), %s4123_s21, %s3634_s20 }
 0x8fb   : > { %s3074_s5 = scalar_lea.vmem (%p4265_p12), %s4934_s2, %s3073_s14 }
 0x8fc   : > { %3092 = vst [vmem:[%s3074_s5] sm:$0x1] (%p4265_p12), %v3091_v61  ;;  %3094 = vst [vmem:[%s3074_s5 + $0x2] sm:$0x1] (%p4265_p12), %v3093_v62 }
 0x8fd   : > { %3096 = vst [vmem:[%s3074_s5 + $0x4] sm:$0x1] (%p4265_p12), %v3095_v63  ;;  %3098 = vst [vmem:[%s3074_s5 + $0x6] sm:$0x1] (%p4265_p12), %v3097_v0 }
 0x8fe PF: > { %s3629_s8 = sshll.u32 %s4123_s21, 5  ;;  %s3129_s12 = sshll.u32 %s4334_s22, 4  ;;  %s3130_s12 = int_to_ptr.vmem [resolvable:$true] %s3129_s12 }
 0x8ff   : > { %s4958_s7 = sld [smem:[#allocation20_spill]]  ;;  %s3993_s11 = scalar_lea.vmem %s3130_s12, 32 }
 0x900   : > { %p3994_p12 = scmp.ne.s32.totalorder %s3130_s12, %s3993_s11  ;;  %s4145_s13 = smov [#allocation8]  }
 0x901   : > { %s3997_s15 = sshll.u32 %s4145_s13, 4  ;;  %s3998_s15 = int_to_ptr.vmem [resolvable:$false] %s3997_s15 }
 0x902   : > { %p3995_p10 = pnand %p3994_p12, %p4272_p13  ;;  %s3999_s28 = scalar_lea.vmem %s3998_s15, 64 }
 0x903   : > { %p4000_p0 = scmp.lt.s32.totalorder %s3130_s12, %s3998_s15  ;;  %p4001_p3 = scmp.lt.s32.totalorder %s3999_s28, %s3993_s11 }
 0x904   : > { %p3996_p11 = pneg %p3995_p10 }
 0x905   : > { %s3127_s4 = scalar_lea.hbm %s4958_s7, %s3629_s8  ;;  %p4002_p5 = por %p4001_p3, %p4000_p0 }
 0x907   : > { %p4003_p6 = pnand %p4002_p5, %p3996_p11 }
 0x909   : > { %4006 = shalt.err (!%p4003_p6)
}
 0x90a   : > { %s4007_s22 = scalar_lea.hbm %s3127_s4, 32  ;;  %s4011_s9 = scalar_lea.hbm %s4958_s7, 64 }
 0x90b   : > { %p4008_p2 = scmp.ne.s32.totalorder %s3127_s4, %s4007_s22  ;;  %p4012_p4 = scmp.lt.s32.totalorder %s3127_s4, %s4958_s7 }
 0x90c   : > { %p4013_p8 = scmp.lt.s32.totalorder %s4011_s9, %s4007_s22 }
 0x90d   : > { %p4009_p7 = pnand %p4008_p2, %p4272_p13 }
 0x90e   : > { %p4014_p9 = por %p4013_p8, %p4012_p4 }
 0x90f   : > { %p4010_p1 = pneg %p4009_p7 }
 0x911   : > { %p4015_p12 = pnand %p4014_p9, %p4010_p1 }
 0x913   : > { %4018 = shalt.err (!%p4015_p12)
}
 0x914   : > { %3637 = dma.vmem_to_hbm [thread:$0]  (%p4272_p13), %s3130_s12, 32, %s3127_s4, %s3055_s1  }
 0x915   : > { %s4959_s11 = sld [smem:[#allocation21_spill]]  ;;  %s3142_s15 = sshll.u32 %s4336_s6, 4  ;;  %s3143_s15 = int_to_ptr.vmem [resolvable:$true] %s3142_s15 }
 0x916   : > { %s4019_s28 = scalar_lea.vmem %s3143_s15, 32  ;;  %s4146_s22 = smov [#allocation9]  }
 0x917   : > { %p4020_p10 = scmp.ne.s32.totalorder %s3143_s15, %s4019_s28  ;;  %s4023_s20 = sshll.u32 %s4146_s22, 4  ;;  %s4024_s20 = int_to_ptr.vmem [resolvable:$false] %s4023_s20 }
 0x918   : > { %s4025_s14 = scalar_lea.vmem %s4024_s20, 64  ;;  %p4026_p3 = scmp.lt.s32.totalorder %s3143_s15, %s4024_s20 }
 0x919   : > { %p4021_p11 = pnand %p4020_p10, %p4272_p13  ;;  %p4027_p5 = scmp.lt.s32.totalorder %s4025_s14, %s4019_s28 }
 0x91b   : > { %s3140_s13 = scalar_lea.hbm %s4959_s11, %s3629_s8  ;;  %p4022_p0 = pneg %p4021_p11 }
 0x91c   : > { %p4028_p6 = por %p4027_p5, %p4026_p3 }
 0x91e   : > { %p4029_p2 = pnand %p4028_p6, %p4022_p0 }
 0x920   : > { %4032 = shalt.err (!%p4029_p2)
}
 0x921   : > { %s4033_s21 = scalar_lea.hbm %s3140_s13, 32  ;;  %s4037_s8 = scalar_lea.hbm %s4959_s11, 64 }
 0x922   : > { %p4034_p7 = scmp.ne.s32.totalorder %s3140_s13, %s4033_s21  ;;  %p4038_p8 = scmp.lt.s32.totalorder %s3140_s13, %s4959_s11 }
 0x923   : > { %p4039_p9 = scmp.lt.s32.totalorder %s4037_s8, %s4033_s21 }
 0x924   : > { %p4035_p1 = pnand %p4034_p7, %p4272_p13 }
 0x925   : > { %p4040_p12 = por %p4039_p9, %p4038_p8 }
 0x926   : > { %p4036_p4 = pneg %p4035_p1 }
 0x928   : > { %p4041_p10 = pnand %p4040_p12, %p4036_p4 }
 0x92a   : > { %4044 = shalt.err (!%p4041_p10)
}
 0x92b   : > { %3638 = dma.vmem_to_hbm [thread:$0]  (%p4272_p13), %s3143_s15, 32, %s3140_s13, %s3060_s23  }
 0x92c PF: > { %p3653_p11 = scmp.ge.s32.totalorder %s4135_s24, 2  ;;  %s3161_s9 = sand.u32 1, %s4107_s17  }
 0x92d   : > { %p4960_p0 = scmp.ne.s32.totalorder %s4955_s29, 0  ;;  %s3162_s3 = scalar_lea.sflag [#allocation6], %s3161_s9 }
 0x92f   : > { %p3646_p3 = pnand %p3653_p11, %p4960_p0 }
 0x931   : > { %p3647_p5 = pneg %p3646_p3 }
 0x933   : > { %4090 = dma.done.wait (%p3647_p5), %s3162_s3, 32  }
 0x934   : > { %4092 = vsyncadd (%p3647_p5), %s3162_s3, 4294967264  ;;  %s3171_s5 = scalar_lea.sflag [#allocation10], %s3161_s9 }
 0x935   : > { %4094 = dma.done.wait (%p3647_p5), %s3171_s5, 32  }
 0x936   : > { %4096 = vsyncadd (%p3647_p5), %s3171_s5, 4294967264  ;;  %s24_s24 = sadd.s32 1, %s4135_s24   ;;  %s4961_s10 = sld [smem:[#allocation18_spill]] }
 0x937   : > { %p21_p6 = scmp.ge.s32.totalorder %s24_s24, 6   ;;  %s4962_s20 = sld [smem:[#allocation14_spill]] }
 0x938   : > { %s4963_s21 = sld [smem:[#allocation15_spill]]  ;;  %s4966_s15 = smov %s4103_s16 }
 0x939   : > { %s4964_s22 = sld [smem:[#allocation16_spill]]  ;;  %s4967_s16 = smov %s4286_s25 }
 0x93a   : > { %s4965_s23 = sld [smem:[#allocation17_spill]]  ;;  %s4968_s17 = smov %s4111_s18 }
 0x93b   : > { %s4969_s18 = smov %s4115_s19  ;;  %23 = sbr.rel (!%p21_p6) target bundleno = 14 (0xe), region = 167 }
 0x93c   : > { %s4970_s19 = smov %s4961_s10 }
 0x940   :  { %3176 = vsyncpa [#allocation5], 1 }
 0x941   :  { %3178 = vsyncpa [#allocation5 + $0x1], 1 }
 0x942   :  { %3179 = vsyncpa [#allocation6], 1 }
 0x943   :  { %3181 = vsyncpa [#allocation6 + $0x1], 1 }
 0x944   :  { %3182 = vsyncpa [#allocation10], 1 }
 0x945   :  { %3184 = vsyncpa [#allocation10 + $0x1], 1 }

</bundles_post_ra>
